<compile_context>
chip_gen: v7x
topology: tpu7x:2x2x1
jax: 0.10.0
libtpu: 0.0.40
codegen_flags: <defaults>
</compile_context>

<pallas_src>
import numpy as np
import jax
import jax.numpy as jnp
from jax.experimental import pallas as pl
from jax.experimental.pallas import tpu as pltpu

EMB_DIM = 50          # fixed by .view((1, 1, -1, 50)) in forward()
EMB_PAD = 128         # lane-padded embedding width used inside the kernel
N_FILTERS = 20
N_CONVS = 6           # conv1h..conv6h are the only convs used by forward()
CONV_LANES = 128      # 6*20 = 120 real pooled columns, padded to 128 lanes
POOL_OUT = 35
OUT_LANES = 128
NEG_SLOPE = 0.01      # F.leaky_relu default


def _ru(x, m):
    return (x + m - 1) // m * m


# ----------------------------------------------------------------------------
# The single fused kernel
# ----------------------------------------------------------------------------
def _make_fused_kernel(S, PPAD, P2, P2PAD, FLATPAD, vocab):
    """Whole CNN.forward in one kernel; every intermediate stays in VMEM."""

    def kernel(x_ref, emb_hbm, wc_ref, w2_ref, cl1_ref, lmats_ref, b_ref,
               o_ref, q_ref, sem):
        # ---- 1) embedding gather: S row-DMAs straight from HBM ----------------
        copies = []
        for i in range(S):                                  # S is small & static
            tok = x_ref[i]                                  # scalar read from SMEM
            tok = jnp.minimum(jnp.maximum(tok, 0), vocab - 1)   # clamp: no OOB DMA
            cp = pltpu.make_async_copy(emb_hbm.at[pl.ds(tok, 1)],
                                       q_ref.at[pl.ds(8 + i, 1)],
                                       sem.at[i])
            cp.start()
            copies.append(cp)
        # zero only the rows the DMAs do NOT write (disjoint -> no ordering hazard)
        q_ref[pl.ds(0, 8), :] = jnp.zeros((8, EMB_PAD), jnp.float32)
        q_ref[pl.ds(8 + S, PPAD - S), :] = jnp.zeros((PPAD - S, EMB_PAD), jnp.float32)
        for cp in copies:
            cp.wait()

        # ---- 2) conv1h..conv6h as ONE (PPAD, 768) x (768, 128) MXU dot ---------
        # lhs[:, j*128+d] = q_pad[j + row, d]  (six shifted VMEM windows, lane-concat)
        lhs = jnp.concatenate(
            [q_ref[pl.ds(j, PPAD), :] for j in range(N_CONVS)], axis=1)
        acc = jnp.dot(lhs, wc_ref[...],
                      preferred_element_type=jnp.float32)            # (PPAD, 128)

        # ---- 3) full-height max pool; invalid rows -> -1e30; bias AFTER max ----
        row_ids = jax.lax.broadcasted_iota(jnp.int32, (PPAD, CONV_LANES), 0)
        col_ids = jax.lax.broadcasted_iota(jnp.int32, (PPAD, CONV_LANES), 1)
        km1 = ((col_ids >= 20).astype(jnp.int32) + (col_ids >= 40).astype(jnp.int32)
               + (col_ids >= 60).astype(jnp.int32) + (col_ids >= 80).astype(jnp.int32)
               + (col_ids >= 100).astype(jnp.int32))        # (k - 1) per column
        acc = jnp.where(row_ids < (S + 16 - km1), acc, -1e30)   # conv_k: S+17-k rows
        # bias is constant per column, so max(y + b) == max(y) + b.
        # b_ref row 0 lane 127 is 1.0 -> pooled[127] == 1.0 (poolConv-bias lane).
        pooled = jnp.max(acc, axis=0, keepdims=True) + b_ref[pl.ds(0, 1), :]  # (1,128)

        # ---- 4) poolConv + all static torch scrambles, folded into w2 ----------
        # cflat[:, o*P2 + p] = poolConv channel o at position p (+ bias via lane 127)
        pooled_b = jnp.broadcast_to(pooled, (P2PAD, CONV_LANES))
        cflat = jnp.dot(pooled_b, w2_ref[...],
                        preferred_element_type=jnp.float32)          # (P2PAD, FLATPAD)
        # torch .view(-1, 35): row r keeps cols [r*35, r*35+35) of the flat vector
        r_ids = jax.lax.broadcasted_iota(jnp.int32, (P2PAD, FLATPAD), 0)
        c_ids = jax.lax.broadcasted_iota(jnp.int32, (P2PAD, FLATPAD), 1)
        base = r_ids * POOL_OUT
        win = (c_ids >= base) & (c_ids < base + POOL_OUT) & (r_ids < P2)
        cb = jnp.where(win, cflat, 0.0)
        # (for num_convolutions > 2, tile cb over sublane row blocks; fine at N=2)

        # ---- 5) MLP head (csel@lin1 folded at pack time) + masked log-softmax --
        def lrelu(v):
            return jnp.where(v >= 0, v, NEG_SLOPE * v)

        h = lrelu(jnp.dot(cb, cl1_ref[...],
                          preferred_element_type=jnp.float32) + b_ref[pl.ds(1, 1), :])
        h = lrelu(jnp.dot(h, lmats_ref[0],
                          preferred_element_type=jnp.float32) + b_ref[pl.ds(2, 1), :])
        h = jnp.dot(h, lmats_ref[1],
                    preferred_element_type=jnp.float32) + b_ref[pl.ds(3, 1), :]

        out_cols = jax.lax.broadcasted_iota(jnp.int32, (P2PAD, OUT_LANES), 1)
        h = jnp.where(out_cols < POOL_OUT, h, -1e30)    # keep pad lanes out of lse
        m = jnp.max(h, axis=1, keepdims=True)
        lse = jnp.log(jnp.sum(jnp.exp(h - m), axis=1, keepdims=True)) + m
        o_ref[...] = h - lse                            # lane-dense (P2PAD, 128) store

    return kernel


# ----------------------------------------------------------------------------
# One-time weight repacking (TPU-friendly, 128-lane-dense operands)
# ----------------------------------------------------------------------------
def pack_params(params, num_convolutions):
    """Folds every static scramble of the original forward (pools duplication,
    torch.cat().view(1,20,-1,1), the poolConv im2col + bias and the channel-major
    .view(-1,35) followed by linear1) into lane-padded weights so the kernel is
    pure dense algebra.  Called ONCE per model, not per forward."""
    N = int(num_convolutions)
    H = N_FILTERS * N
    P2 = H - 19
    FLAT = POOL_OUT * P2
    FLATPAD = _ru(FLAT, 128)

    packed = {}

    # embedding table, lane padded 50 -> 128 (pad columns zero); stays in HBM.
    packed["emb"] = jnp.pad(params["emb"].astype(jnp.float32),
                            ((0, 0), (0, EMB_PAD - EMB_DIM)))

    # conv1h..conv6h -> one flattened (6*128, 128) weight; biases -> row 0 of the
    # coalesced bias array.  Column (k-1)*20 + f <-> conv{k}h filter f.  Only
    # kernel-width columns 8:58 can touch real data (Conv2d width padding is 0).
    wc = jnp.zeros((N_CONVS, EMB_PAD, CONV_LANES), jnp.float32)
    biases = jnp.zeros((8, OUT_LANES), jnp.float32)
    for k in range(1, N_CONVS + 1):
        w = params[f"conv{k}h_w"][:, 0, :, 8:8 + EMB_DIM].astype(jnp.float32)  # (20,k,50)
        w = jnp.transpose(w, (1, 2, 0))                                        # (k,50,20)
        wc = wc.at[:k, :EMB_DIM, (k - 1) * N_FILTERS:k * N_FILTERS].set(w)
        biases = biases.at[0, (k - 1) * N_FILTERS:k * N_FILTERS].set(
            params[f"conv{k}h_b"].astype(jnp.float32))
    packed["wc"] = wc.reshape(N_CONVS * EMB_PAD, CONV_LANES)   # row = j*128 + d
    biases = biases.at[0, CONV_LANES - 1].set(1.0)             # pooled[127] == 1.0

    # Static map: pooled column feeding allMax[channel, position] (encodes the
    # pools-duplication pattern and torch.cat(pools).view(1, 20, -1, 1)).
    pattern = np.array([1] * 6 + [2] * 4 + [3] * 4 + [4] * 2 + [5] * 2 + [6] * 2)
    ch = np.arange(N_FILTERS)[:, None]
    pos = np.arange(H)[None, :]
    idx_allmax = (pattern[(ch * N + pos // N_FILTERS) % 20] - 1) * N_FILTERS \
        + pos % N_FILTERS                                                    # (20, H)

    # poolConv (+ its im2col) folded onto the 120-wide pooled vector; output is
    # packed channel-major (col = o*P2 + p) so torch's later .view(-1, 35)
    # becomes a contiguous stride-35 unflatten.  Row 127 carries the bias (the
    # pooled vector has a constant 1.0 in lane 127).
    windows = np.stack([idx_allmax[:, p:p + N_FILTERS] for p in range(P2)],
                       axis=0)                                               # (P2, ic, kh)
    sel = (windows[..., None] == np.arange(CONV_LANES)).astype(np.float32)   # (P2,20,20,128)
    wp = params["poolConv_w"][:, :, :, 0].astype(jnp.float32)                # (35, 20, 20)
    w2 = jnp.einsum("oik,pikm->mpo", wp, jnp.asarray(sel))                   # (128, P2, 35)
    w2 = jnp.transpose(w2, (0, 2, 1)).reshape(CONV_LANES, FLAT)              # col = o*P2+p
    b2 = jnp.repeat(params["poolConv_b"].astype(jnp.float32), P2)            # col = o*P2+p
    w2 = w2.at[CONV_LANES - 1, :].set(b2)                                    # bias lane
    packed["w2"] = jnp.pad(w2, ((0, 0), (0, FLATPAD - FLAT)))

    # MLP head, lane padded to 128; the .view(-1,35) one-hot unflatten (csel) is
    # folded into linear1 at pack time -> one (FLATPAD, 128) operand.
    lmats = []
    for i in (1, 2, 3):
        wl = jnp.zeros((OUT_LANES, OUT_LANES), jnp.float32)
        wl = wl.at[:POOL_OUT, :POOL_OUT].set(params[f"lin{i}_w"].astype(jnp.float32).T)
        biases = biases.at[i, :POOL_OUT].set(params[f"lin{i}_b"].astype(jnp.float32))
        lmats.append(wl)
    mrow = np.arange(FLATPAD)[:, None]
    ccol = np.arange(OUT_LANES)[None, :]
    csel = ((mrow < FLAT) & (ccol < POOL_OUT)
            & ((mrow % POOL_OUT) == ccol)).astype(np.float32)                # (FLATPAD,128)
    packed["csel_l1"] = jnp.asarray(csel) @ lmats[0]                         # (FLATPAD,128)
    packed["lmats"] = jnp.stack(lmats[1:], axis=0)                           # (2,128,128)
    packed["biases"] = biases                                                # (8,128)
    return packed


# ----------------------------------------------------------------------------
# Forward pass: one pallas_call, plus a single output slice outside the kernel
# ----------------------------------------------------------------------------
def forward_pallas(packed, X, num_convolutions):
    N = int(num_convolutions)
    S = int(X.shape[0])
    H = N_FILTERS * N
    P2 = H - 19
    FLAT = POOL_OUT * P2
    FLATPAD = _ru(FLAT, 128)
    P2PAD = _ru(P2, 8)
    PPAD = _ru(S + 16, 8)          # conv position rows, sublane padded
    QROWS = PPAD + 8               # embedding scratch rows (covers all 6 shifts)
    vocab = packed["emb"].shape[0]

    def vfull(shape):
        return pl.BlockSpec(shape, lambda i, _n=len(shape): (0,) * _n)

    kernel = _make_fused_kernel(S, PPAD, P2, P2PAD, FLATPAD, vocab)

    out_full = pl.pallas_call(
        kernel,
        out_shape=jax.ShapeDtypeStruct((P2PAD, OUT_LANES), jnp.float32),
        grid=(1,),
        in_specs=[
            pl.BlockSpec(memory_space=pltpu.MemorySpace.SMEM),   # token ids
            pl.BlockSpec(memory_space=pl.ANY),                   # embedding table (HBM)
            vfull((N_CONVS * EMB_PAD, CONV_LANES)),              # fused conv weights
            vfull((CONV_LANES, FLATPAD)),                        # poolConv(+bias), scrambled
            vfull((FLATPAD, OUT_LANES)),                         # unflatten one-hot @ lin1
            vfull((2, OUT_LANES, OUT_LANES)),                    # lin2 / lin3
            vfull((8, OUT_LANES)),                               # coalesced bias rows
        ],
        out_specs=vfull((P2PAD, OUT_LANES)),
        scratch_shapes=[pltpu.VMEM((QROWS, EMB_PAD), jnp.float32),
                        pltpu.SemaphoreType.DMA((S,))],
        compiler_params=pltpu.CompilerParams(dimension_semantics=("arbitrary",)),
    )(
        X.astype(jnp.int32),
        packed["emb"], packed["wc"], packed["w2"], packed["csel_l1"],
        packed["lmats"], packed["biases"],
    )
    return out_full[:P2, :POOL_OUT]


# ----------------------------------------------------------------------------
# Pure-JAX reference (mirrors the torch module exactly; used for validation)
# ----------------------------------------------------------------------------
def forward_ref(params, X, num_convolutions):
    S = X.shape[0]
    N = int(num_convolutions)
    emb = jnp.take(params["emb"], X, axis=0).astype(jnp.float32)        # (S, 50)
    qpad = jnp.pad(emb, ((8, 8), (0, 0)))                               # height padding=8

    pool_per_k = []
    for k in range(1, 7):
        P = S + 17 - k
        patches = jnp.concatenate([qpad[i:i + P, :] for i in range(k)], axis=1)
        w_eff = params[f"conv{k}h_w"][:, 0, :, 8:8 + EMB_DIM]
        w_eff = w_eff.reshape(N_FILTERS, k * EMB_DIM).T
        b = params[f"conv{k}h_b"].reshape(1, N_FILTERS)
        pool_per_k.append(jnp.max(patches @ w_eff + b, axis=0, keepdims=True))

    counts = [6, 4, 4, 2, 2, 2]
    pools = []
    for _ in range(N):
        for idx, c in enumerate(counts):
            pools.extend([pool_per_k[idx]] * c)
    all_pools = jnp.concatenate(pools, axis=0)                          # (20N, 20)
    H = all_pools.shape[0]
    all_max = all_pools.reshape(-1).reshape(N_FILTERS, H)               # torch .view

    P2 = H - 19
    win = jnp.stack([all_max[:, kh:kh + P2] for kh in range(20)], axis=1)
    feat = jnp.transpose(win, (2, 0, 1)).reshape(P2, N_FILTERS * 20)
    wp = params["poolConv_w"][:, :, :, 0].reshape(POOL_OUT, N_FILTERS * 20).T
    bp = params["poolConv_b"].reshape(1, POOL_OUT)
    conved = feat @ wp + bp

    lin_in = conved.T.reshape(-1, POOL_OUT)                             # torch .view(-1, 35)
    lrelu = lambda v: jnp.where(v >= 0, v, NEG_SLOPE * v)
    h = lrelu(lin_in @ params["lin1_w"].T + params["lin1_b"][None])
    h = lrelu(h @ params["lin2_w"].T + params["lin2_b"][None])
    h = h @ params["lin3_w"].T + params["lin3_b"][None]
    m = jnp.max(h, axis=1, keepdims=True)
    return h - (jnp.log(jnp.sum(jnp.exp(h - m), axis=1, keepdims=True)) + m)


# ----------------------------------------------------------------------------
# Deterministic synthetic parameter init (shapes from CNN.__init__)
# ----------------------------------------------------------------------------
def init_params(key, vocab_len):
    params = {}
    keys = iter(jax.random.split(key, 32))
    params["emb"] = 0.1 * jax.random.normal(next(keys), (vocab_len, EMB_DIM), jnp.float32)
    for k in range(1, 9):   # conv1h..conv8h (7, 8 exist but are unused in forward)
        params[f"conv{k}h_w"] = 0.05 * jax.random.normal(
            next(keys), (N_FILTERS, 1, k, EMB_DIM + 16), jnp.float32)
        params[f"conv{k}h_b"] = 0.05 * jax.random.normal(
            next(keys), (N_FILTERS,), jnp.float32)
    params["poolConv_w"] = 0.05 * jax.random.normal(
        next(keys), (POOL_OUT, N_FILTERS, 20, 1), jnp.float32)
    params["poolConv_b"] = 0.05 * jax.random.normal(next(keys), (POOL_OUT,), jnp.float32)
    for i in (1, 2, 3):
        params[f"lin{i}_w"] = 0.1 * jax.random.normal(
            next(keys), (POOL_OUT, POOL_OUT), jnp.float32)
        params[f"lin{i}_b"] = 0.1 * jax.random.normal(next(keys), (POOL_OUT,), jnp.float32)
    return params


if __name__ == "__main__":
    VOCAB = 100
    SEQ = 8
    NUM_CONVOLUTIONS = 2

    key = jax.random.PRNGKey(0)
    pkey, xkey = jax.random.split(key)
    params = init_params(pkey, VOCAB)
    X = jax.random.randint(xkey, (SEQ,), 0, VOCAB, dtype=jnp.int32)

    packed = pack_params(params, NUM_CONVOLUTIONS)      # one-time weight repack

    fwd = jax.jit(forward_pallas, static_argnums=(2,))
    out = jax.block_until_ready(fwd(packed, X, NUM_CONVOLUTIONS))

    ref = jax.block_until_ready(
        jax.jit(forward_ref, static_argnums=(2,))(params, X, NUM_CONVOLUTIONS))

    assert out.shape == (N_FILTERS * NUM_CONVOLUTIONS - 19, POOL_OUT), out.shape
    assert bool(jnp.all(jnp.isfinite(out)))
    assert bool(jnp.allclose(out, ref, rtol=2e-3, atol=2e-3)), \
        float(jnp.max(jnp.abs(out - ref)))
    print("KERNEL_OK")
</pallas_src>

<mosaic_0001>
module attributes {stable_mosaic.version = 11 : i64} {
  func.func @kernel(%arg0: i32, %arg1: memref<8xi32, #tpu.memory_space<smem>>, %arg2: memref<100x128xf32, #tpu.memory_space<any>>, %arg3: memref<768x128xf32, #tpu.memory_space<vmem>>, %arg4: memref<128x768xf32, #tpu.memory_space<vmem>>, %arg5: memref<768x128xf32, #tpu.memory_space<vmem>>, %arg6: memref<2x128x128xf32, #tpu.memory_space<vmem>>, %arg7: memref<8x128xf32, #tpu.memory_space<vmem>>, %arg8: memref<24x128xf32, #tpu.memory_space<vmem>>, %arg9: memref<32x128xf32, #tpu.memory_space<vmem>>, %arg10: memref<8x!tpu.dma_semaphore, #tpu.memory_space<semaphore_mem>>) attributes {dimension_semantics = [#tpu.dimension_semantics<arbitrary>], iteration_bounds = array<i64: 1>, scalar_prefetch = 0 : i64, scratch_operands = 2 : i64, tpu.core_type = #tpu.core_type<tc>, window_params = [{transform_indices = @transform_0, window_bounds = array<i64: 8>}, {}, {pipeline_mode = #tpu.pipeline_mode<synchronous>, transform_indices = @transform_2, window_bounds = array<i64: 768, 128>}, {pipeline_mode = #tpu.pipeline_mode<synchronous>, transform_indices = @transform_3, window_bounds = array<i64: 128, 768>}, {pipeline_mode = #tpu.pipeline_mode<synchronous>, transform_indices = @transform_4, window_bounds = array<i64: 768, 128>}, {pipeline_mode = #tpu.pipeline_mode<synchronous>, transform_indices = @transform_5, window_bounds = array<i64: 2, 128, 128>}, {pipeline_mode = #tpu.pipeline_mode<synchronous>, transform_indices = @transform_6, window_bounds = array<i64: 8, 128>}, {pipeline_mode = #tpu.pipeline_mode<synchronous>, transform_indices = @transform_7, window_bounds = array<i64: 24, 128>}]} {
    %c0 = arith.constant 0 : index
    %0 = memref.load %arg1[%c0] : memref<8xi32, #tpu.memory_space<smem>>
    %c0_i32 = arith.constant 0 : i32
    %1 = arith.maxsi %0, %c0_i32 : i32
    %c99_i32 = arith.constant 99 : i32
    %2 = arith.minsi %1, %c99_i32 : i32
    %c0_i32_0 = arith.constant 0 : i32
    %c0_i32_1 = arith.constant 0 : i32
    %3 = tpu.memref_slice %arg2[%2, %c0_i32_1] : memref<100x128xf32, #tpu.memory_space<any>> -> memref<1x128xf32, #tpu.memory_space<any>>
    %c8_i32 = arith.constant 8 : i32
    %c0_i32_2 = arith.constant 0 : i32
    %4 = tpu.memref_slice %arg9[%c8_i32, %c0_i32_2] : memref<32x128xf32, #tpu.memory_space<vmem>> -> memref<1x128xf32, #tpu.memory_space<vmem>>
    %5 = tpu.memref_slice %arg10[%c0_i32_0] : memref<8x!tpu.dma_semaphore, #tpu.memory_space<semaphore_mem>> -> memref<1x!tpu.dma_semaphore, #tpu.memory_space<semaphore_mem>>
    %6 = tpu.memref_squeeze %5 : memref<1x!tpu.dma_semaphore, #tpu.memory_space<semaphore_mem>> -> memref<!tpu.dma_semaphore, #tpu.memory_space<semaphore_mem>>
    tpu.enqueue_dma source(%3 : memref<1x128xf32, #tpu.memory_space<any>>) target(%4 : memref<1x128xf32, #tpu.memory_space<vmem>>) target_semaphore(%6 : memref<!tpu.dma_semaphore, #tpu.memory_space<semaphore_mem>>)
    %c1 = arith.constant 1 : index
    %7 = memref.load %arg1[%c1] : memref<8xi32, #tpu.memory_space<smem>>
    %c0_i32_3 = arith.constant 0 : i32
    %8 = arith.maxsi %7, %c0_i32_3 : i32
    %c99_i32_4 = arith.constant 99 : i32
    %9 = arith.minsi %8, %c99_i32_4 : i32
    %c1_i32 = arith.constant 1 : i32
    %c0_i32_5 = arith.constant 0 : i32
    %10 = tpu.memref_slice %arg2[%9, %c0_i32_5] : memref<100x128xf32, #tpu.memory_space<any>> -> memref<1x128xf32, #tpu.memory_space<any>>
    %c9_i32 = arith.constant 9 : i32
    %c0_i32_6 = arith.constant 0 : i32
    %11 = tpu.memref_slice %arg9[%c9_i32, %c0_i32_6] : memref<32x128xf32, #tpu.memory_space<vmem>> -> memref<1x128xf32, #tpu.memory_space<vmem>>
    %12 = tpu.memref_slice %arg10[%c1_i32] : memref<8x!tpu.dma_semaphore, #tpu.memory_space<semaphore_mem>> -> memref<1x!tpu.dma_semaphore, #tpu.memory_space<semaphore_mem>>
    %13 = tpu.memref_squeeze %12 : memref<1x!tpu.dma_semaphore, #tpu.memory_space<semaphore_mem>> -> memref<!tpu.dma_semaphore, #tpu.memory_space<semaphore_mem>>
    tpu.enqueue_dma source(%10 : memref<1x128xf32, #tpu.memory_space<any>>) target(%11 : memref<1x128xf32, #tpu.memory_space<vmem>>) target_semaphore(%13 : memref<!tpu.dma_semaphore, #tpu.memory_space<semaphore_mem>>)
    %c2 = arith.constant 2 : index
    %14 = memref.load %arg1[%c2] : memref<8xi32, #tpu.memory_space<smem>>
    %c0_i32_7 = arith.constant 0 : i32
    %15 = arith.maxsi %14, %c0_i32_7 : i32
    %c99_i32_8 = arith.constant 99 : i32
    %16 = arith.minsi %15, %c99_i32_8 : i32
    %c2_i32 = arith.constant 2 : i32
    %c0_i32_9 = arith.constant 0 : i32
    %17 = tpu.memref_slice %arg2[%16, %c0_i32_9] : memref<100x128xf32, #tpu.memory_space<any>> -> memref<1x128xf32, #tpu.memory_space<any>>
    %c10_i32 = arith.constant 10 : i32
    %c0_i32_10 = arith.constant 0 : i32
    %18 = tpu.memref_slice %arg9[%c10_i32, %c0_i32_10] : memref<32x128xf32, #tpu.memory_space<vmem>> -> memref<1x128xf32, #tpu.memory_space<vmem>>
    %19 = tpu.memref_slice %arg10[%c2_i32] : memref<8x!tpu.dma_semaphore, #tpu.memory_space<semaphore_mem>> -> memref<1x!tpu.dma_semaphore, #tpu.memory_space<semaphore_mem>>
    %20 = tpu.memref_squeeze %19 : memref<1x!tpu.dma_semaphore, #tpu.memory_space<semaphore_mem>> -> memref<!tpu.dma_semaphore, #tpu.memory_space<semaphore_mem>>
    tpu.enqueue_dma source(%17 : memref<1x128xf32, #tpu.memory_space<any>>) target(%18 : memref<1x128xf32, #tpu.memory_space<vmem>>) target_semaphore(%20 : memref<!tpu.dma_semaphore, #tpu.memory_space<semaphore_mem>>)
    %c3 = arith.constant 3 : index
    %21 = memref.load %arg1[%c3] : memref<8xi32, #tpu.memory_space<smem>>
    %c0_i32_11 = arith.constant 0 : i32
    %22 = arith.maxsi %21, %c0_i32_11 : i32
    %c99_i32_12 = arith.constant 99 : i32
    %23 = arith.minsi %22, %c99_i32_12 : i32
    %c3_i32 = arith.constant 3 : i32
    %c0_i32_13 = arith.constant 0 : i32
    %24 = tpu.memref_slice %arg2[%23, %c0_i32_13] : memref<100x128xf32, #tpu.memory_space<any>> -> memref<1x128xf32, #tpu.memory_space<any>>
    %c11_i32 = arith.constant 11 : i32
    %c0_i32_14 = arith.constant 0 : i32
    %25 = tpu.memref_slice %arg9[%c11_i32, %c0_i32_14] : memref<32x128xf32, #tpu.memory_space<vmem>> -> memref<1x128xf32, #tpu.memory_space<vmem>>
    %26 = tpu.memref_slice %arg10[%c3_i32] : memref<8x!tpu.dma_semaphore, #tpu.memory_space<semaphore_mem>> -> memref<1x!tpu.dma_semaphore, #tpu.memory_space<semaphore_mem>>
    %27 = tpu.memref_squeeze %26 : memref<1x!tpu.dma_semaphore, #tpu.memory_space<semaphore_mem>> -> memref<!tpu.dma_semaphore, #tpu.memory_space<semaphore_mem>>
    tpu.enqueue_dma source(%24 : memref<1x128xf32, #tpu.memory_space<any>>) target(%25 : memref<1x128xf32, #tpu.memory_space<vmem>>) target_semaphore(%27 : memref<!tpu.dma_semaphore, #tpu.memory_space<semaphore_mem>>)
    %c4 = arith.constant 4 : index
    %28 = memref.load %arg1[%c4] : memref<8xi32, #tpu.memory_space<smem>>
    %c0_i32_15 = arith.constant 0 : i32
    %29 = arith.maxsi %28, %c0_i32_15 : i32
    %c99_i32_16 = arith.constant 99 : i32
    %30 = arith.minsi %29, %c99_i32_16 : i32
    %c4_i32 = arith.constant 4 : i32
    %c0_i32_17 = arith.constant 0 : i32
    %31 = tpu.memref_slice %arg2[%30, %c0_i32_17] : memref<100x128xf32, #tpu.memory_space<any>> -> memref<1x128xf32, #tpu.memory_space<any>>
    %c12_i32 = arith.constant 12 : i32
    %c0_i32_18 = arith.constant 0 : i32
    %32 = tpu.memref_slice %arg9[%c12_i32, %c0_i32_18] : memref<32x128xf32, #tpu.memory_space<vmem>> -> memref<1x128xf32, #tpu.memory_space<vmem>>
    %33 = tpu.memref_slice %arg10[%c4_i32] : memref<8x!tpu.dma_semaphore, #tpu.memory_space<semaphore_mem>> -> memref<1x!tpu.dma_semaphore, #tpu.memory_space<semaphore_mem>>
    %34 = tpu.memref_squeeze %33 : memref<1x!tpu.dma_semaphore, #tpu.memory_space<semaphore_mem>> -> memref<!tpu.dma_semaphore, #tpu.memory_space<semaphore_mem>>
    tpu.enqueue_dma source(%31 : memref<1x128xf32, #tpu.memory_space<any>>) target(%32 : memref<1x128xf32, #tpu.memory_space<vmem>>) target_semaphore(%34 : memref<!tpu.dma_semaphore, #tpu.memory_space<semaphore_mem>>)
    %c5 = arith.constant 5 : index
    %35 = memref.load %arg1[%c5] : memref<8xi32, #tpu.memory_space<smem>>
    %c0_i32_19 = arith.constant 0 : i32
    %36 = arith.maxsi %35, %c0_i32_19 : i32
    %c99_i32_20 = arith.constant 99 : i32
    %37 = arith.minsi %36, %c99_i32_20 : i32
    %c5_i32 = arith.constant 5 : i32
    %c0_i32_21 = arith.constant 0 : i32
    %38 = tpu.memref_slice %arg2[%37, %c0_i32_21] : memref<100x128xf32, #tpu.memory_space<any>> -> memref<1x128xf32, #tpu.memory_space<any>>
    %c13_i32 = arith.constant 13 : i32
    %c0_i32_22 = arith.constant 0 : i32
    %39 = tpu.memref_slice %arg9[%c13_i32, %c0_i32_22] : memref<32x128xf32, #tpu.memory_space<vmem>> -> memref<1x128xf32, #tpu.memory_space<vmem>>
    %40 = tpu.memref_slice %arg10[%c5_i32] : memref<8x!tpu.dma_semaphore, #tpu.memory_space<semaphore_mem>> -> memref<1x!tpu.dma_semaphore, #tpu.memory_space<semaphore_mem>>
    %41 = tpu.memref_squeeze %40 : memref<1x!tpu.dma_semaphore, #tpu.memory_space<semaphore_mem>> -> memref<!tpu.dma_semaphore, #tpu.memory_space<semaphore_mem>>
    tpu.enqueue_dma source(%38 : memref<1x128xf32, #tpu.memory_space<any>>) target(%39 : memref<1x128xf32, #tpu.memory_space<vmem>>) target_semaphore(%41 : memref<!tpu.dma_semaphore, #tpu.memory_space<semaphore_mem>>)
    %c6 = arith.constant 6 : index
    %42 = memref.load %arg1[%c6] : memref<8xi32, #tpu.memory_space<smem>>
    %c0_i32_23 = arith.constant 0 : i32
    %43 = arith.maxsi %42, %c0_i32_23 : i32
    %c99_i32_24 = arith.constant 99 : i32
    %44 = arith.minsi %43, %c99_i32_24 : i32
    %c6_i32 = arith.constant 6 : i32
    %c0_i32_25 = arith.constant 0 : i32
    %45 = tpu.memref_slice %arg2[%44, %c0_i32_25] : memref<100x128xf32, #tpu.memory_space<any>> -> memref<1x128xf32, #tpu.memory_space<any>>
    %c14_i32 = arith.constant 14 : i32
    %c0_i32_26 = arith.constant 0 : i32
    %46 = tpu.memref_slice %arg9[%c14_i32, %c0_i32_26] : memref<32x128xf32, #tpu.memory_space<vmem>> -> memref<1x128xf32, #tpu.memory_space<vmem>>
    %47 = tpu.memref_slice %arg10[%c6_i32] : memref<8x!tpu.dma_semaphore, #tpu.memory_space<semaphore_mem>> -> memref<1x!tpu.dma_semaphore, #tpu.memory_space<semaphore_mem>>
    %48 = tpu.memref_squeeze %47 : memref<1x!tpu.dma_semaphore, #tpu.memory_space<semaphore_mem>> -> memref<!tpu.dma_semaphore, #tpu.memory_space<semaphore_mem>>
    tpu.enqueue_dma source(%45 : memref<1x128xf32, #tpu.memory_space<any>>) target(%46 : memref<1x128xf32, #tpu.memory_space<vmem>>) target_semaphore(%48 : memref<!tpu.dma_semaphore, #tpu.memory_space<semaphore_mem>>)
    %c7 = arith.constant 7 : index
    %49 = memref.load %arg1[%c7] : memref<8xi32, #tpu.memory_space<smem>>
    %c0_i32_27 = arith.constant 0 : i32
    %50 = arith.maxsi %49, %c0_i32_27 : i32
    %c99_i32_28 = arith.constant 99 : i32
    %51 = arith.minsi %50, %c99_i32_28 : i32
    %c7_i32 = arith.constant 7 : i32
    %c0_i32_29 = arith.constant 0 : i32
    %52 = tpu.memref_slice %arg2[%51, %c0_i32_29] : memref<100x128xf32, #tpu.memory_space<any>> -> memref<1x128xf32, #tpu.memory_space<any>>
    %c15_i32 = arith.constant 15 : i32
    %c0_i32_30 = arith.constant 0 : i32
    %53 = tpu.memref_slice %arg9[%c15_i32, %c0_i32_30] : memref<32x128xf32, #tpu.memory_space<vmem>> -> memref<1x128xf32, #tpu.memory_space<vmem>>
    %54 = tpu.memref_slice %arg10[%c7_i32] : memref<8x!tpu.dma_semaphore, #tpu.memory_space<semaphore_mem>> -> memref<1x!tpu.dma_semaphore, #tpu.memory_space<semaphore_mem>>
    %55 = tpu.memref_squeeze %54 : memref<1x!tpu.dma_semaphore, #tpu.memory_space<semaphore_mem>> -> memref<!tpu.dma_semaphore, #tpu.memory_space<semaphore_mem>>
    tpu.enqueue_dma source(%52 : memref<1x128xf32, #tpu.memory_space<any>>) target(%53 : memref<1x128xf32, #tpu.memory_space<vmem>>) target_semaphore(%55 : memref<!tpu.dma_semaphore, #tpu.memory_space<semaphore_mem>>)
    %cst = arith.constant 0.000000e+00 : f32
    %56 = vector.broadcast %cst : f32 to vector<8x128xf32>
    %c0_31 = arith.constant 0 : index
    %c0_32 = arith.constant 0 : index
    %57 = vector.load %arg9[%c0_31, %c0_32] : memref<32x128xf32, #tpu.memory_space<vmem>>, vector<8x128xf32>
    tpu.vector_store %arg9[%c0_31, %c0_32], %56 {strides = array<i32>} : memref<32x128xf32, #tpu.memory_space<vmem>>, vector<8x128xf32>,
    %cst_33 = arith.constant 0.000000e+00 : f32
    %58 = vector.broadcast %cst_33 : f32 to vector<16x128xf32>
    %c16 = arith.constant 16 : index
    %c0_34 = arith.constant 0 : index
    %59 = vector.load %arg9[%c16, %c0_34] : memref<32x128xf32, #tpu.memory_space<vmem>>, vector<16x128xf32>
    tpu.vector_store %arg9[%c16, %c0_34], %58 {strides = array<i32>} : memref<32x128xf32, #tpu.memory_space<vmem>>, vector<16x128xf32>,
    %c0_i32_35 = arith.constant 0 : i32
    %c0_i32_36 = arith.constant 0 : i32
    %60 = tpu.memref_slice %arg2[%2, %c0_i32_36] : memref<100x128xf32, #tpu.memory_space<any>> -> memref<1x128xf32, #tpu.memory_space<any>>
    %c8_i32_37 = arith.constant 8 : i32
    %c0_i32_38 = arith.constant 0 : i32
    %61 = tpu.memref_slice %arg9[%c8_i32_37, %c0_i32_38] : memref<32x128xf32, #tpu.memory_space<vmem>> -> memref<1x128xf32, #tpu.memory_space<vmem>>
    %62 = tpu.memref_slice %arg10[%c0_i32_35] : memref<8x!tpu.dma_semaphore, #tpu.memory_space<semaphore_mem>> -> memref<1x!tpu.dma_semaphore, #tpu.memory_space<semaphore_mem>>
    %63 = tpu.memref_squeeze %62 : memref<1x!tpu.dma_semaphore, #tpu.memory_space<semaphore_mem>> -> memref<!tpu.dma_semaphore, #tpu.memory_space<semaphore_mem>>
    tpu.wait_dma2 semaphore(%63 : memref<!tpu.dma_semaphore, #tpu.memory_space<semaphore_mem>>) src(%60 : memref<1x128xf32, #tpu.memory_space<any>>) dst(%61 : memref<1x128xf32, #tpu.memory_space<vmem>>)
    %c1_i32_39 = arith.constant 1 : i32
    %c0_i32_40 = arith.constant 0 : i32
    %64 = tpu.memref_slice %arg2[%9, %c0_i32_40] : memref<100x128xf32, #tpu.memory_space<any>> -> memref<1x128xf32, #tpu.memory_space<any>>
    %c9_i32_41 = arith.constant 9 : i32
    %c0_i32_42 = arith.constant 0 : i32
    %65 = tpu.memref_slice %arg9[%c9_i32_41, %c0_i32_42] : memref<32x128xf32, #tpu.memory_space<vmem>> -> memref<1x128xf32, #tpu.memory_space<vmem>>
    %66 = tpu.memref_slice %arg10[%c1_i32_39] : memref<8x!tpu.dma_semaphore, #tpu.memory_space<semaphore_mem>> -> memref<1x!tpu.dma_semaphore, #tpu.memory_space<semaphore_mem>>
    %67 = tpu.memref_squeeze %66 : memref<1x!tpu.dma_semaphore, #tpu.memory_space<semaphore_mem>> -> memref<!tpu.dma_semaphore, #tpu.memory_space<semaphore_mem>>
    tpu.wait_dma2 semaphore(%67 : memref<!tpu.dma_semaphore, #tpu.memory_space<semaphore_mem>>) src(%64 : memref<1x128xf32, #tpu.memory_space<any>>) dst(%65 : memref<1x128xf32, #tpu.memory_space<vmem>>)
    %c2_i32_43 = arith.constant 2 : i32
    %c0_i32_44 = arith.constant 0 : i32
    %68 = tpu.memref_slice %arg2[%16, %c0_i32_44] : memref<100x128xf32, #tpu.memory_space<any>> -> memref<1x128xf32, #tpu.memory_space<any>>
    %c10_i32_45 = arith.constant 10 : i32
    %c0_i32_46 = arith.constant 0 : i32
    %69 = tpu.memref_slice %arg9[%c10_i32_45, %c0_i32_46] : memref<32x128xf32, #tpu.memory_space<vmem>> -> memref<1x128xf32, #tpu.memory_space<vmem>>
    %70 = tpu.memref_slice %arg10[%c2_i32_43] : memref<8x!tpu.dma_semaphore, #tpu.memory_space<semaphore_mem>> -> memref<1x!tpu.dma_semaphore, #tpu.memory_space<semaphore_mem>>
    %71 = tpu.memref_squeeze %70 : memref<1x!tpu.dma_semaphore, #tpu.memory_space<semaphore_mem>> -> memref<!tpu.dma_semaphore, #tpu.memory_space<semaphore_mem>>
    tpu.wait_dma2 semaphore(%71 : memref<!tpu.dma_semaphore, #tpu.memory_space<semaphore_mem>>) src(%68 : memref<1x128xf32, #tpu.memory_space<any>>) dst(%69 : memref<1x128xf32, #tpu.memory_space<vmem>>)
    %c3_i32_47 = arith.constant 3 : i32
    %c0_i32_48 = arith.constant 0 : i32
    %72 = tpu.memref_slice %arg2[%23, %c0_i32_48] : memref<100x128xf32, #tpu.memory_space<any>> -> memref<1x128xf32, #tpu.memory_space<any>>
    %c11_i32_49 = arith.constant 11 : i32
    %c0_i32_50 = arith.constant 0 : i32
    %73 = tpu.memref_slice %arg9[%c11_i32_49, %c0_i32_50] : memref<32x128xf32, #tpu.memory_space<vmem>> -> memref<1x128xf32, #tpu.memory_space<vmem>>
    %74 = tpu.memref_slice %arg10[%c3_i32_47] : memref<8x!tpu.dma_semaphore, #tpu.memory_space<semaphore_mem>> -> memref<1x!tpu.dma_semaphore, #tpu.memory_space<semaphore_mem>>
    %75 = tpu.memref_squeeze %74 : memref<1x!tpu.dma_semaphore, #tpu.memory_space<semaphore_mem>> -> memref<!tpu.dma_semaphore, #tpu.memory_space<semaphore_mem>>
    tpu.wait_dma2 semaphore(%75 : memref<!tpu.dma_semaphore, #tpu.memory_space<semaphore_mem>>) src(%72 : memref<1x128xf32, #tpu.memory_space<any>>) dst(%73 : memref<1x128xf32, #tpu.memory_space<vmem>>)
    %c4_i32_51 = arith.constant 4 : i32
    %c0_i32_52 = arith.constant 0 : i32
    %76 = tpu.memref_slice %arg2[%30, %c0_i32_52] : memref<100x128xf32, #tpu.memory_space<any>> -> memref<1x128xf32, #tpu.memory_space<any>>
    %c12_i32_53 = arith.constant 12 : i32
    %c0_i32_54 = arith.constant 0 : i32
    %77 = tpu.memref_slice %arg9[%c12_i32_53, %c0_i32_54] : memref<32x128xf32, #tpu.memory_space<vmem>> -> memref<1x128xf32, #tpu.memory_space<vmem>>
    %78 = tpu.memref_slice %arg10[%c4_i32_51] : memref<8x!tpu.dma_semaphore, #tpu.memory_space<semaphore_mem>> -> memref<1x!tpu.dma_semaphore, #tpu.memory_space<semaphore_mem>>
    %79 = tpu.memref_squeeze %78 : memref<1x!tpu.dma_semaphore, #tpu.memory_space<semaphore_mem>> -> memref<!tpu.dma_semaphore, #tpu.memory_space<semaphore_mem>>
    tpu.wait_dma2 semaphore(%79 : memref<!tpu.dma_semaphore, #tpu.memory_space<semaphore_mem>>) src(%76 : memref<1x128xf32, #tpu.memory_space<any>>) dst(%77 : memref<1x128xf32, #tpu.memory_space<vmem>>)
    %c5_i32_55 = arith.constant 5 : i32
    %c0_i32_56 = arith.constant 0 : i32
    %80 = tpu.memref_slice %arg2[%37, %c0_i32_56] : memref<100x128xf32, #tpu.memory_space<any>> -> memref<1x128xf32, #tpu.memory_space<any>>
    %c13_i32_57 = arith.constant 13 : i32
    %c0_i32_58 = arith.constant 0 : i32
    %81 = tpu.memref_slice %arg9[%c13_i32_57, %c0_i32_58] : memref<32x128xf32, #tpu.memory_space<vmem>> -> memref<1x128xf32, #tpu.memory_space<vmem>>
    %82 = tpu.memref_slice %arg10[%c5_i32_55] : memref<8x!tpu.dma_semaphore, #tpu.memory_space<semaphore_mem>> -> memref<1x!tpu.dma_semaphore, #tpu.memory_space<semaphore_mem>>
    %83 = tpu.memref_squeeze %82 : memref<1x!tpu.dma_semaphore, #tpu.memory_space<semaphore_mem>> -> memref<!tpu.dma_semaphore, #tpu.memory_space<semaphore_mem>>
    tpu.wait_dma2 semaphore(%83 : memref<!tpu.dma_semaphore, #tpu.memory_space<semaphore_mem>>) src(%80 : memref<1x128xf32, #tpu.memory_space<any>>) dst(%81 : memref<1x128xf32, #tpu.memory_space<vmem>>)
    %c6_i32_59 = arith.constant 6 : i32
    %c0_i32_60 = arith.constant 0 : i32
    %84 = tpu.memref_slice %arg2[%44, %c0_i32_60] : memref<100x128xf32, #tpu.memory_space<any>> -> memref<1x128xf32, #tpu.memory_space<any>>
    %c14_i32_61 = arith.constant 14 : i32
    %c0_i32_62 = arith.constant 0 : i32
    %85 = tpu.memref_slice %arg9[%c14_i32_61, %c0_i32_62] : memref<32x128xf32, #tpu.memory_space<vmem>> -> memref<1x128xf32, #tpu.memory_space<vmem>>
    %86 = tpu.memref_slice %arg10[%c6_i32_59] : memref<8x!tpu.dma_semaphore, #tpu.memory_space<semaphore_mem>> -> memref<1x!tpu.dma_semaphore, #tpu.memory_space<semaphore_mem>>
    %87 = tpu.memref_squeeze %86 : memref<1x!tpu.dma_semaphore, #tpu.memory_space<semaphore_mem>> -> memref<!tpu.dma_semaphore, #tpu.memory_space<semaphore_mem>>
    tpu.wait_dma2 semaphore(%87 : memref<!tpu.dma_semaphore, #tpu.memory_space<semaphore_mem>>) src(%84 : memref<1x128xf32, #tpu.memory_space<any>>) dst(%85 : memref<1x128xf32, #tpu.memory_space<vmem>>)
    %c7_i32_63 = arith.constant 7 : i32
    %c0_i32_64 = arith.constant 0 : i32
    %88 = tpu.memref_slice %arg2[%51, %c0_i32_64] : memref<100x128xf32, #tpu.memory_space<any>> -> memref<1x128xf32, #tpu.memory_space<any>>
    %c15_i32_65 = arith.constant 15 : i32
    %c0_i32_66 = arith.constant 0 : i32
    %89 = tpu.memref_slice %arg9[%c15_i32_65, %c0_i32_66] : memref<32x128xf32, #tpu.memory_space<vmem>> -> memref<1x128xf32, #tpu.memory_space<vmem>>
    %90 = tpu.memref_slice %arg10[%c7_i32_63] : memref<8x!tpu.dma_semaphore, #tpu.memory_space<semaphore_mem>> -> memref<1x!tpu.dma_semaphore, #tpu.memory_space<semaphore_mem>>
    %91 = tpu.memref_squeeze %90 : memref<1x!tpu.dma_semaphore, #tpu.memory_space<semaphore_mem>> -> memref<!tpu.dma_semaphore, #tpu.memory_space<semaphore_mem>>
    tpu.wait_dma2 semaphore(%91 : memref<!tpu.dma_semaphore, #tpu.memory_space<semaphore_mem>>) src(%88 : memref<1x128xf32, #tpu.memory_space<any>>) dst(%89 : memref<1x128xf32, #tpu.memory_space<vmem>>)
    %c0_67 = arith.constant 0 : index
    %c0_68 = arith.constant 0 : index
    %92 = vector.load %arg9[%c0_67, %c0_68] : memref<32x128xf32, #tpu.memory_space<vmem>>, vector<24x128xf32>
    %c1_69 = arith.constant 1 : index
    %c0_70 = arith.constant 0 : index
    %93 = vector.load %arg9[%c1_69, %c0_70] : memref<32x128xf32, #tpu.memory_space<vmem>>, vector<24x128xf32>
    %c2_71 = arith.constant 2 : index
    %c0_72 = arith.constant 0 : index
    %94 = vector.load %arg9[%c2_71, %c0_72] : memref<32x128xf32, #tpu.memory_space<vmem>>, vector<24x128xf32>
    %c3_73 = arith.constant 3 : index
    %c0_74 = arith.constant 0 : index
    %95 = vector.load %arg9[%c3_73, %c0_74] : memref<32x128xf32, #tpu.memory_space<vmem>>, vector<24x128xf32>
    %c4_75 = arith.constant 4 : index
    %c0_76 = arith.constant 0 : index
    %96 = vector.load %arg9[%c4_75, %c0_76] : memref<32x128xf32, #tpu.memory_space<vmem>>, vector<24x128xf32>
    %c5_77 = arith.constant 5 : index
    %c0_78 = arith.constant 0 : index
    %97 = vector.load %arg9[%c5_77, %c0_78] : memref<32x128xf32, #tpu.memory_space<vmem>>, vector<24x128xf32>
    %98 = tpu.concatenate %92, %93, %94, %95, %96, %97 in 1 : vector<24x128xf32>, vector<24x128xf32>, vector<24x128xf32>, vector<24x128xf32>, vector<24x128xf32>, vector<24x128xf32> -> vector<24x768xf32>
    %c0_79 = arith.constant 0 : index
    %c0_80 = arith.constant 0 : index
    %99 = vector.load %arg3[%c0_79, %c0_80] : memref<768x128xf32, #tpu.memory_space<vmem>>, vector<768x128xf32>
    %cst_81 = arith.constant dense<0.000000e+00> : vector<24x128xf32>
    %100 = tpu.matmul %98, %99, %cst_81 {dimension_numbers = #tpu.dot_dimension_numbers<[1], [0], [0], [1], [0, 0, 1, 1], [], []>} : vector<24x768xf32>, vector<768x128xf32>, vector<24x128xf32> -> vector<24x128xf32>
    %101 = tpu.iota {dimensions = array<i32: 0>} : vector<24x128xi32>
    %102 = tpu.iota {dimensions = array<i32: 1>} : vector<24x128xi32>
    %c20_i32 = arith.constant 20 : i32
    %103 = vector.broadcast %c20_i32 : i32 to vector<24x128xi32>
    %104 = arith.cmpi sge, %102, %103 : vector<24x128xi32>
    %105 = arith.extui %104 : vector<24x128xi1> to vector<24x128xi32>
    %c40_i32 = arith.constant 40 : i32
    %106 = vector.broadcast %c40_i32 : i32 to vector<24x128xi32>
    %107 = arith.cmpi sge, %102, %106 : vector<24x128xi32>
    %108 = arith.extui %107 : vector<24x128xi1> to vector<24x128xi32>
    %109 = arith.addi %105, %108 : vector<24x128xi32>
    %c60_i32 = arith.constant 60 : i32
    %110 = vector.broadcast %c60_i32 : i32 to vector<24x128xi32>
    %111 = arith.cmpi sge, %102, %110 : vector<24x128xi32>
    %112 = arith.extui %111 : vector<24x128xi1> to vector<24x128xi32>
    %113 = arith.addi %109, %112 : vector<24x128xi32>
    %c80_i32 = arith.constant 80 : i32
    %114 = vector.broadcast %c80_i32 : i32 to vector<24x128xi32>
    %115 = arith.cmpi sge, %102, %114 : vector<24x128xi32>
    %116 = arith.extui %115 : vector<24x128xi1> to vector<24x128xi32>
    %117 = arith.addi %113, %116 : vector<24x128xi32>
    %c100_i32 = arith.constant 100 : i32
    %118 = vector.broadcast %c100_i32 : i32 to vector<24x128xi32>
    %119 = arith.cmpi sge, %102, %118 : vector<24x128xi32>
    %120 = arith.extui %119 : vector<24x128xi1> to vector<24x128xi32>
    %121 = arith.addi %117, %120 : vector<24x128xi32>
    %c24_i32 = arith.constant 24 : i32
    %122 = vector.broadcast %c24_i32 : i32 to vector<24x128xi32>
    %123 = arith.subi %122, %121 : vector<24x128xi32>
    %124 = arith.cmpi slt, %101, %123 : vector<24x128xi32>
    %cst_82 = arith.constant -1.000000e+30 : f32
    %125 = vector.broadcast %cst_82 : f32 to vector<24x128xf32>
    %126 = arith.select %124, %100, %125 : vector<24x128xi1>, vector<24x128xf32>
    %cst_83 = arith.constant dense<0xFF800000> : vector<128xf32>
    %127 = vector.multi_reduction <maximumf>, %126, %cst_83 [0] : vector<24x128xf32> to vector<128xf32>
    %128 = vector.shape_cast %127 : vector<128xf32> to vector<1x128xf32>
    %c0_84 = arith.constant 0 : index
    %c0_85 = arith.constant 0 : index
    %129 = vector.load %arg7[%c0_84, %c0_85] : memref<8x128xf32, #tpu.memory_space<vmem>>, vector<1x128xf32>
    %130 = arith.addf %128, %129 : vector<1x128xf32>
    %131 = vector.shape_cast %130 : vector<1x128xf32> to vector<1x128xf32>
    %132 = vector.broadcast %131 : vector<1x128xf32> to vector<24x128xf32>
    %c0_86 = arith.constant 0 : index
    %c0_87 = arith.constant 0 : index
    %133 = vector.load %arg4[%c0_86, %c0_87] : memref<128x768xf32, #tpu.memory_space<vmem>>, vector<128x768xf32>
    %cst_88 = arith.constant dense<0.000000e+00> : vector<24x768xf32>
    %134 = tpu.matmul %132, %133, %cst_88 {dimension_numbers = #tpu.dot_dimension_numbers<[1], [0], [0], [1], [0, 0, 1, 1], [], []>} : vector<24x128xf32>, vector<128x768xf32>, vector<24x768xf32> -> vector<24x768xf32>
    %135 = tpu.iota {dimensions = array<i32: 0>} : vector<24x768xi32>
    %136 = tpu.iota {dimensions = array<i32: 1>} : vector<24x768xi32>
    %c35_i32 = arith.constant 35 : i32
    %137 = vector.broadcast %c35_i32 : i32 to vector<24x768xi32>
    %138 = arith.muli %135, %137 : vector<24x768xi32>
    %139 = arith.cmpi sge, %136, %138 : vector<24x768xi32>
    %c35_i32_89 = arith.constant 35 : i32
    %140 = vector.broadcast %c35_i32_89 : i32 to vector<24x768xi32>
    %141 = arith.addi %138, %140 : vector<24x768xi32>
    %142 = arith.cmpi slt, %136, %141 : vector<24x768xi32>
    %143 = arith.andi %139, %142 : vector<24x768xi1>
    %c21_i32 = arith.constant 21 : i32
    %144 = vector.broadcast %c21_i32 : i32 to vector<24x768xi32>
    %145 = arith.cmpi slt, %135, %144 : vector<24x768xi32>
    %146 = arith.andi %143, %145 : vector<24x768xi1>
    %cst_90 = arith.constant 0.000000e+00 : f32
    %147 = vector.broadcast %cst_90 : f32 to vector<24x768xf32>
    %148 = arith.select %146, %134, %147 : vector<24x768xi1>, vector<24x768xf32>
    %c0_91 = arith.constant 0 : index
    %c0_92 = arith.constant 0 : index
    %149 = vector.load %arg5[%c0_91, %c0_92] : memref<768x128xf32, #tpu.memory_space<vmem>>, vector<768x128xf32>
    %cst_93 = arith.constant dense<0.000000e+00> : vector<24x128xf32>
    %150 = tpu.matmul %148, %149, %cst_93 {dimension_numbers = #tpu.dot_dimension_numbers<[1], [0], [0], [1], [0, 0, 1, 1], [], []>} : vector<24x768xf32>, vector<768x128xf32>, vector<24x128xf32> -> vector<24x128xf32>
    %c1_94 = arith.constant 1 : index
    %c0_95 = arith.constant 0 : index
    %151 = vector.load %arg7[%c1_94, %c0_95] : memref<8x128xf32, #tpu.memory_space<vmem>>, vector<1x128xf32>
    %152 = vector.broadcast %151 : vector<1x128xf32> to vector<24x128xf32>
    %153 = arith.addf %150, %152 : vector<24x128xf32>
    %cst_96 = arith.constant 0.000000e+00 : f32
    %154 = vector.broadcast %cst_96 : f32 to vector<24x128xf32>
    %155 = arith.cmpf oge, %153, %154 : vector<24x128xf32>
    %cst_97 = arith.constant 0.00999999977 : f32
    %156 = vector.broadcast %cst_97 : f32 to vector<24x128xf32>
    %157 = arith.mulf %156, %153 : vector<24x128xf32>
    %158 = arith.select %155, %153, %157 : vector<24x128xi1>, vector<24x128xf32>
    %c0_98 = arith.constant 0 : index
    %c0_99 = arith.constant 0 : index
    %c0_100 = arith.constant 0 : index
    %159 = vector.load %arg6[%c0_98, %c0_99, %c0_100] : memref<2x128x128xf32, #tpu.memory_space<vmem>>, vector<1x128x128xf32>
    %160 = vector.shape_cast %159 : vector<1x128x128xf32> to vector<128x128xf32>
    %cst_101 = arith.constant dense<0.000000e+00> : vector<24x128xf32>
    %161 = tpu.matmul %158, %160, %cst_101 {dimension_numbers = #tpu.dot_dimension_numbers<[1], [0], [0], [1], [0, 0, 1, 1], [], []>} : vector<24x128xf32>, vector<128x128xf32>, vector<24x128xf32> -> vector<24x128xf32>
    %c2_102 = arith.constant 2 : index
    %c0_103 = arith.constant 0 : index
    %162 = vector.load %arg7[%c2_102, %c0_103] : memref<8x128xf32, #tpu.memory_space<vmem>>, vector<1x128xf32>
    %163 = vector.broadcast %162 : vector<1x128xf32> to vector<24x128xf32>
    %164 = arith.addf %161, %163 : vector<24x128xf32>
    %cst_104 = arith.constant 0.000000e+00 : f32
    %165 = vector.broadcast %cst_104 : f32 to vector<24x128xf32>
    %166 = arith.cmpf oge, %164, %165 : vector<24x128xf32>
    %cst_105 = arith.constant 0.00999999977 : f32
    %167 = vector.broadcast %cst_105 : f32 to vector<24x128xf32>
    %168 = arith.mulf %167, %164 : vector<24x128xf32>
    %169 = arith.select %166, %164, %168 : vector<24x128xi1>, vector<24x128xf32>
    %c1_106 = arith.constant 1 : index
    %c0_107 = arith.constant 0 : index
    %c0_108 = arith.constant 0 : index
    %170 = vector.load %arg6[%c1_106, %c0_107, %c0_108] : memref<2x128x128xf32, #tpu.memory_space<vmem>>, vector<1x128x128xf32>
    %171 = vector.shape_cast %170 : vector<1x128x128xf32> to vector<128x128xf32>
    %cst_109 = arith.constant dense<0.000000e+00> : vector<24x128xf32>
    %172 = tpu.matmul %169, %171, %cst_109 {dimension_numbers = #tpu.dot_dimension_numbers<[1], [0], [0], [1], [0, 0, 1, 1], [], []>} : vector<24x128xf32>, vector<128x128xf32>, vector<24x128xf32> -> vector<24x128xf32>
    %c3_110 = arith.constant 3 : index
    %c0_111 = arith.constant 0 : index
    %173 = vector.load %arg7[%c3_110, %c0_111] : memref<8x128xf32, #tpu.memory_space<vmem>>, vector<1x128xf32>
    %174 = vector.broadcast %173 : vector<1x128xf32> to vector<24x128xf32>
    %175 = arith.addf %172, %174 : vector<24x128xf32>
    %176 = tpu.iota {dimensions = array<i32: 1>} : vector<24x128xi32>
    %c35_i32_112 = arith.constant 35 : i32
    %177 = vector.broadcast %c35_i32_112 : i32 to vector<24x128xi32>
    %178 = arith.cmpi slt, %176, %177 : vector<24x128xi32>
    %cst_113 = arith.constant -1.000000e+30 : f32
    %179 = vector.broadcast %cst_113 : f32 to vector<24x128xf32>
    %180 = arith.select %178, %175, %179 : vector<24x128xi1>, vector<24x128xf32>
    %cst_114 = arith.constant dense<0xFF800000> : vector<24xf32>
    %181 = vector.multi_reduction <maximumf>, %180, %cst_114 [1] : vector<24x128xf32> to vector<24xf32>
    %182 = vector.shape_cast %181 : vector<24xf32> to vector<24x1xf32>
    %183 = vector.broadcast %182 : vector<24x1xf32> to vector<24x128xf32>
    %184 = arith.subf %180, %183 : vector<24x128xf32>
    %185 = math.exp %184 : vector<24x128xf32>
    %cst_115 = arith.constant dense<0.000000e+00> : vector<24xf32>
    %186 = vector.multi_reduction <add>, %185, %cst_115 [1] : vector<24x128xf32> to vector<24xf32>
    %187 = vector.shape_cast %186 : vector<24xf32> to vector<24x1xf32>
    %188 = math.log %187 : vector<24x1xf32>
    %189 = arith.addf %188, %182 : vector<24x1xf32>
    %190 = vector.broadcast %189 : vector<24x1xf32> to vector<24x128xf32>
    %191 = arith.subf %180, %190 : vector<24x128xf32>
    %c0_116 = arith.constant 0 : index
    %c0_117 = arith.constant 0 : index
    %192 = vector.load %arg8[%c0_116, %c0_117] : memref<24x128xf32, #tpu.memory_space<vmem>>, vector<24x128xf32>
    tpu.vector_store %arg8[%c0_116, %c0_117], %191 {strides = array<i32>} : memref<24x128xf32, #tpu.memory_space<vmem>>, vector<24x128xf32>,
    return
  }
  func.func @transform_0(%arg0: i32) -> i32 {
    %c0_i32 = arith.constant 0 : i32
    %c0_i32_0 = arith.constant 0 : i32
    return %c0_i32 : i32
  }
  func.func @transform_2(%arg0: i32) -> (i32, i32) {
    %c0_i32 = arith.constant 0 : i32
    %c0_i32_0 = arith.constant 0 : i32
    %c0_i32_1 = arith.constant 0 : i32
    return %c0_i32, %c0_i32_0 : i32, i32
  }
  func.func @transform_3(%arg0: i32) -> (i32, i32) {
    %c0_i32 = arith.constant 0 : i32
    %c0_i32_0 = arith.constant 0 : i32
    %c0_i32_1 = arith.constant 0 : i32
    return %c0_i32, %c0_i32_0 : i32, i32
  }
  func.func @transform_4(%arg0: i32) -> (i32, i32) {
    %c0_i32 = arith.constant 0 : i32
    %c0_i32_0 = arith.constant 0 : i32
    %c0_i32_1 = arith.constant 0 : i32
    return %c0_i32, %c0_i32_0 : i32, i32
  }
  func.func @transform_5(%arg0: i32) -> (i32, i32, i32) {
    %c0_i32 = arith.constant 0 : i32
    %c0_i32_0 = arith.constant 0 : i32
    %c0_i32_1 = arith.constant 0 : i32
    %c0_i32_2 = arith.constant 0 : i32
    return %c0_i32, %c0_i32_0, %c0_i32_1 : i32, i32, i32
  }
  func.func @transform_6(%arg0: i32) -> (i32, i32) {
    %c0_i32 = arith.constant 0 : i32
    %c0_i32_0 = arith.constant 0 : i32
    %c0_i32_1 = arith.constant 0 : i32
    return %c0_i32, %c0_i32_0 : i32, i32
  }
  func.func @transform_7(%arg0: i32) -> (i32, i32) {
    %c0_i32 = arith.constant 0 : i32
    %c0_i32_0 = arith.constant 0 : i32
    %c0_i32_1 = arith.constant 0 : i32
    return %c0_i32, %c0_i32_0 : i32, i32
  }
}

</mosaic_0001>

<bundles_post_ra>
// kernel: forward_pallas.1
= control target key start
LH: loop header
LB: loop body
LE: loop exit
PB: predicated region body
PF: predicated region fallthrough
CT: control target
= control target key end

     0   :  { %12 = vsyncpa [#allocation7], 0  ;;  %s3616_s0 = inlined_call_operand.vmem [shape: s32[8], index: 0, kind: input, shape index: {}]   ;;  %s3617_s1 = inlined_call_operand.hbm [shape: f32[100,128], index: 1, kind: input, shape index: {}]   ;;  %s3618_s2 = inlined_call_operand.hbm [shape: f32[768,128], index: 2, kind: input, shape index: {}]   ;;  %s3619_s3 = inlined_call_operand.hbm [shape: f32[128,768], index: 3, kind: input, shape index: {}]   ;;  %s3620_s4 = inlined_call_operand.hbm [shape: f32[768,128], index: 4, kind: input, shape index: {}]   ;;  %s3621_s5 = inlined_call_operand.hbm [shape: f32[2,128,128], index: 5, kind: input, shape index: {}]   ;;  %s3622_s6 = inlined_call_operand.hbm [shape: f32[8,128], index: 6, kind: input, shape index: {}]   ;;  %s3623_s7 = inlined_call_operand.hbm [shape: f32[24,128], index: 7, kind: output, shape index: {}]  }
   0x1   :  { %13 = vsyncpa [#allocation5], 0 }
   0x2   :  { %14 = vsyncpa [#allocation10], 0 }
   0x3   :  { %15 = vsyncpa [#allocation13], 0 }
   0x4   :  { %16 = vsyncpa [#allocation6], 0  ;;  %s3035_s24 = smov [#allocation9]   ;;  %s2673_s28 = scalar_lea.hbm %s3619_s3, 12288 }
   0x5   :  { %s44_s25 = sshll.u32 %s3035_s24, 4  ;;  %p2674_p0 = scmp.ne.s32.totalorder %s3619_s3, %s2673_s28  ;;  %s45_s25 = int_to_ptr.vmem [resolvable:$true] %s44_s25 }
   0x6   :  { %p2677_p1 = scmp.lt.u32.totalorder %s2673_s28, %s3619_s3 }
   0x8   :  { %p2679_p2 = pnand %p2677_p1, %p2674_p0 }
   0xa   :  { %2682 = shalt.err (!%p2679_p2)
}
   0xb   :  { %s2683_s10 = scalar_lea.vmem %s45_s25, 12288  ;;  %p2688_p4 = scmp.lt.s32.totalorder %s45_s25, %s45_s25 }
   0xc   :  { %p2684_p3 = scmp.ne.s32.totalorder %s45_s25, %s2683_s10  ;;  %p2689_p5 = scmp.lt.s32.totalorder %s2683_s10, %s2683_s10 }
   0xe   :  { %p2690_p6 = por %p2689_p5, %p2688_p4 }
  0x10   :  { %p2691_p7 = pnand %p2690_p6, %p2684_p3 }
  0x12   :  { %2694 = shalt.err (!%p2691_p7)
}
  0x13   :  { %s3036_s11 = smov 768   ;;  %s3037_s12 = smov 48  }
  0x14   :  { %50 = dma.hbm_to_vmem [thread:$0]  %s3619_s3, 12288, %s45_s25, [#allocation10], %s3036_s11, %s3036_s11, %s3037_s12  }
  0x15   :  { %s3038_s15 = smov [#allocation12]   ;;  %s23_s19 = sshll.u32 %s3616_s0, 4  ;;  %s24_s19 = int_to_ptr.vmem [resolvable:$true] %s23_s19 }
  0x16   :  { %s68_s16 = sshll.u32 %s3038_s15, 4  ;;  %s2695_s22 = scalar_lea.hbm %s3621_s5, 4096  ;;  %s69_s16 = int_to_ptr.vmem [resolvable:$true] %s68_s16 }
  0x17   :  { %p2696_p8 = scmp.ne.s32.totalorder %s3621_s5, %s2695_s22  ;;  %p2699_p9 = scmp.lt.u32.totalorder %s2695_s22, %s3621_s5 }
  0x19   :  { %p2701_p10 = pnand %p2699_p9, %p2696_p8 }
  0x1b   :  { %2704 = shalt.err (!%p2701_p10)
}
  0x1c   :  { %s2705_s3 = scalar_lea.vmem %s69_s16, 4096  ;;  %p2710_p12 = scmp.lt.s32.totalorder %s69_s16, %s69_s16 }
  0x1d   :  { %p2706_p11 = scmp.ne.s32.totalorder %s69_s16, %s2705_s3  ;;  %p2711_p13 = scmp.lt.s32.totalorder %s2705_s3, %s2705_s3 }
  0x1f   :  { %p2712_p0 = por %p2711_p13, %p2710_p12 }
  0x21   :  { %p2713_p1 = pnand %p2712_p0, %p2706_p11 }
  0x23   :  { %2716 = shalt.err (!%p2713_p1)
}
  0x24   :  { %s3039_s0 = smov 128   ;;  %s3040_s25 = smov 8  }
  0x25   :  { %74 = dma.hbm_to_vmem [thread:$0]  %s3621_s5, 4096, %s69_s16, [#allocation13], %s3039_s0, %s3039_s0, %s3040_s25  }
  0x26   :  { %s2717_s30 = scalar_lea.vmem %s24_s19, 16  ;;  %p2722_p3 = scmp.lt.s32.totalorder %s24_s19, %s24_s19 }
  0x27   :  { %p2718_p2 = scmp.ne.s32.totalorder %s24_s19, %s2717_s30  ;;  %p2723_p4 = scmp.lt.s32.totalorder %s2717_s30, %s2717_s30 }
  0x29   :  { %p2724_p5 = por %p2723_p4, %p2722_p3 }
  0x2b   :  { %p2725_p6 = pnand %p2724_p5, %p2718_p2 }
  0x2d   :  { %2728 = shalt.err (!%p2725_p6)
}
  0x2e   :  { %s3041_s8 = smov [#allocation4]   ;;  %s3042_s9 = smov [#allocation8]  }
  0x2f   :  { %26 = dma.vmem_to_smem %s24_s19, 16, %s3041_s8, [#allocation7]  }
  0x30   :  { %s32_s10 = sshll.u32 %s3042_s9, 4  ;;  %s3043_s11 = smov [#allocation11]   ;;  %s33_s10 = int_to_ptr.vmem [resolvable:$true] %s32_s10 }
  0x31   :  { %s56_s12 = sshll.u32 %s3043_s11, 4  ;;  %s2729_s15 = scalar_lea.hbm %s3618_s2, 12288  ;;  %s57_s12 = int_to_ptr.vmem [resolvable:$true] %s56_s12 }
  0x32   :  { %p2730_p7 = scmp.ne.s32.totalorder %s3618_s2, %s2729_s15  ;;  %p2733_p8 = scmp.lt.u32.totalorder %s2729_s15, %s3618_s2 }
  0x34   :  { %p2735_p9 = pnand %p2733_p8, %p2730_p7 }
  0x36   :  { %2738 = shalt.err (!%p2735_p9)
}
  0x37   :  { %s2739_s19 = scalar_lea.vmem %s33_s10, 12288  ;;  %p2744_p11 = scmp.lt.s32.totalorder %s33_s10, %s33_s10 }
  0x38   :  { %p2740_p10 = scmp.ne.s32.totalorder %s33_s10, %s2739_s19  ;;  %p2745_p12 = scmp.lt.s32.totalorder %s2739_s19, %s2739_s19 }
  0x3a   :  { %p2746_p13 = por %p2745_p12, %p2744_p11 }
  0x3c   :  { %p2747_p0 = pnand %p2746_p13, %p2740_p10 }
  0x3e   :  { %2750 = shalt.err (!%p2747_p0)
}
  0x3f   :  { %38 = dma.hbm_to_vmem [thread:$0]  %s3618_s2, 12288, %s33_s10, [#allocation5], %s3039_s0, %s3039_s0, %s3040_s25  }
  0x40   :  { %s2751_s24 = scalar_lea.hbm %s3620_s4, 12288 }
  0x41   :  { %p2752_p1 = scmp.ne.s32.totalorder %s3620_s4, %s2751_s24  ;;  %p2755_p2 = scmp.lt.u32.totalorder %s2751_s24, %s3620_s4 }
  0x43   :  { %p2757_p3 = pnand %p2755_p2, %p2752_p1 }
  0x45   :  { %2760 = shalt.err (!%p2757_p3)
}
  0x46   :  { %s2761_s29 = scalar_lea.vmem %s57_s12, 12288  ;;  %p2766_p5 = scmp.lt.s32.totalorder %s57_s12, %s57_s12 }
  0x47   :  { %p2762_p4 = scmp.ne.s32.totalorder %s57_s12, %s2761_s29  ;;  %p2767_p6 = scmp.lt.s32.totalorder %s2761_s29, %s2761_s29 }
  0x49   :  { %p2768_p7 = por %p2767_p6, %p2766_p5 }
  0x4b   :  { %p2769_p8 = pnand %p2768_p7, %p2762_p4 }
  0x4d   :  { %2772 = shalt.err (!%p2769_p8)
}
  0x4e   :  { %62 = dma.hbm_to_vmem [thread:$0]  %s3620_s4, 12288, %s57_s12, [#allocation10], %s3039_s0, %s3039_s0, %s3040_s25  }
  0x4f   :  { %s3044_s8 = smov [#allocation14]   ;;  %s2773_s13 = scalar_lea.hbm %s3622_s6, 128 }
  0x50   :  { %s81_s9 = sshll.u32 %s3044_s8, 4  ;;  %p2774_p9 = scmp.ne.s32.totalorder %s3622_s6, %s2773_s13  ;;  %s82_s9 = int_to_ptr.vmem [resolvable:$true] %s81_s9 }
  0x51   :  { %p2777_p10 = scmp.lt.u32.totalorder %s2773_s13, %s3622_s6 }
  0x53   :  { %p2779_p11 = pnand %p2777_p10, %p2774_p9 }
  0x55   :  { %2782 = shalt.err (!%p2779_p11)
}
  0x56   :  { %s2783_s16 = scalar_lea.vmem %s82_s9, 128  ;;  %p2788_p13 = scmp.lt.s32.totalorder %s82_s9, %s82_s9 }
  0x57   :  { %p2784_p12 = scmp.ne.s32.totalorder %s82_s9, %s2783_s16  ;;  %p2789_p0 = scmp.lt.s32.totalorder %s2783_s16, %s2783_s16 }
  0x59   :  { %p2790_p1 = por %p2789_p0, %p2788_p13 }
  0x5b   :  { %p2791_p2 = pnand %p2790_p1, %p2784_p12 }
  0x5d   :  { %2794 = shalt.err (!%p2791_p2)
}
  0x5e   :  { %84 = dma.hbm_to_vmem [thread:$0]  %s3622_s6, 128, %s82_s9, [#allocation13]  }
  0x5f   :  { %3009 = dma.done.wait [#allocation7], 16  }
  0x60   :  { %3010 = vsyncadd [#allocation7], 4294967280 }
  0x61   :  { %3011 = dma.done.wait [#allocation5], 12288  }
  0x62   :  { %3012 = vsyncadd [#allocation5], 4294955008 }
  0x63   :  { %3013 = dma.done.wait [#allocation10], 24576  }
  0x64   :  { %3014 = vsyncadd [#allocation10], 4294942720 }
  0x65   :  { %3015 = dma.done.wait [#allocation13], 4224  }
  0x66   :  { %3016 = vsyncadd [#allocation13], 4294963072 }
  0x67   :  { %103 = sfence }
  0x68   :  { %s104_s18 = sld [smem:[#allocation4]]  ;;  %s3045_s19 = smov [#allocation2 + $0x8]  }
  0x69   :  { %s119_s20 = sshll.u32 %s3045_s19, 4  ;;  %s1826_s21 = sld [smem:[#allocation4 + $0x1]]  ;;  %s3171_s20 = int_to_ptr.vmem [resolvable:$true] %s119_s20 }
  0x6a   :  { %s3046_s22 = smov [#allocation2 + $0x9]   ;;  %s3173_s24 = sld [smem:[#allocation4 + $0x2]] }
  0x6b   :  { %s139_s23 = sshll.u32 %s3046_s22, 4  ;;  %s3047_s6 = smov [#allocation2 + $0xa]   ;;  %s3175_s23 = int_to_ptr.vmem [resolvable:$true] %s139_s23 }
  0x6c   :  { %s3177_s26 = sshll.u32 %s3047_s6, 4  ;;  %s3179_s27 = sld [smem:[#allocation4 + $0x3]]  ;;  %s160_s26 = int_to_ptr.vmem [resolvable:$true] %s3177_s26 }
  0x6d   :  { %s3188_s11 = scalar_lea.hbm %s3617_s1, 1664 }
  0x6e   :  { %p105_p3 = scmp.gt.s32.totalorder %s104_s18, 0  ;;  %p1820_p4 = scmp.lt.s32.totalorder %s104_s18, 99 }
  0x6f   :  { %p124_p5 = scmp.gt.s32.totalorder %s1826_s21, 0  ;;  %p1827_p6 = scmp.lt.s32.totalorder %s1826_s21, 99 }
  0x70   :  { %s3655_s18 = smov (!%p105_p3, %s104_s18), 0  ;;  %p144_p7 = scmp.gt.s32.totalorder %s3173_s24, 0 }
  0x71   :  { %s3657_s21 = smov (!%p124_p5, %s1826_s21), 0  ;;  %s3659_s18 = smov (!%p1820_p4, %s3655_s18), 99 }
  0x72   :  { %s3661_s21 = smov (!%p1827_p6, %s3657_s21), 99  ;;  %s1825_s3 = sshll.u32 %s3659_s18, 4 }
  0x73   :  { %s110_s2 = scalar_lea.hbm %s3617_s1, %s1825_s3  ;;  %s1832_s30 = sshll.u32 %s3661_s21, 4 }
  0x74   :  { %s2795_s8 = scalar_lea.hbm %s110_s2, 16  ;;  %p2798_p9 = scmp.lt.u32.totalorder %s110_s2, %s3617_s1 }
  0x75   :  { %p2796_p8 = scmp.ne.s32.totalorder %s110_s2, %s2795_s8  ;;  %p2799_p10 = scmp.lt.u32.totalorder %s3188_s11, %s2795_s8 }
  0x76   :  { %p2801_p12 = scmp.lt.u32.totalorder %s2795_s8, %s110_s2 }
  0x77   :  { %p2800_p11 = por %p2799_p10, %p2798_p9 }
  0x79   :  { %p2802_p13 = por %p2801_p12, %p2800_p11 }
  0x7b   :  { %p2803_p0 = pnand %p2802_p13, %p2796_p8 }
  0x7d   :  { %2806 = shalt.err (!%p2803_p0)  }
  0x7e   :  { %s2807_s15 = scalar_lea.vmem %s3171_s20, 16  ;;  %s3048_s17 = smov [#allocation2]  }
  0x7f   :  { %p2808_p1 = scmp.ne.s32.totalorder %s3171_s20, %s2807_s15  ;;  %s2809_s5 = sshll.u32 %s3048_s17, 4  ;;  %s3196_s5 = int_to_ptr.vmem [resolvable:$false] %s2809_s5 }
  0x80   :  { %s3199_s16 = scalar_lea.vmem %s3196_s5, 512  ;;  %p2812_p2 = scmp.lt.s32.totalorder %s3171_s20, %s3196_s5 }
  0x81   :  { %p2813_p3 = scmp.lt.s32.totalorder %s3199_s16, %s2807_s15 }
  0x83   :  { %p2814_p4 = por %p2813_p3, %p2812_p2 }
  0x85   :  { %p2815_p5 = pnand %p2814_p4, %p2808_p1 }
  0x87   :  { %2818 = shalt.err (!%p2815_p5)  }
  0x88   :  { %122 = dma.hbm_to_vmem [thread:$0]  %s110_s2, 16, %s3171_s20, [#allocation3] }
  0x89   :  { %s129_s18 = scalar_lea.hbm %s3617_s1, %s1832_s30  ;;  %p1834_p6 = scmp.lt.s32.totalorder %s3173_s24, 99 }
  0x8a   :  { %s2819_s19 = scalar_lea.hbm %s129_s18, 16  ;;  %p2822_p9 = scmp.lt.u32.totalorder %s129_s18, %s3617_s1 }
  0x8b   :  { %p2820_p8 = scmp.ne.s32.totalorder %s129_s18, %s2819_s19  ;;  %p2823_p10 = scmp.lt.u32.totalorder %s3188_s11, %s2819_s19 }
  0x8c   :  { %p2825_p12 = scmp.lt.u32.totalorder %s2819_s19, %s129_s18 }
  0x8d   :  { %p2824_p11 = por %p2823_p10, %p2822_p9 }
  0x8f   :  { %p2826_p13 = por %p2825_p12, %p2824_p11 }
  0x91   :  { %p2827_p0 = pnand %p2826_p13, %p2820_p8 }
  0x93   :  { %2830 = shalt.err (!%p2827_p0)  }
  0x94   :  { %s2831_s20 = scalar_lea.vmem %s3175_s23, 16  ;;  %p2836_p2 = scmp.lt.s32.totalorder %s3175_s23, %s3196_s5 }
  0x95   :  { %p2832_p1 = scmp.ne.s32.totalorder %s3175_s23, %s2831_s20  ;;  %p2837_p3 = scmp.lt.s32.totalorder %s3199_s16, %s2831_s20 }
  0x97   :  { %p2838_p4 = por %p2837_p3, %p2836_p2 }
  0x99   :  { %p2839_p5 = pnand %p2838_p4, %p2832_p1 }
  0x9b   :  { %2842 = shalt.err (!%p2839_p5)  }
  0x9c   :  { %142 = dma.hbm_to_vmem [thread:$0]  %s129_s18, 16, %s3175_s23, [#allocation3 + $0x1] }
  0x9d   :  { %s145_s6 = scalar_select %p144_p7, %s3173_s24, 0 }
  0x9e   :  { %p164_p8 = scmp.gt.s32.totalorder %s3179_s27, 0  ;;  %p1841_p9 = scmp.lt.s32.totalorder %s3179_s27, 99 }
  0x9f   :  { %s3663_s6 = smov (!%p1834_p6, %s145_s6), 99 }
  0xa0   :  { %s165_s3 = scalar_select %p164_p8, %s3179_s27, 0 }
  0xa1   :  { %s1839_s28 = sshll.u32 %s3663_s6, 4 }
  0xa2   :  { %s149_s30 = scalar_lea.hbm %s3617_s1, %s1839_s28 }
  0xa3   :  { %s2843_s8 = scalar_lea.hbm %s149_s30, 16  ;;  %p2846_p11 = scmp.lt.u32.totalorder %s149_s30, %s3617_s1 }
  0xa4   :  { %p2844_p10 = scmp.ne.s32.totalorder %s149_s30, %s2843_s8  ;;  %p2847_p12 = scmp.lt.u32.totalorder %s3188_s11, %s2843_s8 }
  0xa5   :  { %p2849_p7 = scmp.lt.u32.totalorder %s2843_s8, %s149_s30 }
  0xa6   :  { %p2848_p13 = por %p2847_p12, %p2846_p11 }
  0xa8   :  { %p2850_p0 = por %p2849_p7, %p2848_p13 }
  0xaa   :  { %p2851_p1 = pnand %p2850_p0, %p2844_p10 }
  0xac   :  { %2854 = shalt.err (!%p2851_p1)  }
  0xad   :  { %s2855_s23 = scalar_lea.vmem %s160_s26, 16  ;;  %p2860_p2 = scmp.lt.s32.totalorder %s160_s26, %s3196_s5 }
  0xae   :  { %p2856_p6 = scmp.ne.s32.totalorder %s160_s26, %s2855_s23  ;;  %p2861_p3 = scmp.lt.s32.totalorder %s3199_s16, %s2855_s23 }
  0xb0   :  { %p2862_p4 = por %p2861_p3, %p2860_p2 }
  0xb2   :  { %p2863_p5 = pnand %p2862_p4, %p2856_p6 }
  0xb4   :  { %2866 = shalt.err (!%p2863_p5)  }
  0xb5   :  { %162 = dma.hbm_to_vmem [thread:$0]  %s149_s30, 16, %s160_s26, [#allocation3 + $0x2] }
  0xb6   :  { %s3665_s3 = smov (!%p1841_p9, %s165_s3), 99  ;;  %s3049_s24 = smov [#allocation2 + $0xb]  }
  0xb7   :  { %s179_s13 = sshll.u32 %s3049_s24, 4  ;;  %s3239_s14 = sld [smem:[#allocation4 + $0x4]]  ;;  %s180_s13 = int_to_ptr.vmem [resolvable:$true] %s179_s13 }
  0xb8   :  { %s1846_s15 = sshll.u32 %s3665_s3, 4 }
  0xb9   :  { %s169_s12 = scalar_lea.hbm %s3617_s1, %s1846_s15 }
  0xba   :  { %s2867_s18 = scalar_lea.hbm %s169_s12, 16  ;;  %p2870_p10 = scmp.lt.u32.totalorder %s169_s12, %s3617_s1 }
  0xbb   :  { %p2868_p8 = scmp.ne.s32.totalorder %s169_s12, %s2867_s18  ;;  %p2871_p11 = scmp.lt.u32.totalorder %s3188_s11, %s2867_s18 }
  0xbc   :  { %p2873_p13 = scmp.lt.u32.totalorder %s2867_s18, %s169_s12 }
  0xbd   :  { %p2872_p12 = por %p2871_p11, %p2870_p10 }
  0xbf   :  { %p2874_p9 = por %p2873_p13, %p2872_p12 }
  0xc1   :  { %p2875_p7 = pnand %p2874_p9, %p2868_p8 }
  0xc3   :  { %2878 = shalt.err (!%p2875_p7)  }
  0xc4   :  { %s2879_s26 = scalar_lea.vmem %s180_s13, 16  ;;  %p2884_p1 = scmp.lt.s32.totalorder %s180_s13, %s3196_s5 }
  0xc5   :  { %p2880_p0 = scmp.ne.s32.totalorder %s180_s13, %s2879_s26  ;;  %p2885_p6 = scmp.lt.s32.totalorder %s3199_s16, %s2879_s26 }
  0xc7   :  { %p2886_p2 = por %p2885_p6, %p2884_p1 }
  0xc9   :  { %p2887_p3 = pnand %p2886_p2, %p2880_p0 }
  0xcb   :  { %2890 = shalt.err (!%p2887_p3)  }
  0xcc   :  { %182 = dma.hbm_to_vmem [thread:$0]  %s169_s12, 16, %s180_s13, [#allocation3 + $0x3] }
  0xcd   :  { %s3250_s27 = sld [smem:[#allocation4 + $0x5]]  ;;  %s3050_s22 = smov [#allocation2 + $0xc]  }
  0xce   :  { %s199_s20 = sshll.u32 %s3050_s22, 4  ;;  %p184_p4 = scmp.gt.s32.totalorder %s3239_s14, 0  ;;  %s200_s20 = int_to_ptr.vmem [resolvable:$true] %s199_s20 }
  0xcf   :  { %p1848_p5 = scmp.lt.s32.totalorder %s3239_s14, 99  ;;  %s3254_s6 = sld [smem:[#allocation4 + $0x6]] }
  0xd0   :  { %s3667_s14 = smov (!%p184_p4, %s3239_s14), 0  ;;  %s3051_s3 = smov [#allocation2 + $0xd]  }
  0xd1   :  { %s219_s28 = sshll.u32 %s3051_s3, 4  ;;  %s3669_s14 = smov (!%p1848_p5, %s3667_s14), 99  ;;  %s220_s28 = int_to_ptr.vmem [resolvable:$true] %s219_s28 }
  0xd2   :  { %s1853_s29 = sshll.u32 %s3669_s14, 4 }
  0xd3   :  { %p204_p8 = scmp.gt.s32.totalorder %s3250_s27, 0  ;;  %s189_s8 = scalar_lea.hbm %s3617_s1, %s1853_s29 }
  0xd4   :  { %s2891_s9 = scalar_lea.hbm %s189_s8, 16  ;;  %p2894_p13 = scmp.lt.u32.totalorder %s189_s8, %s3617_s1 }
  0xd5   :  { %p224_p11 = scmp.gt.s32.totalorder %s3254_s6, 0  ;;  %p2892_p12 = scmp.ne.s32.totalorder %s189_s8, %s2891_s9 }
  0xd6   :  { %p2895_p9 = scmp.lt.u32.totalorder %s3188_s11, %s2891_s9  ;;  %p2897_p0 = scmp.lt.u32.totalorder %s2891_s9, %s189_s8 }
  0xd8   :  { %p2896_p7 = por %p2895_p9, %p2894_p13 }
  0xda   :  { %p2898_p1 = por %p2897_p0, %p2896_p7 }
  0xdc   :  { %p2899_p6 = pnand %p2898_p1, %p2892_p12 }
  0xde   :  { %2902 = shalt.err (!%p2899_p6)  }
  0xdf   :  { %s2903_s24 = scalar_lea.vmem %s200_s20, 16  ;;  %p2908_p3 = scmp.lt.s32.totalorder %s200_s20, %s3196_s5 }
  0xe0   :  { %p2904_p2 = scmp.ne.s32.totalorder %s200_s20, %s2903_s24  ;;  %p2909_p4 = scmp.lt.s32.totalorder %s3199_s16, %s2903_s24 }
  0xe2   :  { %p2910_p5 = por %p2909_p4, %p2908_p3 }
  0xe4   :  { %p2911_p10 = pnand %p2910_p5, %p2904_p2 }
  0xe6   :  { %2914 = shalt.err (!%p2911_p10)  }
  0xe7   :  { %202 = dma.hbm_to_vmem [thread:$0]  %s189_s8, 16, %s200_s20, [#allocation3 + $0x4] }
  0xe8   :  { %s205_s13 = scalar_select %p204_p8, %s3250_s27, 0 }
  0xe9   :  { %s225_s14 = scalar_select %p224_p11, %s3254_s6, 0 }
  0xea   :  { %p3624_p12 = scmp.lt.s32.totalorder %s3250_s27, 99  ;;  %p1862_p13 = scmp.lt.s32.totalorder %s3254_s6, 99 }
  0xeb   :  { %s3278_s17 = sld [smem:[#allocation4 + $0x7]]  ;;  %s3052_s19 = smov [#allocation2 + $0xe]  }
  0xec   :  { %s3671_s13 = smov (!%p3624_p12, %s205_s13), 99  ;;  %s239_s21 = sshll.u32 %s3052_s19, 4  ;;  %s240_s21 = int_to_ptr.vmem [resolvable:$true] %s239_s21 }
  0xed   :  { %s1860_s15 = sshll.u32 %s3671_s13, 4 }
  0xee   :  { %s209_s18 = scalar_lea.hbm %s3617_s1, %s1860_s15 }
  0xef   :  { %s2915_s26 = scalar_lea.hbm %s209_s18, 16  ;;  %p2918_p8 = scmp.lt.u32.totalorder %s209_s18, %s3617_s1 }
  0xf0   :  { %p2916_p10 = scmp.ne.s32.totalorder %s209_s18, %s2915_s26  ;;  %p2919_p11 = scmp.lt.u32.totalorder %s3188_s11, %s2915_s26 }
  0xf1   :  { %p2921_p7 = scmp.lt.u32.totalorder %s2915_s26, %s209_s18 }
  0xf2   :  { %p2920_p9 = por %p2919_p11, %p2918_p8 }
  0xf4   :  { %p2922_p0 = por %p2921_p7, %p2920_p9 }
  0xf6   :  { %p2923_p1 = pnand %p2922_p0, %p2916_p10 }
  0xf8   :  { %2926 = shalt.err (!%p2923_p1)  }
  0xf9   :  { %s2927_s27 = scalar_lea.vmem %s220_s28, 16  ;;  %p2932_p2 = scmp.lt.s32.totalorder %s220_s28, %s3196_s5 }
  0xfa   :  { %p2928_p6 = scmp.ne.s32.totalorder %s220_s28, %s2927_s27  ;;  %p2933_p3 = scmp.lt.s32.totalorder %s3199_s16, %s2927_s27 }
  0xfc   :  { %p2934_p4 = por %p2933_p3, %p2932_p2 }
  0xfe   :  { %p2935_p5 = pnand %p2934_p4, %p2928_p6 }
 0x100   :  { %2938 = shalt.err (!%p2935_p5)  }
 0x101   :  { %222 = dma.hbm_to_vmem [thread:$0]  %s209_s18, 16, %s220_s28, [#allocation3 + $0x5] }
 0x102   :  { %s3673_s14 = smov (!%p1862_p13, %s225_s14), 99  ;;  %p244_p12 = scmp.gt.s32.totalorder %s3278_s17, 0 }
 0x103   :  { %s1867_s3 = sshll.u32 %s3673_s14, 4 }
 0x104   :  { %s229_s30 = scalar_lea.hbm %s3617_s1, %s1867_s3 }
 0x105   :  { %s2939_s8 = scalar_lea.hbm %s229_s30, 16  ;;  %p2942_p8 = scmp.lt.u32.totalorder %s229_s30, %s3617_s1 }
 0x106   :  { %p2940_p10 = scmp.ne.s32.totalorder %s229_s30, %s2939_s8  ;;  %p2943_p11 = scmp.lt.u32.totalorder %s3188_s11, %s2939_s8 }
 0x107   :  { %p2945_p7 = scmp.lt.u32.totalorder %s2939_s8, %s229_s30 }
 0x108   :  { %p2944_p9 = por %p2943_p11, %p2942_p8 }
 0x10a   :  { %p2946_p0 = por %p2945_p7, %p2944_p9 }
 0x10c   :  { %p2947_p1 = pnand %p2946_p0, %p2940_p10 }
 0x10e   :  { %2950 = shalt.err (!%p2947_p1)  }
 0x10f   :  { %s2951_s6 = scalar_lea.vmem %s240_s21, 16  ;;  %p2956_p6 = scmp.lt.s32.totalorder %s240_s21, %s3196_s5 }
 0x110   :  { %p2952_p13 = scmp.ne.s32.totalorder %s240_s21, %s2951_s6  ;;  %p2957_p2 = scmp.lt.s32.totalorder %s3199_s16, %s2951_s6 }
 0x112   :  { %p2958_p3 = por %p2957_p2, %p2956_p6 }
 0x114   :  { %p2959_p4 = pnand %p2958_p3, %p2952_p13 }
 0x116   :  { %2962 = shalt.err (!%p2959_p4)  }
 0x117   :  { %242 = dma.hbm_to_vmem [thread:$0]  %s229_s30, 16, %s240_s21, [#allocation3 + $0x6] }
 0x118   :  { %s245_s28 = scalar_select %p244_p12, %s3278_s17, 0 }
 0x119   :  { %p1869_p5 = scmp.lt.s32.totalorder %s3278_s17, 99  ;;  %s3053_s23 = smov [#allocation2 + $0xf]  }
 0x11a   :  { %s259_s24 = sshll.u32 %s3053_s23, 4  ;;  %s260_s24 = int_to_ptr.vmem [resolvable:$true] %s259_s24 }
 0x11b   :  { %s3675_s28 = smov (!%p1869_p5, %s245_s28), 99 }
 0x11c   :  { %s1874_s13 = sshll.u32 %s3675_s28, 4 }
 0x11d   :  { %s249_s4 = scalar_lea.hbm %s3617_s1, %s1874_s13 }
 0x11e   :  { %s2963_s12 = scalar_lea.hbm %s249_s4, 16  ;;  %p2966_p8 = scmp.lt.u32.totalorder %s249_s4, %s3617_s1 }
 0x11f   :  { %p2964_p10 = scmp.ne.s32.totalorder %s249_s4, %s2963_s12  ;;  %p2967_p11 = scmp.lt.u32.totalorder %s3188_s11, %s2963_s12 }
 0x120   :  { %p2969_p7 = scmp.lt.u32.totalorder %s2963_s12, %s249_s4 }
 0x121   :  { %p2968_p9 = por %p2967_p11, %p2966_p8 }
 0x123   :  { %p2970_p12 = por %p2969_p7, %p2968_p9 }
 0x125   :  { %p2971_p0 = pnand %p2970_p12, %p2964_p10 }
 0x127   :  { %2974 = shalt.err (!%p2971_p0)  }
 0x128   :  { %s2975_s17 = scalar_lea.vmem %s260_s24, 16  ;;  %p2980_p13 = scmp.lt.s32.totalorder %s260_s24, %s3196_s5 }
 0x129   :  { %p2976_p1 = scmp.ne.s32.totalorder %s260_s24, %s2975_s17  ;;  %p2981_p6 = scmp.lt.s32.totalorder %s3199_s16, %s2975_s17 }
 0x12b   :  { %p2982_p2 = por %p2981_p6, %p2980_p13 }
 0x12d   :  { %p2983_p3 = pnand %p2982_p2, %p2976_p1 }
 0x12f   :  { %2986 = shalt.err (!%p2983_p3)  }
 0x130   :  { %262 = dma.hbm_to_vmem [thread:$0]  %s249_s4, 16, %s260_s24, [#allocation3 + $0x7]  ;;  %v3054_v0 = vmov 0.0  }
 0x131   :  { %263 = vst [vmem:[#allocation2] sm:$0xff] %v3054_v0  ;;  %264 = vst [vmem:[#allocation2 + $0x10] sm:$0xff] %v3054_v0 }
 0x132   :  { %265 = vst [vmem:[#allocation2 + $0x18] sm:$0xff] %v3054_v0 }
 0x133   :  { %3017 = dma.done.wait [#allocation3], 16 }
 0x134   :  { %3018 = vsyncadd [#allocation3], 4294967280 }
 0x135   :  { %3019 = dma.done.wait [#allocation3 + $0x1], 16 }
 0x136   :  { %3020 = vsyncadd [#allocation3 + $0x1], 4294967280 }
 0x137   :  { %3021 = dma.done.wait [#allocation3 + $0x2], 16 }
 0x138   :  { %3022 = vsyncadd [#allocation3 + $0x2], 4294967280 }
 0x139   :  { %3023 = dma.done.wait [#allocation3 + $0x3], 16 }
 0x13a   :  { %3024 = vsyncadd [#allocation3 + $0x3], 4294967280 }
 0x13b   :  { %3025 = dma.done.wait [#allocation3 + $0x4], 16 }
 0x13c   :  { %3026 = vsyncadd [#allocation3 + $0x4], 4294967280 }
 0x13d   :  { %3027 = dma.done.wait [#allocation3 + $0x5], 16 }
 0x13e   :  { %3028 = vsyncadd [#allocation3 + $0x5], 4294967280 }
 0x13f   :  { %3029 = dma.done.wait [#allocation3 + $0x6], 16 }
 0x140   :  { %3030 = vsyncadd [#allocation3 + $0x6], 4294967280 }
 0x141   :  { %3031 = dma.done.wait [#allocation3 + $0x7], 16 }
 0x142   :  { %3032 = vsyncadd [#allocation3 + $0x7], 4294967280  ;;  %v317_v1 = vld [vmem:[#allocation8 + $0x80] sm:$0xff]  ;;  %v318_v2 = vld [vmem:[#allocation8 + $0x88] sm:$0xff]  ;;  %s3058_s1 = smov [#allocation15]  }
 0x143   :  { %v349_v3 = vld [vmem:[#allocation8 + $0x180] sm:$0xff]  ;;  %v2286_v4 = vpack.c.bf16 %v318_v2, %v317_v1  ;;  %v350_v5 = vld [vmem:[#allocation8 + $0x188] sm:$0xff]  ;;  %v319_v12 = vld [vmem:[#allocation8 + $0x90] sm:$0xff]  ;;  %s1734_s11 = sshll.u32 %s3058_s1, 4  ;;  %s1735_s11 = int_to_ptr.vmem [resolvable:$true] %s1734_s11 }
 0x144   :  { %v301_v6 = vld [vmem:[#allocation8] sm:$0xff]  ;;  %v302_v7 = vld [vmem:[#allocation8 + $0x8] sm:$0xff]  ;;  %v2318_v8 = vpack.c.bf16 %v350_v5, %v349_v3  ;;  %v320_v14 = vld [vmem:[#allocation8 + $0x98] sm:$0xff]  ;;  %s2987_s5 = scalar_lea.vmem %s1735_s11, 384  ;;  %p2992_p5 = scmp.lt.s32.totalorder %s1735_s11, %s1735_s11 }
 0x145   :  { %v2288_v9 = vpack.c.bf16 %v302_v7, %v301_v6  ;;  %v333_v10 = vld [vmem:[#allocation8 + $0x100] sm:$0xff]  ;;  %v334_v11 = vld [vmem:[#allocation8 + $0x108] sm:$0xff]  ;;  %2287 = vmatprep.subr.bf16.mxu0 %v2286_v4  ;;  %v351_v15 = vld [vmem:[#allocation8 + $0x190] sm:$0xff]  ;;  %v2290_v17 = vpack.c.bf16 %v320_v14, %v319_v12  ;;  %p2988_p4 = scmp.ne.s32.totalorder %s1735_s11, %s2987_s5  ;;  %p2993_p10 = scmp.lt.s32.totalorder %s2987_s5, %s2987_s5 }
 0x146   :  { %v2320_v13 = vpack.c.bf16 %v334_v11, %v333_v10  ;;  %v352_v16 = vld [vmem:[#allocation8 + $0x198] sm:$0xff]  ;;  %2319 = vmatprep.subr.bf16.mxu1 %v2318_v8  ;;  %v303_v19 = vld [vmem:[#allocation8 + $0x10] sm:$0xff]  ;;  %v321_v24 = vld [vmem:[#allocation8 + $0xa0] sm:$0xff] }
 0x147   :  { %2289 = vmatpush3.bf16.msra.mxu0 %v2288_v9  ;;  %v2322_v18 = vpack.c.bf16 %v352_v16, %v351_v15  ;;  %v304_v20 = vld [vmem:[#allocation8 + $0x18] sm:$0xff]  ;;  %v335_v21 = vld [vmem:[#allocation8 + $0x110] sm:$0xff]  ;;  %v322_v25 = vld [vmem:[#allocation8 + $0xa8] sm:$0xff]  ;;  %p2994_p8 = por %p2993_p10, %p2992_p5 }
 0x148   :  { %2321 = vmatpush3.bf16.msra.mxu1 %v2320_v13  ;;  %v2292_v22 = vpack.c.bf16 %v304_v20, %v303_v19  ;;  %v336_v23 = vld [vmem:[#allocation8 + $0x118] sm:$0xff]  ;;  %2291 = vmatprep.subr.bf16.mxu0 %v2290_v17  ;;  %v2294_v27 = vpack.c.bf16 %v322_v25, %v321_v24  ;;  %v353_v28 = vld [vmem:[#allocation8 + $0x1a0] sm:$0xff]  ;;  %v354_v29 = vld [vmem:[#allocation8 + $0x1a8] sm:$0xff] }
 0x149   :  { %2323 = vmatprep.subr.bf16.mxu1 %v2322_v18  ;;  %v2324_v26 = vpack.c.bf16 %v336_v23, %v335_v21  ;;  %v305_v30 = vld [vmem:[#allocation8 + $0x20] sm:$0xff]  ;;  %v2326_v31 = vpack.c.bf16 %v354_v29, %v353_v28  ;;  %v306_v32 = vld [vmem:[#allocation8 + $0x28] sm:$0xff]  ;;  %v323_v36 = vld [vmem:[#allocation8 + $0xb0] sm:$0xff]  ;;  %p2995_p11 = pnand %p2994_p8, %p2988_p4 }
 0x14a   :  { %v337_v33 = vld [vmem:[#allocation8 + $0x120] sm:$0xff]  ;;  %v338_v34 = vld [vmem:[#allocation8 + $0x128] sm:$0xff]  ;;  %v2296_v35 = vpack.c.bf16 %v306_v32, %v305_v30  ;;  %v324_v37 = vld [vmem:[#allocation8 + $0xb8] sm:$0xff] }
 0x14b   :  { %2293 = vmatpush3.bf16.msra.mxu0 %v2292_v22  ;;  %v355_v38 = vld [vmem:[#allocation8 + $0x1b0] sm:$0xff]  ;;  %v2328_v39 = vpack.c.bf16 %v338_v34, %v337_v33  ;;  %v2298_v40 = vpack.c.bf16 %v324_v37, %v323_v36  ;;  %v356_v41 = vld [vmem:[#allocation8 + $0x1b8] sm:$0xff]  ;;  %v325_v47 = vld [vmem:[#allocation8 + $0xc0] sm:$0xff] }
 0x14c   :  { %2325 = vmatpush3.bf16.msra.mxu1 %v2324_v26  ;;  %2295 = vmatprep.subr.bf16.mxu0 %v2294_v27  ;;  %v307_v42 = vld [vmem:[#allocation8 + $0x30] sm:$0xff]  ;;  %v308_v43 = vld [vmem:[#allocation8 + $0x38] sm:$0xff]  ;;  %v2330_v44 = vpack.c.bf16 %v356_v41, %v355_v38  ;;  %v326_v48 = vld [vmem:[#allocation8 + $0xc8] sm:$0xff] }
 0x14d   :  { %2327 = vmatprep.subr.bf16.mxu1 %v2326_v31  ;;  %v339_v45 = vld [vmem:[#allocation8 + $0x130] sm:$0xff]  ;;  %v340_v46 = vld [vmem:[#allocation8 + $0x138] sm:$0xff]  ;;  %v357_v49 = vld [vmem:[#allocation8 + $0x1c0] sm:$0xff]  ;;  %v2300_v51 = vpack.c.bf16 %v308_v43, %v307_v42  ;;  %v2302_v53 = vpack.c.bf16 %v326_v48, %v325_v47 }
 0x14e   :  { %v358_v50 = vld [vmem:[#allocation8 + $0x1c8] sm:$0xff]  ;;  %v2332_v52 = vpack.c.bf16 %v340_v46, %v339_v45  ;;  %v309_v54 = vld [vmem:[#allocation8 + $0x40] sm:$0xff]  ;;  %v327_v59 = vld [vmem:[#allocation8 + $0xd0] sm:$0xff] }
 0x14f   :  { %2297 = vmatpush3.bf16.msra.mxu0 %v2296_v35  ;;  %v310_v55 = vld [vmem:[#allocation8 + $0x48] sm:$0xff]  ;;  %v341_v56 = vld [vmem:[#allocation8 + $0x140] sm:$0xff]  ;;  %v2334_v57 = vpack.c.bf16 %v358_v50, %v357_v49  ;;  %v328_v60 = vld [vmem:[#allocation8 + $0xd8] sm:$0xff] }
 0x150   :  { %2329 = vmatpush3.bf16.msra.mxu1 %v2328_v39  ;;  %2299 = vmatprep.subr.bf16.mxu0 %v2298_v40  ;;  %v342_v58 = vld [vmem:[#allocation8 + $0x148] sm:$0xff]  ;;  %v359_v61 = vld [vmem:[#allocation8 + $0x1d0] sm:$0xff]  ;;  %v360_v62 = vld [vmem:[#allocation8 + $0x1d8] sm:$0xff]  ;;  %v2304_v63 = vpack.c.bf16 %v310_v55, %v309_v54  ;;  %v2306_v2 = vpack.c.bf16 %v328_v60, %v327_v59 }
 0x151   :  { %2331 = vmatprep.subr.bf16.mxu1 %v2330_v44  ;;  %v2336_v1 = vpack.c.bf16 %v342_v58, %v341_v56  ;;  %v311_v3 = vld [vmem:[#allocation8 + $0x50] sm:$0xff]  ;;  %v312_v4 = vld [vmem:[#allocation8 + $0x58] sm:$0xff]  ;;  %v2338_v6 = vpack.c.bf16 %v360_v62, %v359_v61  ;;  %v329_v8 = vld [vmem:[#allocation8 + $0xe0] sm:$0xff] }
 0x152   :  { %v343_v5 = vld [vmem:[#allocation8 + $0x150] sm:$0xff]  ;;  %v344_v7 = vld [vmem:[#allocation8 + $0x158] sm:$0xff]  ;;  %v330_v9 = vld [vmem:[#allocation8 + $0xe8] sm:$0xff]  ;;  %v2308_v12 = vpack.c.bf16 %v312_v4, %v311_v3 }
 0x153   :  { %2301 = vmatpush3.bf16.msra.mxu0 %v2300_v51  ;;  %v361_v10 = vld [vmem:[#allocation8 + $0x1e0] sm:$0xff]  ;;  %v362_v11 = vld [vmem:[#allocation8 + $0x1e8] sm:$0xff]  ;;  %v2340_v15 = vpack.c.bf16 %v344_v7, %v343_v5  ;;  %v2310_v16 = vpack.c.bf16 %v330_v9, %v329_v8  ;;  %v331_v22 = vld [vmem:[#allocation8 + $0xf0] sm:$0xff] }
 0x154   :  { %2333 = vmatpush3.bf16.msra.mxu1 %v2332_v52  ;;  %2303 = vmatprep.subr.bf16.mxu0 %v2302_v53  ;;  %v313_v13 = vld [vmem:[#allocation8 + $0x60] sm:$0xff]  ;;  %v314_v14 = vld [vmem:[#allocation8 + $0x68] sm:$0xff]  ;;  %v2342_v20 = vpack.c.bf16 %v362_v11, %v361_v10  ;;  %v332_v23 = vld [vmem:[#allocation8 + $0xf8] sm:$0xff] }
 0x155   :  { %2335 = vmatprep.subr.bf16.mxu1 %v2334_v57  ;;  %v345_v17 = vld [vmem:[#allocation8 + $0x160] sm:$0xff]  ;;  %v346_v21 = vld [vmem:[#allocation8 + $0x168] sm:$0xff]  ;;  %v363_v24 = vld [vmem:[#allocation8 + $0x1f0] sm:$0xff]  ;;  %v2312_v26 = vpack.c.bf16 %v314_v14, %v313_v13  ;;  %v2314_v28 = vpack.c.bf16 %v332_v23, %v331_v22 }
 0x156   :  { %v286_v18 = vld [vmem:[#allocation2 + $0x1] sm:$0xff]  ;;  %v364_v25 = vld [vmem:[#allocation8 + $0x1f8] sm:$0xff]  ;;  %v2344_v27 = vpack.c.bf16 %v346_v21, %v345_v17  ;;  %v315_v29 = vld [vmem:[#allocation8 + $0x70] sm:$0xff] }
 0x157   :  { %2305 = vmatpush3.bf16.msra.mxu0 %v2304_v63  ;;  %v292_v19 = vld [vmem:[#allocation2 + $0x3] sm:$0xff]  ;;  %461 = vmatprep.mubr.f32.mxu0 %v286_v18  ;;  %v316_v30 = vld [vmem:[#allocation8 + $0x78] sm:$0xff]  ;;  %v347_v31 = vld [vmem:[#allocation8 + $0x170] sm:$0xff]  ;;  %v2346_v32 = vpack.c.bf16 %v364_v25, %v363_v24 }
 0x158   :  { %2337 = vmatpush3.bf16.msra.mxu1 %v2336_v1  ;;  %2307 = vmatprep.subr.bf16.mxu0 %v2306_v2  ;;  %v348_v33 = vld [vmem:[#allocation8 + $0x178] sm:$0xff]  ;;  %v381_v34 = vld [vmem:[#allocation8 + $0x280] sm:$0xff]  ;;  %v382_v35 = vld [vmem:[#allocation8 + $0x288] sm:$0xff]  ;;  %v2316_v36 = vpack.c.bf16 %v316_v30, %v315_v29 }
 0x159   :  { %2339 = vmatprep.subr.bf16.mxu1 %v2338_v6  ;;  %541 = vmatprep.mubr.f32.mxu1 %v292_v19  ;;  %v2348_v37 = vpack.c.bf16 %v348_v33, %v347_v31  ;;  %v2350_v38 = vpack.c.bf16 %v382_v35, %v381_v34  ;;  %v365_v39 = vld [vmem:[#allocation8 + $0x200] sm:$0xff]  ;;  %v366_v40 = vld [vmem:[#allocation8 + $0x208] sm:$0xff]  ;;  %v383_v41 = vld [vmem:[#allocation8 + $0x290] sm:$0xff] }
 0x15a   :  { %v384_v42 = vld [vmem:[#allocation8 + $0x298] sm:$0xff]  ;;  %v283_v43 = vld [vmem:[#allocation2] sm:$0xff]  ;;  %v2352_v44 = vpack.c.bf16 %v366_v40, %v365_v39  ;;  %v367_v47 = vld [vmem:[#allocation8 + $0x210] sm:$0xff] }
 0x15b   :  { %2309 = vmatpush3.bf16.msra.mxu0 %v2308_v12  ;;  %v289_v45 = vld [vmem:[#allocation2 + $0x2] sm:$0xff]  ;;  %v2354_v46 = vpack.c.bf16 %v384_v42, %v383_v41  ;;  %v368_v48 = vld [vmem:[#allocation8 + $0x218] sm:$0xff]  ;;  %v293_v52 = vld [vmem:[#allocation2 + $0xb] sm:$0xff] }
 0x15c   :  { %2341 = vmatpush3.bf16.msra.mxu1 %v2340_v15  ;;  %2311 = vmatprep.subr.bf16.mxu0 %v2310_v16  ;;  %v385_v49 = vld [vmem:[#allocation8 + $0x2a0] sm:$0xff]  ;;  %v386_v50 = vld [vmem:[#allocation8 + $0x2a8] sm:$0xff]  ;;  %v2356_v53 = vpack.c.bf16 %v368_v48, %v367_v47  ;;  %v387_v59 = vld [vmem:[#allocation8 + $0x2b0] sm:$0xff] }
 0x15d   :  { %2343 = vmatprep.subr.bf16.mxu1 %v2342_v20  ;;  %v287_v51 = vld [vmem:[#allocation2 + $0x9] sm:$0xff]  ;;  %v2358_v55 = vpack.c.bf16 %v386_v50, %v385_v49  ;;  %v369_v56 = vld [vmem:[#allocation8 + $0x220] sm:$0xff]  ;;  %v388_v60 = vld [vmem:[#allocation8 + $0x2b8] sm:$0xff] }
 0x15e   :  { %v284_v54 = vld [vmem:[#allocation2 + $0x8] sm:$0xff]  ;;  %v288_v61 = vld [vmem:[#allocation2 + $0x11] sm:$0xff]  ;;  %v2362_v2 = vpack.c.bf16 %v388_v60, %v387_v59  ;;  %v389_v6 = vld [vmem:[#allocation8 + $0x2c0] sm:$0xff] }
 0x15f   :  { %2313 = vmatpush3.bf16.msra.mxu0 %v2312_v26  ;;  %v370_v57 = vld [vmem:[#allocation8 + $0x228] sm:$0xff]  ;;  %v294_v62 = vld [vmem:[#allocation2 + $0x13] sm:$0xff]  ;;  %v373_v11 = vld [vmem:[#allocation8 + $0x240] sm:$0xff] }
 0x160   :  { %2345 = vmatpush3.bf16.msra.mxu1 %v2344_v27  ;;  %2315 = vmatprep.subr.bf16.mxu0 %v2314_v28  ;;  %v290_v58 = vld [vmem:[#allocation2 + $0xa] sm:$0xff]  ;;  %v2360_v63 = vpack.c.bf16 %v370_v57, %v369_v56  ;;  %v372_v4 = vld [vmem:[#allocation8 + $0x238] sm:$0xff]  ;;  %v393_v19 = vld [vmem:[#allocation8 + $0x2e0] sm:$0xff] }
 0x161   :  { %2347 = vmatprep.subr.bf16.mxu1 %v2346_v32  ;;  %v285_v1 = vld [vmem:[#allocation2 + $0x10] sm:$0xff]  ;;  %v390_v7 = vld [vmem:[#allocation8 + $0x2c8] sm:$0xff]  ;;  %v392_v14 = vld [vmem:[#allocation8 + $0x2d8] sm:$0xff] }
 0x162   :  { %v371_v3 = vld [vmem:[#allocation8 + $0x230] sm:$0xff]  ;;  %v298_v8 = vld [vmem:[#allocation2 + $0x5] sm:$0xff]  ;;  %v2366_v10 = vpack.c.bf16 %v390_v7, %v389_v6  ;;  %v376_v18 = vld [vmem:[#allocation8 + $0x258] sm:$0xff] }
 0x163   :  { %2317 = vmatpush3.bf16.msra.mxu0 %v2316_v36  ;;  %v291_v5 = vld [vmem:[#allocation2 + $0x12] sm:$0xff]  ;;  %v2364_v9 = vpack.c.bf16 %v372_v4, %v371_v3  ;;  %v374_v12 = vld [vmem:[#allocation8 + $0x248] sm:$0xff]  ;;  %v377_v23 = vld [vmem:[#allocation8 + $0x260] sm:$0xff] }
 0x164   :  { %2349 = vmatpush3.bf16.msra.mxu1 %v2348_v37  ;;  %2351 = vmatprep.subr.bf16.mxu0 %v2350_v38  ;;  %v391_v13 = vld [vmem:[#allocation8 + $0x2d0] sm:$0xff]  ;;  %v2368_v15 = vpack.c.bf16 %v374_v12, %v373_v11  ;;  %v394_v20 = vld [vmem:[#allocation8 + $0x2e8] sm:$0xff]  ;;  %v396_v26 = vld [vmem:[#allocation8 + $0x2f8] sm:$0xff] }
 0x165   :  { %v2370_v16 = vpack.c.bf16 %v392_v14, %v391_v13  ;;  %v375_v17 = vld [vmem:[#allocation8 + $0x250] sm:$0xff]  ;;  %v2374_v22 = vpack.c.bf16 %v394_v20, %v393_v19  ;;  %v378_v24 = vld [vmem:[#allocation8 + $0x268] sm:$0xff]  ;;  %v380_v30 = vld [vmem:[#allocation8 + $0x278] sm:$0xff] }
 0x166   :  { %462 = vmatmul.mubr.f32.vlgmr.msra.gmra.mrb[0].mxu0 %v283_v43  ;;  %v2372_v21 = vpack.c.bf16 %v376_v18, %v375_v17  ;;  %v395_v25 = vld [vmem:[#allocation8 + $0x2f0] sm:$0xff]  ;;  %v2376_v27 = vpack.c.bf16 %v378_v24, %v377_v23  ;;  %v295_v32 = vld [vmem:[#allocation2 + $0x4] sm:$0xff]  ;;  %v685_v38 = vld [vmem:[#allocation9 + $0x38] sm:$0xff] }
 0x167   :  { %542 = vmatmul.mubr.f32.vlgmr.msra.gmra.mrb[0].mxu1 %v289_v45  ;;  %2353 = vmatpush3.bf16.msra.mxu0 %v2352_v44  ;;  %v2378_v28 = vpack.c.bf16 %v396_v26, %v395_v25  ;;  %v379_v29 = vld [vmem:[#allocation8 + $0x270] sm:$0xff]  ;;  %v679_v37 = vld [vmem:[#allocation9 + $0x8] sm:$0xff]  ;;  %v678_v40 = vld [vmem:[#allocation9] sm:$0xff] }
 0x168   :  { %2355 = vmatprep.subr.bf16.mxu0 %v2354_v46  ;;  %466 = vmatprep.mubr.f32.mxu0 %v287_v51  ;;  %v2380_v31 = vpack.c.bf16 %v380_v30, %v379_v29  ;;  %v299_v33 = vld [vmem:[#allocation2 + $0xd] sm:$0xff]  ;;  %v300_v35 = vld [vmem:[#allocation2 + $0x15] sm:$0xff]  ;;  %v2382_v39 = vpack.c.bf16 %v685_v38, %v679_v37  ;;  %v686_v46 = vld [vmem:[#allocation9 + $0x40] sm:$0xff] }
 0x169   :  { %546 = vmatprep.mubr.f32.mxu1 %v293_v52  ;;  %v296_v34 = vld [vmem:[#allocation2 + $0xc] sm:$0xff]  ;;  %v297_v36 = vld [vmem:[#allocation2 + $0x14] sm:$0xff]  ;;  %v690_v52 = vld [vmem:[#allocation9 + $0x60] sm:$0xff] }
 0x16a   :  { %467 = vmatmul.mubr.f32.gmra.mrb[2].mxu0 %v284_v54  ;;  %v684_v41 = vld [vmem:[#allocation9 + $0x30] sm:$0xff]  ;;  %v681_v42 = vld [vmem:[#allocation9 + $0x18] sm:$0xff]  ;;  %v687_v44 = vld [vmem:[#allocation9 + $0x48] sm:$0xff]  ;;  %2383 = vmatprep.subr.bf16.mxu1 %v2382_v39 }
 0x16b   :  { %2357 = vmatpush3.bf16.msra.mxu0 %v2356_v53  ;;  %547 = vmatmul.mubr.f32.gmra.mrb[2].mxu1 %v290_v58  ;;  %v2384_v43 = vpack.c.bf16 %v684_v41, %v678_v40  ;;  %v680_v45 = vld [vmem:[#allocation9 + $0x10] sm:$0xff]  ;;  %v2414_v47 = vpack.c.bf16 %v687_v44, %v681_v42  ;;  %v691_v49 = vld [vmem:[#allocation9 + $0x68] sm:$0xff]  ;;  %v697_v50 = vld [vmem:[#allocation9 + $0x98] sm:$0xff] }
 0x16c   :  { %2359 = vmatprep.subr.bf16.mxu0 %v2358_v55  ;;  %471 = vmatprep.mubr.f32.mxu0 %v288_v61  ;;  %v2416_v48 = vpack.c.bf16 %v686_v46, %v680_v45  ;;  %v2386_v51 = vpack.c.bf16 %v697_v50, %v691_v49  ;;  %v696_v53 = vld [vmem:[#allocation9 + $0x90] sm:$0xff]  ;;  %v693_v54 = vld [vmem:[#allocation9 + $0x78] sm:$0xff]  ;;  %v699_v56 = vld [vmem:[#allocation9 + $0xa8] sm:$0xff] }
 0x16d   :  { %551 = vmatprep.mubr.f32.mxu1 %v294_v62  ;;  %2385 = vmatpush1.bf16.msra.mxu1 %v2384_v43  ;;  %v2388_v55 = vpack.c.bf16 %v696_v53, %v690_v52  ;;  %v692_v57 = vld [vmem:[#allocation9 + $0x70] sm:$0xff]  ;;  %v698_v58 = vld [vmem:[#allocation9 + $0xa0] sm:$0xff]  ;;  %v2418_v59 = vpack.c.bf16 %v699_v56, %v693_v54  ;;  %v703_v61 = vld [vmem:[#allocation9 + $0xc8] sm:$0xff] }
 0x16e   :  { %472 = vmatmul.mubr.f32.gmra.mrb[4].mxu0 %v285_v1  ;;  %2387 = vmatprep.subr.bf16.mxu1 %v2386_v51  ;;  %v2420_v60 = vpack.c.bf16 %v698_v58, %v692_v57  ;;  %v709_v62 = vld [vmem:[#allocation9 + $0xf8] sm:$0xff]  ;;  %v702_v1 = vld [vmem:[#allocation9 + $0xc0] sm:$0xff]  ;;  %v704_v6 = vld [vmem:[#allocation9 + $0xd0] sm:$0xff] }
 0x16f   :  { %2361 = vmatpush3.bf16.msra.mxu0 %v2360_v63  ;;  %552 = vmatmul.mubr.f32.gmra.mrb[4].mxu1 %v291_v5  ;;  %v2390_v63 = vpack.c.bf16 %v709_v62, %v703_v61  ;;  %v705_v3 = vld [vmem:[#allocation9 + $0xd8] sm:$0xff]  ;;  %v711_v5 = vld [vmem:[#allocation9 + $0x108] sm:$0xff]  ;;  %v710_v7 = vld [vmem:[#allocation9 + $0x100] sm:$0xff] }
 0x170   :  { %2363 = vmatprep.subr.bf16.mxu0 %v2362_v2  ;;  %621 = vmatprep.mubr.f32.mxu0 %v298_v8  ;;  %v708_v2 = vld [vmem:[#allocation9 + $0xf0] sm:$0xff]  ;;  %v2422_v8 = vpack.c.bf16 %v711_v5, %v705_v3  ;;  %v721_v11 = vld [vmem:[#allocation9 + $0x158] sm:$0xff]  ;;  %v714_v13 = vld [vmem:[#allocation9 + $0x120] sm:$0xff] }
 0x171   :  { %838 = vmatprep.mubr.f32.mxu1 %v3054_v0  ;;  %2389 = vmatpush1.bf16.msra.mxu1 %v2388_v55  ;;  %v2392_v4 = vpack.c.bf16 %v708_v2, %v702_v1  ;;  %v720_v14 = vld [vmem:[#allocation9 + $0x150] sm:$0xff]  ;;  %v723_v17 = vld [vmem:[#allocation9 + $0x168] sm:$0xff]  ;;  %v722_v19 = vld [vmem:[#allocation9 + $0x160] sm:$0xff] }
 0x172   :  { %2391 = vmatprep.subr.bf16.mxu1 %v2390_v63  ;;  %v716_v18 = vld [vmem:[#allocation9 + $0x130] sm:$0xff]  ;;  %v733_v23 = vld [vmem:[#allocation9 + $0x1b8] sm:$0xff]  ;;  %v726_v25 = vld [vmem:[#allocation9 + $0x180] sm:$0xff] }
 0x173   :  { %2365 = vmatpush3.bf16.msra.mxu0 %v2364_v9  ;;  %v2424_v9 = vpack.c.bf16 %v710_v7, %v704_v6  ;;  %v732_v26 = vld [vmem:[#allocation9 + $0x1b0] sm:$0xff]  ;;  %v735_v29 = vld [vmem:[#allocation9 + $0x1c8] sm:$0xff]  ;;  %v738_v37 = vld [vmem:[#allocation9 + $0x1e0] sm:$0xff] }
 0x174   :  { %2367 = vmatprep.subr.bf16.mxu0 %v2366_v10  ;;  %v715_v10 = vld [vmem:[#allocation9 + $0x128] sm:$0xff]  ;;  %v728_v30 = vld [vmem:[#allocation9 + $0x190] sm:$0xff]  ;;  %v741_v39 = vld [vmem:[#allocation9 + $0x1f8] sm:$0xff] }
 0x175   :  { %2393 = vmatpush1.bf16.msra.mxu1 %v2392_v4  ;;  %v2394_v12 = vpack.c.bf16 %v721_v11, %v715_v10  ;;  %v744_v38 = vld [vmem:[#allocation9 + $0x210] sm:$0xff]  ;;  %v747_v41 = vld [vmem:[#allocation9 + $0x228] sm:$0xff]  ;;  %v746_v43 = vld [vmem:[#allocation9 + $0x220] sm:$0xff] }
 0x176   :  { %v2404_v40 = vpack.c.bf16 %v744_v38, %v738_v37  ;;  %v740_v42 = vld [vmem:[#allocation9 + $0x1f0] sm:$0xff]  ;;  %v2434_v44 = vpack.c.bf16 %v747_v41, %v741_v39  ;;  %v751_v46 = vld [vmem:[#allocation9 + $0x248] sm:$0xff]  ;;  %v750_v49 = vld [vmem:[#allocation9 + $0x240] sm:$0xff] }
 0x177   :  { %2369 = vmatpush3.bf16.msra.mxu0 %v2368_v15  ;;  %v717_v15 = vld [vmem:[#allocation9 + $0x138] sm:$0xff]  ;;  %2395 = vmatprep.subr.bf16.mxu1 %v2394_v12  ;;  %v2436_v45 = vpack.c.bf16 %v746_v43, %v740_v42  ;;  %v756_v50 = vld [vmem:[#allocation9 + $0x270] sm:$0xff]  ;;  %v759_v53 = vld [vmem:[#allocation9 + $0x288] sm:$0xff] }
 0x178   :  { %2371 = vmatprep.subr.bf16.mxu0 %v2370_v16  ;;  %v2396_v16 = vpack.c.bf16 %v720_v14, %v714_v13  ;;  %v2426_v20 = vpack.c.bf16 %v723_v17, %v717_v15  ;;  %v753_v51 = vld [vmem:[#allocation9 + $0x258] sm:$0xff]  ;;  %v2408_v52 = vpack.c.bf16 %v756_v50, %v750_v49  ;;  %v752_v54 = vld [vmem:[#allocation9 + $0x250] sm:$0xff]  ;;  %v758_v55 = vld [vmem:[#allocation9 + $0x280] sm:$0xff] }
 0x179   :  { %v2438_v56 = vpack.c.bf16 %v759_v53, %v753_v51  ;;  %v2440_v57 = vpack.c.bf16 %v758_v55, %v752_v54  ;;  %v763_v58 = vld [vmem:[#allocation9 + $0x2a8] sm:$0xff]  ;;  %v762_v61 = vld [vmem:[#allocation9 + $0x2a0] sm:$0xff]  ;;  %v768_v62 = vld [vmem:[#allocation9 + $0x2d0] sm:$0xff] }
 0x17a   :  { %2397 = vmatpush1.bf16.msra.mxu1 %v2396_v16  ;;  %v2412_v63 = vpack.c.bf16 %v768_v62, %v762_v61  ;;  %v765_v1 = vld [vmem:[#allocation9 + $0x2b8] sm:$0xff]  ;;  %v771_v2 = vld [vmem:[#allocation9 + $0x2e8] sm:$0xff]  ;;  %v764_v3 = vld [vmem:[#allocation9 + $0x2b0] sm:$0xff] }
 0x17b   :  { %2373 = vmatpush3.bf16.msra.mxu0 %v2372_v21  ;;  %v2428_v21 = vpack.c.bf16 %v722_v19, %v716_v18  ;;  %v2442_v4 = vpack.c.bf16 %v771_v2, %v765_v1  ;;  %v770_v5 = vld [vmem:[#allocation9 + $0x2e0] sm:$0xff]  ;;  %v683_v7 = vld [vmem:[#allocation9 + $0x28] sm:$0xff] }
 0x17c   :  { %2375 = vmatprep.subr.bf16.mxu0 %v2374_v22  ;;  %v727_v22 = vld [vmem:[#allocation9 + $0x188] sm:$0xff]  ;;  %v2444_v6 = vpack.c.bf16 %v770_v5, %v764_v3  ;;  %v1143_v10 = vld [vmem:[#allocation11 + $0x80] sm:$0xff] }
 0x17d   :  { %v2398_v24 = vpack.c.bf16 %v733_v23, %v727_v22  ;;  %v1144_v11 = vld [vmem:[#allocation11 + $0x88] sm:$0xff]  ;;  %v637_v23 = vlaneseq }
 0x17e   :  { %v2478_v12 = vpack.c.bf16 %v1144_v11, %v1143_v10 }
 0x17f   :  { %2377 = vmatpush3.bf16.msra.mxu0 %v2376_v27  ;;  %v729_v27 = vld [vmem:[#allocation9 + $0x198] sm:$0xff]  ;;  %2399 = vmatprep.subr.bf16.mxu1 %v2398_v24 }
 0x180   :  { %2379 = vmatprep.subr.bf16.mxu0 %v2378_v28  ;;  %v2400_v28 = vpack.c.bf16 %v732_v26, %v726_v25 }
 0x182   :  { %2401 = vmatpush1.bf16.msra.mxu1 %v2400_v28 }
 0x183   :  { %2381 = vmatpush3.bf16.msra.mxu0 %v2380_v31  ;;  %v734_v31 = vld [vmem:[#allocation9 + $0x1c0] sm:$0xff] }
 0x184   :  { %2415 = vmatprep.subr.bf16.mxu0 %v2414_v47  ;;  %v757_v47 = vld [vmem:[#allocation9 + $0x278] sm:$0xff] }
 0x186   :  { %622 = vmatmul.mubr.f32.vlgmr.msra.gmra.mrb[6].mxu0 %v295_v32  ;;  %v2430_v32 = vpack.c.bf16 %v735_v29, %v729_v27 }
 0x187   :  { %626 = vmatprep.mubr.f32.mxu0 %v299_v33  ;;  %2417 = vmatpush1.bf16.msra.mxu0 %v2416_v48  ;;  %v2432_v33 = vpack.c.bf16 %v734_v31, %v728_v30  ;;  %v2406_v48 = vpack.c.bf16 %v757_v47, %v751_v46  ;;  %v3319_v31 = vand.u32 127, %v637_v23 }
 0x188   :  { %2419 = vmatprep.subr.bf16.mxu0 %v2418_v59  ;;  %v769_v59 = vld [vmem:[#allocation9 + $0x2d8] sm:$0xff] }
 0x189   :  { %vm643_vm0 = vcmp.ge.s32.totalorder %v3319_v31, 20  ;;  %vm645_vm1 = vcmp.ge.s32.totalorder %v3319_v31, 40  ;;  %vm648_vm2 = vcmp.ge.s32.totalorder %v3319_v31, 60  ;;  %vm651_vm3 = vcmp.ge.s32.totalorder %v3319_v31, 80 }
 0x18a   :  { %627 = vmatmul.mubr.f32.gmra.mrb[8].mxu0 %v296_v34  ;;  %v739_v34 = vld [vmem:[#allocation9 + $0x1e8] sm:$0xff]  ;;  %vm654_vm4 = vcmp.ge.s32.totalorder %v3319_v31, 100 }
 0x18b   :  { %631 = vmatprep.mubr.f32.mxu0 %v300_v35  ;;  %2421 = vmatpush1.bf16.msra.mxu0 %v2420_v60  ;;  %v745_v35 = vld [vmem:[#allocation9 + $0x218] sm:$0xff]  ;;  %v2410_v60 = vpack.c.bf16 %v769_v59, %v763_v58 }
 0x18c   :  { %2423 = vmatprep.subr.bf16.mxu0 %v2422_v8  ;;  %v689_v8 = vld [vmem:[#allocation9 + $0x58] sm:$0xff] }
 0x18e   :  { %632 = vmatmul.mubr.f32.gmra.mrb[10].mxu0 %v297_v36  ;;  %v2402_v36 = vpack.c.bf16 %v745_v35, %v739_v34 }
 0x18f   :  { %921 = vmatprep.mubr.f32.mxu0 %v3054_v0  ;;  %2425 = vmatpush1.bf16.msra.mxu0 %v2424_v9  ;;  %v2446_v9 = vpack.c.bf16 %v689_v8, %v683_v7 }
 0x190   :  { %2427 = vmatprep.subr.bf16.mxu0 %v2426_v20  ;;  %2403 = vmatprep.subr.bf16.mxu1 %v2402_v36  ;;  %v3055_v36 = vmov 0  }
 0x191   :  { %2405 = vmatpush1.bf16.msra.mxu1 %v2404_v40  ;;  %v644_v37 = vsel %vm643_vm0, 1, %v3055_v36  ;;  %v646_v38 = vsel %vm645_vm1, 1, %v3055_v36  ;;  %v649_v40 = vsel %vm648_vm2, 1, %v3055_v36  ;;  %v652_v42 = vsel %vm651_vm3, 1, %v3055_v36 }
 0x192   :  { %2407 = vmatprep.subr.bf16.mxu1 %v2406_v48  ;;  %v647_v39 = vadd.s32 %v646_v38, %v644_v37  ;;  %v3326_v48 = vshrl.u32 %v637_v23, 7  ;;  %v700_v23 = vld [vmem:[#allocation9 + $0xb0] sm:$0xff]  ;;  %v1130_v38 = vld [vmem:[#allocation11 + $0x18] sm:$0xff] }
 0x193   :  { %2429 = vmatpush1.bf16.msra.mxu0 %v2428_v21  ;;  %v1129_v37 = vld [vmem:[#allocation11 + $0x10] sm:$0xff] }
 0x194   :  { %2431 = vmatprep.subr.bf16.mxu0 %v2430_v32  ;;  %v650_v41 = vadd.s32 %v649_v40, %v647_v39  ;;  %v3329_v51 = vadd.s32 8, %v3326_v48  ;;  %v676_v11 = vsub.s32 0, %v3326_v48  ;;  %v1147_v39 = vld [vmem:[#allocation11 + $0xa0] sm:$0xff]  ;;  %v1148_v40 = vld [vmem:[#allocation11 + $0xa8] sm:$0xff] }
 0x195   :  { %2409 = vmatpush1.bf16.msra.mxu1 %v2408_v52 }
 0x196   :  { %2411 = vmatprep.subr.bf16.mxu1 %v2410_v60  ;;  %v653_v43 = vadd.s32 %v652_v42, %v650_v41 }
 0x197   :  { %2433 = vmatpush1.bf16.msra.mxu0 %v2432_v33 }
 0x198   :  { %2435 = vmatprep.subr.bf16.mxu0 %v2434_v44  ;;  %v655_v44 = vsel %vm654_vm4, 1, %v3055_v36 }
 0x199   :  { %2413 = vmatpush1.bf16.msra.mxu1 %v2412_v63 }
 0x19a   :  { %2447 = vmatprep.subr.bf16.mxu1 %v2446_v9  ;;  %v672_v9 = vld [vmem:[#allocation14] sm:$0x1] }
 0x19b   :  { %2437 = vmatpush1.bf16.msra.mxu0 %v2436_v45  ;;  %v656_v45 = vadd.s32 %v655_v44, %v653_v43  ;;  %v718_v43 = vld [vmem:[#allocation9 + $0x140] sm:$0xff]  ;;  %v724_v44 = vld [vmem:[#allocation9 + $0x170] sm:$0xff] }
 0x19c   :  { %2439 = vmatprep.subr.bf16.mxu0 %v2438_v56  ;;  %v3334_v56 = vadd.s32 16, %v3326_v48 }
 0x19d   :  { %v657_v50 = vsub.s32 24, %v656_v45  ;;  %v731_v45 = vld [vmem:[#allocation9 + $0x1a8] sm:$0xff] }
 0x19f   :  { %2441 = vmatpush1.bf16.msra.mxu0 %v2440_v57  ;;  %vm658_vm5 = vcmp.lt.s32.totalorder %v3326_v48, %v657_v50  ;;  %vm659_vm6 = vcmp.lt.s32.totalorder %v3329_v51, %v657_v50  ;;  %vm660_vm7 = vcmp.lt.s32.totalorder %v3334_v56, %v657_v50  ;;  %v1131_v50 = vld [vmem:[#allocation11 + $0x20] sm:$0xff] }
 0x1a0   :  { %2443 = vmatprep.subr.bf16.mxu0 %v2442_v4 }
 0x1a3   :  { %2445 = vmatpush1.bf16.msra.mxu0 %v2444_v6 }
 0x1a4   :  { %2479 = vmatprep.subr.bf16.mxu0 %v2478_v12  ;;  %v682_v12 = vld [vmem:[#allocation9 + $0x20] sm:$0xff] }
 0x239   :  { %v1952_v13 = vpop.f32.mrb[0].mxu0 }
 0x23a   :  { %v1993_v14 = vpop.f32.mrb[0].mxu1  ;;  %v1953_v15 = vpop.f32.mrb[1].mxu0 }
 0x23b   :  { %v1954_v16 = vadd.f32 %v1953_v15, %v1952_v13  ;;  %v1994_v17 = vpop.f32.mrb[1].mxu1  ;;  %v688_v13 = vld [vmem:[#allocation9 + $0x50] sm:$0xff]  ;;  %v701_v15 = vld [vmem:[#allocation9 + $0xb8] sm:$0xff] }
 0x23c   :  { %v1995_v18 = vadd.f32 %v1994_v17, %v1993_v14  ;;  %v695_v14 = vld [vmem:[#allocation9 + $0x88] sm:$0xff]  ;;  %v1127_v17 = vld [vmem:[#allocation11] sm:$0xff] }
 0x23d   :  { %v1955_v19 = vpop.f32.mrb[2].mxu0 }
 0x23e   :  { %v544_v20 = vadd.f32 %v1995_v18, %v1954_v16  ;;  %v1996_v21 = vpop.f32.mrb[2].mxu1  ;;  %v1956_v22 = vpop.f32.mrb[3].mxu0  ;;  %v1128_v18 = vld [vmem:[#allocation11 + $0x8] sm:$0xff] }
 0x23f   :  { %v1957_v24 = vadd.f32 %v1956_v22, %v1955_v19  ;;  %v1997_v25 = vpop.f32.mrb[3].mxu1  ;;  %v2448_v19 = vpack.c.bf16 %v688_v13, %v682_v12  ;;  %v694_v22 = vld [vmem:[#allocation9 + $0x80] sm:$0xff] }
 0x240   :  { %v1998_v26 = vadd.f32 %v1997_v25, %v1996_v21  ;;  %v2450_v21 = vpack.c.bf16 %v701_v15, %v695_v14  ;;  %v713_v25 = vld [vmem:[#allocation9 + $0x118] sm:$0xff]  ;;  %v1135_v13 = vld [vmem:[#allocation11 + $0x40] sm:$0xff]  ;;  %v1136_v14 = vld [vmem:[#allocation11 + $0x48] sm:$0xff] }
 0x241   :  { %v1958_v27 = vpop.f32.mrb[4].mxu0  ;;  %v1153_v15 = vld [vmem:[#allocation11 + $0xd0] sm:$0xff] }
 0x242   :  { %v549_v28 = vadd.f32 %v1998_v26, %v1957_v24  ;;  %v1999_v29 = vpop.f32.mrb[4].mxu1  ;;  %v1959_v30 = vpop.f32.mrb[5].mxu0  ;;  %v707_v24 = vld [vmem:[#allocation9 + $0xe8] sm:$0xff]  ;;  %v2480_v26 = vpack.c.bf16 %v1128_v18, %v1127_v17 }
 0x243   :  { %v1960_v32 = vadd.f32 %v1959_v30, %v1958_v27  ;;  %v2000_v33 = vpop.f32.mrb[5].mxu1  ;;  %v1145_v27 = vld [vmem:[#allocation11 + $0x90] sm:$0xff]  ;;  %v2454_v30 = vpack.c.bf16 %v713_v25, %v707_v24  ;;  %v773_v24 = vld [vmem:[#allocation9 + $0x2f8] sm:$0xff] }
 0x244   :  { %v2001_v34 = vadd.f32 %v2000_v33, %v1999_v29  ;;  %v2452_v29 = vpack.c.bf16 %v700_v23, %v694_v22  ;;  %v712_v33 = vld [vmem:[#allocation9 + $0x110] sm:$0xff]  ;;  %v767_v22 = vld [vmem:[#allocation9 + $0x2c8] sm:$0xff]  ;;  %v2496_v23 = vpack.c.bf16 %v1136_v14, %v1135_v13  ;;  %v1167_v14 = vld [vmem:[#allocation11 + $0x140] sm:$0xff] }
 0x246   :  { %v554_v35 = vadd.f32 %v2001_v34, %v1960_v32  ;;  %v706_v32 = vld [vmem:[#allocation9 + $0xe0] sm:$0xff]  ;;  %v719_v34 = vld [vmem:[#allocation9 + $0x148] sm:$0xff] }
 0x247   :  { %v2456_v41 = vpack.c.bf16 %v712_v33, %v706_v32  ;;  %v2474_v32 = vpack.c.bf16 %v773_v24, %v767_v22  ;;  %v766_v33 = vld [vmem:[#allocation9 + $0x2c0] sm:$0xff]  ;;  %v1170_v22 = vld [vmem:[#allocation11 + $0x158] sm:$0xff]  ;;  %v1188_v24 = vld [vmem:[#allocation11 + $0x1e8] sm:$0xff] }
 0x259   :  { %v2034_v46 = vpop.f32.mrb[6].mxu0 }
 0x25a   :  { %v2035_v47 = vpop.f32.mrb[7].mxu0 }
 0x25b   :  { %v2036_v49 = vadd.f32 %v2035_v47, %v2034_v46  ;;  %v2484_v46 = vpack.c.bf16 %v1130_v38, %v1129_v37  ;;  %v737_v47 = vld [vmem:[#allocation9 + $0x1d8] sm:$0xff]  ;;  %v1176_v37 = vld [vmem:[#allocation11 + $0x188] sm:$0xff] }
 0x25d   :  { %v624_v52 = vadd.f32 %v2036_v49, %v544_v20  ;;  %v2037_v53 = vpop.f32.mrb[8].mxu0  ;;  %v2486_v49 = vpack.c.bf16 %v1148_v40, %v1147_v39  ;;  %v1139_v39 = vld [vmem:[#allocation11 + $0x60] sm:$0xff]  ;;  %v1140_v40 = vld [vmem:[#allocation11 + $0x68] sm:$0xff] }
 0x25e   :  { %v2038_v54 = vpop.f32.mrb[9].mxu0 }
 0x25f   :  { %v2039_v55 = vadd.f32 %v2038_v54, %v2037_v53  ;;  %v661_v60 = vsel %vm658_vm5, %v624_v52, -1e+30  ;;  %v1132_v52 = vld [vmem:[#allocation11 + $0x28] sm:$0xff]  ;;  %v1149_v53 = vld [vmem:[#allocation11 + $0xb0] sm:$0xff]  ;;  %v1150_v54 = vld [vmem:[#allocation11 + $0xb8] sm:$0xff] }
 0x261   :  { %v629_v57 = vadd.f32 %v2039_v55, %v549_v28  ;;  %v2040_v58 = vpop.f32.mrb[10].mxu0  ;;  %v1146_v28 = vld [vmem:[#allocation11 + $0x98] sm:$0xff]  ;;  %v2460_v55 = vpack.c.bf16 %v724_v44, %v718_v43 }
 0x262   :  { %v2041_v59 = vpop.f32.mrb[11].mxu0  ;;  %v2482_v36 = vpack.c.bf16 %v1146_v28, %v1145_v27  ;;  %v1138_v27 = vld [vmem:[#allocation11 + $0x58] sm:$0xff]  ;;  %v1155_v28 = vld [vmem:[#allocation11 + $0xe0] sm:$0xff] }
 0x263   :  { %v662_v61 = vsel %vm659_vm6, %v629_v57, -1e+30  ;;  %v2042_v62 = vadd.f32 %v2041_v59, %v2040_v58  ;;  %v2462_v57 = vpack.c.bf16 %v737_v47, %v731_v45  ;;  %v730_v58 = vld [vmem:[#allocation9 + $0x1a0] sm:$0xff]  ;;  %v736_v59 = vld [vmem:[#allocation9 + $0x1d0] sm:$0xff] }
 0x264   :  { %v664_v63 = vmax.f32 %v661_v60, %v662_v61  ;;  %v743_v60 = vld [vmem:[#allocation9 + $0x208] sm:$0xff]  ;;  %v2488_v61 = vpack.c.bf16 %v1132_v52, %v1131_v50  ;;  %v1159_v45 = vld [vmem:[#allocation11 + $0x100] sm:$0xff]  ;;  %v1177_v47 = vld [vmem:[#allocation11 + $0x190] sm:$0xff] }
 0x265   :  { %v634_v1 = vadd.f32 %v2042_v62, %v554_v35  ;;  %v725_v35 = vld [vmem:[#allocation9 + $0x178] sm:$0xff] }
 0x266   :  { %v2458_v42 = vpack.c.bf16 %v725_v35, %v719_v34  ;;  %v749_v62 = vld [vmem:[#allocation9 + $0x238] sm:$0xff]  ;;  %v772_v34 = vld [vmem:[#allocation9 + $0x2f0] sm:$0xff]  ;;  %v1175_v35 = vld [vmem:[#allocation11 + $0x180] sm:$0xff] }
 0x267   :  { %v663_v2 = vsel %vm660_vm7, %v634_v1, -1e+30  ;;  %v1133_v1 = vld [vmem:[#allocation11 + $0x30] sm:$0xff]  ;;  %v2476_v43 = vpack.c.bf16 %v772_v34, %v766_v33  ;;  %v2510_v44 = vpack.c.bf16 %v1176_v37, %v1175_v35  ;;  %v1178_v50 = vld [vmem:[#allocation11 + $0x198] sm:$0xff]  ;;  %v1208_v37 = vld [vmem:[#allocation11 + $0x288] sm:$0xff] }
 0x268   :  { %v665_v3 = vmax.f32 %v664_v63, %v663_v2  ;;  %v2490_v63 = vpack.c.bf16 %v1150_v54, %v1149_v53  ;;  %v1134_v2 = vld [vmem:[#allocation11 + $0x38] sm:$0xff]  ;;  %v1141_v53 = vld [vmem:[#allocation11 + $0x70] sm:$0xff] }
 0x269   :  { %v1142_v54 = vld [vmem:[#allocation11 + $0x78] sm:$0xff]  ;;  %v1173_v33 = vld [vmem:[#allocation11 + $0x170] sm:$0xff] }
 0x26a   :  { %v666_v4 = vrot.slane %v665_v3, 4  ;;  %v1174_v34 = vld [vmem:[#allocation11 + $0x178] sm:$0xff] }
 0x26b   :  { %v2540_v35 = vpack.c.bf16 %v1174_v34, %v1173_v33  ;;  %v1215_v33 = vld [vmem:[#allocation11 + $0x2c0] sm:$0xff]  ;;  %v1216_v34 = vld [vmem:[#allocation11 + $0x2c8] sm:$0xff] }
 0x26c   :  { %v667_v5 = vmax.f32 %v665_v3, %v666_v4  ;;  %v1151_v3 = vld [vmem:[#allocation11 + $0xc0] sm:$0xff]  ;;  %v1152_v4 = vld [vmem:[#allocation11 + $0xc8] sm:$0xff] }
 0x26d   :  { %v2494_v12 = vpack.c.bf16 %v1152_v4, %v1151_v3  ;;  %v1164_v3 = vld [vmem:[#allocation11 + $0x128] sm:$0xff]  ;;  %v1181_v4 = vld [vmem:[#allocation11 + $0x1b0] sm:$0xff] }
 0x26e   :  { %v668_v6 = vrot.slane %v667_v5, 2 }
 0x270   :  { %v669_v7 = vmax.f32 %v667_v5, %v668_v6  ;;  %v2464_v5 = vpack.c.bf16 %v736_v59, %v730_v58  ;;  %v2466_v6 = vpack.c.bf16 %v749_v62, %v743_v60  ;;  %v1161_v58 = vld [vmem:[#allocation11 + $0x110] sm:$0xff]  ;;  %v1162_v59 = vld [vmem:[#allocation11 + $0x118] sm:$0xff]  ;;  %v2508_v60 = vpack.c.bf16 %v1142_v54, %v1141_v53  ;;  %v1180_v62 = vld [vmem:[#allocation11 + $0x1a8] sm:$0xff] }
 0x271   :  { %v1192_v53 = vld [vmem:[#allocation11 + $0x208] sm:$0xff] }
 0x272   :  { %v670_v8 = vrot.slane %v669_v7, 1 }
 0x274   :  { %v671_v10 = vmax.f32 %v669_v7, %v670_v8  ;;  %v742_v7 = vld [vmem:[#allocation9 + $0x200] sm:$0xff]  ;;  %v748_v8 = vld [vmem:[#allocation9 + $0x230] sm:$0xff] }
 0x275   :  { %v2468_v17 = vpack.c.bf16 %v748_v8, %v742_v7  ;;  %v1165_v8 = vld [vmem:[#allocation11 + $0x130] sm:$0xff] }
 0x276   :  { %v673_v16 = vadd.f32 %v672_v9, %v671_v10  ;;  %v755_v9 = vld [vmem:[#allocation9 + $0x268] sm:$0xff]  ;;  %v2492_v10 = vpack.c.bf16 %v1134_v2, %v1133_v1  ;;  %v1163_v2 = vld [vmem:[#allocation11 + $0x120] sm:$0xff] }
 0x278   :  { %v3338_v20 = vrot.slane %v673_v16, %v676_v11  ;;  %v761_v11 = vld [vmem:[#allocation9 + $0x298] sm:$0xff] }
 0x279   :  { %v1154_v16 = vld [vmem:[#allocation11 + $0xd8] sm:$0xff]  ;;  %v2470_v18 = vpack.c.bf16 %v761_v11, %v755_v9  ;;  %v1184_v11 = vld [vmem:[#allocation11 + $0x1c8] sm:$0xff] }
 0x27a   :  { %839 = vmatmul.mubr.f32.vlgmr.msra.gmra.mrb[6].mxu1 %v3338_v20  ;;  %922 = vmatmul.mubr.f32.vlgmr.msra.gmra.mrb[12].mxu0 %v3338_v20  ;;  %v2498_v25 = vpack.c.bf16 %v1154_v16, %v1153_v15  ;;  %v1166_v9 = vld [vmem:[#allocation11 + $0x138] sm:$0xff]  ;;  %v1168_v15 = vld [vmem:[#allocation11 + $0x148] sm:$0xff]  ;;  %v1185_v16 = vld [vmem:[#allocation11 + $0x1d0] sm:$0xff] }
 0x27b   :  { %2449 = vmatpush1.bf16.msra.mxu1 %v2448_v19  ;;  %844 = vmatprep.mubr.f32.mxu1 %v3054_v0  ;;  %v754_v19 = vld [vmem:[#allocation9 + $0x260] sm:$0xff] }
 0x27c   :  { %927 = vmatprep.mubr.f32.mxu0 %v3054_v0  ;;  %2451 = vmatprep.subr.bf16.mxu1 %v2450_v21  ;;  %v760_v21 = vld [vmem:[#allocation9 + $0x290] sm:$0xff] }
 0x27d   :  { %2481 = vmatpush3.bf16.msra.mxu0 %v2480_v26  ;;  %v1137_v26 = vld [vmem:[#allocation11 + $0x50] sm:$0xff] }
 0x27e   :  { %845 = vmatmul.mubr.f32.gmra.mrb[8].mxu1 %v3338_v20  ;;  %928 = vmatmul.mubr.f32.gmra.mrb[14].mxu0 %v3338_v20 }
 0x27f   :  { %2453 = vmatpush1.bf16.msra.mxu1 %v2452_v29  ;;  %850 = vmatprep.mubr.f32.mxu1 %v3054_v0  ;;  %v1156_v29 = vld [vmem:[#allocation11 + $0xe8] sm:$0xff] }
 0x280   :  { %933 = vmatprep.mubr.f32.mxu0 %v3054_v0  ;;  %2455 = vmatprep.subr.bf16.mxu1 %v2454_v30  ;;  %v2472_v30 = vpack.c.bf16 %v760_v21, %v754_v19  ;;  %v2502_v38 = vpack.c.bf16 %v1156_v29, %v1155_v28  ;;  %v1169_v21 = vld [vmem:[#allocation11 + $0x150] sm:$0xff]  ;;  %v1190_v29 = vld [vmem:[#allocation11 + $0x1f8] sm:$0xff] }
 0x281   :  { %2483 = vmatprep.subr.bf16.mxu0 %v2482_v36  ;;  %v2500_v36 = vpack.c.bf16 %v1138_v27, %v1137_v26  ;;  %v1171_v26 = vld [vmem:[#allocation11 + $0x160] sm:$0xff]  ;;  %v1172_v27 = vld [vmem:[#allocation11 + $0x168] sm:$0xff]  ;;  %v1189_v28 = vld [vmem:[#allocation11 + $0x1f0] sm:$0xff] }
 0x282   :  { %851 = vmatmul.mubr.f32.gmra.mrb[10].mxu1 %v3338_v20  ;;  %934 = vmatmul.mubr.f32.gmra.mrb[16].mxu0 %v3338_v20 }
 0x283   :  { %2457 = vmatpush1.bf16.msra.mxu1 %v2456_v41  ;;  %1004 = vmatprep.mubr.f32.mxu1 %v3054_v0  ;;  %v1157_v41 = vld [vmem:[#allocation11 + $0xf0] sm:$0xff] }
 0x284   :  { %2459 = vmatprep.subr.bf16.mxu1 %v2458_v42  ;;  %2485 = vmatpush3.bf16.msra.mxu0 %v2484_v46  ;;  %v1158_v42 = vld [vmem:[#allocation11 + $0xf8] sm:$0xff]  ;;  %v1160_v46 = vld [vmem:[#allocation11 + $0x108] sm:$0xff] }
 0x285   :  { %2487 = vmatprep.subr.bf16.mxu0 %v2486_v49  ;;  %v2504_v49 = vpack.c.bf16 %v1140_v40, %v1139_v39  ;;  %v2506_v52 = vpack.c.bf16 %v1158_v42, %v1157_v41  ;;  %v3357_v39 = vmul.u32 35, %v3326_v48  ;;  %v3360_v40 = vmul.u32 35, %v3329_v51 }
 0x286   :  { %v1023_v41 = vadd.s32 128, %v3319_v31 }
 0x287   :  { %2461 = vmatpush1.bf16.msra.mxu1 %v2460_v55  ;;  %v2512_v55 = vpack.c.bf16 %v1160_v46, %v1159_v45  ;;  %v3364_v42 = vadd.s32 35, %v3357_v39  ;;  %v3371_v45 = vadd.s32 256, %v3319_v31  ;;  %v3376_v48 = vadd.s32 35, %v3360_v40 }
 0x288   :  { %2463 = vmatprep.subr.bf16.mxu1 %v2462_v57  ;;  %2489 = vmatpush3.bf16.msra.mxu0 %v2488_v61  ;;  %v2514_v57 = vpack.c.bf16 %v1178_v50, %v1177_v47  ;;  %v1179_v61 = vld [vmem:[#allocation11 + $0x1a0] sm:$0xff]  ;;  %vm1032_vm8 = vcmp.ge.s32.totalorder %v1023_v41, %v3357_v39  ;;  %vm1031_vm12 = vcmp.ge.s32.totalorder %v3319_v31, %v3357_v39  ;;  %v1201_v47 = vld [vmem:[#allocation11 + $0x250] sm:$0xff] }
 0x289   :  { %2491 = vmatprep.subr.bf16.mxu0 %v2490_v63  ;;  %v2516_v63 = vpack.c.bf16 %v1162_v59, %v1161_v58  ;;  %v2518_v1 = vpack.c.bf16 %v1180_v62, %v1179_v61  ;;  %vm1053_vm9 = vcmp.lt.s32.totalorder %v1023_v41, %v3364_v42  ;;  %vm1052_vm13 = vcmp.lt.s32.totalorder %v3319_v31, %v3364_v42  ;;  %v1210_v58 = vld [vmem:[#allocation11 + $0x298] sm:$0xff]  ;;  %v1219_v50 = vld [vmem:[#allocation11 + $0x2e0] sm:$0xff] }
 0x28a   :  { %vm3387_vm14 = vmand %vm1032_vm8, %vm1053_vm9  ;;  %vm1033_vm15 = vcmp.ge.s32.totalorder %v3371_v45, %v3357_v39  ;;  %vm1054_vm0 = vcmp.lt.s32.totalorder %v3371_v45, %v3364_v42  ;;  %vm1038_vm2 = vcmp.ge.s32.totalorder %v1023_v41, %v3360_v40  ;;  %vm1059_vm3 = vcmp.lt.s32.totalorder %v1023_v41, %v3376_v48  ;;  %v1222_v59 = vld [vmem:[#allocation11 + $0x2f8] sm:$0xff] }
 0x28b   :  { %2465 = vmatpush1.bf16.msra.mxu1 %v2464_v5  ;;  %v1182_v5 = vld [vmem:[#allocation11 + $0x1b8] sm:$0xff]  ;;  %vm3401_vm4 = vmand %vm1031_vm12, %vm1052_vm13  ;;  %vm1058_vm12 = vcmp.lt.s32.totalorder %v3319_v31, %v3376_v48 }
 0x28c   :  { %2467 = vmatprep.subr.bf16.mxu1 %v2466_v6  ;;  %2493 = vmatpush3.bf16.msra.mxu0 %v2492_v10  ;;  %v2520_v6 = vpack.c.bf16 %v1164_v3, %v1163_v2  ;;  %v2522_v7 = vpack.c.bf16 %v1182_v5, %v1181_v4  ;;  %v1183_v10 = vld [vmem:[#allocation11 + $0x1c0] sm:$0xff]  ;;  %vm3407_vm7 = vmand %vm1033_vm15, %vm1054_vm0  ;;  %vm1039_vm15 = vcmp.ge.s32.totalorder %v3371_v45, %v3360_v40  ;;  %v1193_v5 = vld [vmem:[#allocation11 + $0x210] sm:$0xff] }
 0x28d   :  { %2495 = vmatprep.subr.bf16.mxu0 %v2494_v12  ;;  %v2524_v12 = vpack.c.bf16 %v1166_v9, %v1165_v8  ;;  %v2526_v13 = vpack.c.bf16 %v1184_v11, %v1183_v10  ;;  %vm1060_vm0 = vcmp.lt.s32.totalorder %v3371_v45, %v3376_v48  ;;  %v1211_v8 = vld [vmem:[#allocation11 + $0x2a0] sm:$0xff]  ;;  %v1212_v9 = vld [vmem:[#allocation11 + $0x2a8] sm:$0xff] }
 0x28f   :  { %2469 = vmatpush1.bf16.msra.mxu1 %v2468_v17  ;;  %v1186_v17 = vld [vmem:[#allocation11 + $0x1d8] sm:$0xff] }
 0x290   :  { %2471 = vmatprep.subr.bf16.mxu1 %v2470_v18  ;;  %2497 = vmatpush3.bf16.msra.mxu0 %v2496_v23  ;;  %v2528_v18 = vpack.c.bf16 %v1168_v15, %v1167_v14  ;;  %v2530_v19 = vpack.c.bf16 %v1186_v17, %v1185_v16  ;;  %v1187_v23 = vld [vmem:[#allocation11 + $0x1e0] sm:$0xff]  ;;  %v2550_v17 = vpack.c.bf16 %v1212_v9, %v1211_v8  ;;  %v1479_v8 = vld [vmem:[#allocation12 + $0x10] sm:$0xff]  ;;  %v1480_v9 = vld [vmem:[#allocation12 + $0x18] sm:$0xff] }
 0x291   :  { %2499 = vmatprep.subr.bf16.mxu0 %v2498_v25  ;;  %v2532_v25 = vpack.c.bf16 %v1170_v22, %v1169_v21  ;;  %v1213_v22 = vld [vmem:[#allocation11 + $0x2b0] sm:$0xff]  ;;  %v2578_v10 = vpack.c.bf16 %v1480_v9, %v1479_v8  ;;  %v1484_v14 = vld [vmem:[#allocation12 + $0x38] sm:$0xff] }
 0x292   :  { %v1488_v21 = vld [vmem:[#allocation12 + $0x58] sm:$0xff] }
 0x293   :  { %2473 = vmatpush1.bf16.msra.mxu1 %v2472_v30  ;;  %v2536_v30 = vpack.c.bf16 %v1172_v27, %v1171_v26 }
 0x294   :  { %2475 = vmatprep.subr.bf16.mxu1 %v2474_v32  ;;  %2501 = vmatpush3.bf16.msra.mxu0 %v2500_v36  ;;  %v2538_v32 = vpack.c.bf16 %v1190_v29, %v1189_v28  ;;  %v1207_v36 = vld [vmem:[#allocation11 + $0x280] sm:$0xff] }
 0x295   :  { %2503 = vmatprep.subr.bf16.mxu0 %v2502_v38  ;;  %v2542_v38 = vpack.c.bf16 %v1208_v37, %v1207_v36  ;;  %v2558_v36 = vpack.c.bf16 %v1216_v34, %v1215_v33  ;;  %v1199_v37 = vld [vmem:[#allocation11 + $0x240] sm:$0xff]  ;;  %v1591_v33 = vld [vmem:[#allocation12 + $0x98] sm:$0xff] }
 0x297   :  { %2477 = vmatpush1.bf16.msra.mxu1 %v2476_v43  ;;  %v1025_v43 = vadd.s32 384, %v3319_v31 }
 0x298   :  { %2511 = vmatprep.subr.bf16.mxu1 %v2510_v44  ;;  %2505 = vmatpush3.bf16.msra.mxu0 %v2504_v49  ;;  %v3368_v44 = vmul.u32 35, %v3334_v56  ;;  %v1202_v49 = vld [vmem:[#allocation11 + $0x258] sm:$0xff] }
 0x299   :  { %2507 = vmatprep.subr.bf16.mxu0 %v2506_v52  ;;  %vm1034_vm10 = vcmp.ge.s32.totalorder %v1025_v43, %v3357_v39  ;;  %vm1055_vm11 = vcmp.lt.s32.totalorder %v1025_v43, %v3364_v42  ;;  %vm1040_vm5 = vcmp.ge.s32.totalorder %v1025_v43, %v3360_v40  ;;  %vm1061_vm6 = vcmp.lt.s32.totalorder %v1025_v43, %v3376_v48  ;;  %v1191_v52 = vld [vmem:[#allocation11 + $0x200] sm:$0xff] }
 0x29a   :  { %1005 = vmatmul.mubr.f32.vlgmr.msra.gmra.mrb[12].mxu1 %v3338_v20  ;;  %v3385_v51 = vadd.s32 35, %v3368_v44  ;;  %vm3395_vm1 = vmand %vm1034_vm10, %vm1055_vm11  ;;  %vm1044_vm8 = vcmp.ge.s32.totalorder %v1023_v41, %v3368_v44  ;;  %vm1037_vm11 = vcmp.ge.s32.totalorder %v3319_v31, %v3360_v40  ;;  %v2544_v62 = vpack.c.bf16 %v1192_v53, %v1191_v52  ;;  %v1220_v52 = vld [vmem:[#allocation11 + $0x2e8] sm:$0xff] }
 0x29b   :  { %1010 = vmatprep.mubr.f32.mxu1 %v3054_v0  ;;  %2513 = vmatpush3.bf16.msra.mxu1 %v2512_v55  ;;  %vm3413_vm10 = vmand %vm1038_vm2, %vm1059_vm3  ;;  %v3635_v55 = vmov 0  ;;  %vm1090_vm3 = vcmp.lt.s32.totalorder %v3334_v56, 21  ;;  %v2564_v53 = vpack.c.bf16 %v1202_v49, %v1201_v47  ;;  %v2566_v54 = vpack.c.bf16 %v1220_v52, %v1219_v50  ;;  %v1481_v56 = vld [vmem:[#allocation12 + $0x20] sm:$0xff]  ;;  %v1598_v49 = vld [vmem:[#allocation12 + $0xd0] sm:$0xff] }
 0x29c   :  { %2515 = vmatprep.subr.bf16.mxu1 %v2514_v57  ;;  %2509 = vmatpush3.bf16.msra.mxu0 %v2508_v60  ;;  %vm1065_vm9 = vcmp.lt.s32.totalorder %v1023_v41, %v3385_v51  ;;  %vm3421_vm13 = vmand %vm1040_vm5, %vm1061_vm6  ;;  %v1209_v57 = vld [vmem:[#allocation11 + $0x290] sm:$0xff]  ;;  %vm1046_vm6 = vcmp.ge.s32.totalorder %v1025_v43, %v3368_v44  ;;  %v1599_v50 = vld [vmem:[#allocation12 + $0xd8] sm:$0xff] }
 0x29d   :  { %2543 = vmatprep.subr.bf16.mxu0 %v2542_v38  ;;  %v3636_v55 = vsel %vm3421_vm13, 4294967295, %v3635_v55  ;;  %vm3429_vm2 = vmand %vm1044_vm8, %vm1065_vm9  ;;  %vm1067_vm13 = vcmp.lt.s32.totalorder %v1025_v43, %v3385_v51  ;;  %v2546_v3 = vpack.c.bf16 %v1210_v58, %v1209_v57  ;;  %vm1043_vm9 = vcmp.ge.s32.totalorder %v3319_v31, %v3368_v44  ;;  %v1200_v38 = vld [vmem:[#allocation11 + $0x248] sm:$0xff]  ;;  %v1217_v41 = vld [vmem:[#allocation11 + $0x2d0] sm:$0xff] }
 0x29e   :  { %1011 = vmatmul.mubr.f32.gmra.mrb[14].mxu1 %v3338_v20  ;;  %vm3434_vm5 = vmand %vm1037_vm11, %vm1058_vm12  ;;  %vm1064_vm11 = vcmp.lt.s32.totalorder %v3319_v31, %v3385_v51  ;;  %v1218_v43 = vld [vmem:[#allocation11 + $0x2d8] sm:$0xff]  ;;  %v1204_v57 = vld [vmem:[#allocation11 + $0x268] sm:$0xff]  ;;  %v3569_v52 = vpack.c.bf16 %v1599_v50, %v1598_v49 }
 0x29f   :  { %1016 = vmatprep.mubr.f32.mxu1 %v3054_v0  ;;  %2517 = vmatpush3.bf16.msra.mxu1 %v2516_v63  ;;  %vm3440_vm8 = vmand %vm1039_vm15, %vm1060_vm0  ;;  %vm1045_vm15 = vcmp.ge.s32.totalorder %v3371_v45, %v3368_v44  ;;  %vm1066_vm0 = vcmp.lt.s32.totalorder %v3371_v45, %v3385_v51  ;;  %v2560_v45 = vpack.c.bf16 %v1200_v38, %v1199_v37  ;;  %v1221_v58 = vld [vmem:[#allocation11 + $0x2f0] sm:$0xff] }
 0x2a0   :  { %2519 = vmatprep.subr.bf16.mxu1 %v2518_v1  ;;  %vm3456_vm12 = vmand %vm3429_vm2, %vm1090_vm3  ;;  %v2562_v46 = vpack.c.bf16 %v1218_v43, %v1217_v41  ;;  %v1205_v63 = vld [vmem:[#allocation11 + $0x270] sm:$0xff]  ;;  %v1595_v41 = vld [vmem:[#allocation12 + $0xb8] sm:$0xff] }
 0x2a1   :  { %v1594_v38 = vld [vmem:[#allocation12 + $0xb0] sm:$0xff] }
 0x2a2   :  { %1017 = vmatmul.mubr.f32.gmra.mrb[16].mxu1 %v3338_v20  ;;  %v2534_v20 = vpack.c.bf16 %v1188_v24, %v1187_v23  ;;  %v1214_v23 = vld [vmem:[#allocation11 + $0x2b8] sm:$0xff]  ;;  %v1490_v24 = vld [vmem:[#allocation12 + $0x68] sm:$0xff]  ;;  %v3561_v43 = vpack.c.bf16 %v1595_v41, %v1594_v38 }
 0x2a3   :  { %2521 = vmatpush3.bf16.msra.mxu1 %v2520_v6  ;;  %v1194_v6 = vld [vmem:[#allocation11 + $0x218] sm:$0xff]  ;;  %v2554_v29 = vpack.c.bf16 %v1214_v23, %v1213_v22  ;;  %v1489_v23 = vld [vmem:[#allocation12 + $0x60] sm:$0xff] }
 0x2a4   :  { %2523 = vmatprep.subr.bf16.mxu1 %v2522_v7  ;;  %v3056_v7 = vmov 0.0|0.0  }
 0x2a7   :  { %2525 = vmatpush3.bf16.msra.mxu1 %v2524_v12 }
 0x2a8   :  { %2527 = vmatprep.subr.bf16.mxu1 %v2526_v13  ;;  %v2548_v13 = vpack.c.bf16 %v1194_v6, %v1193_v5 }
 0x2ab   :  { %2529 = vmatpush3.bf16.msra.mxu1 %v2528_v18  ;;  %v1195_v18 = vld [vmem:[#allocation11 + $0x220] sm:$0xff] }
 0x2ac   :  { %2531 = vmatprep.subr.bf16.mxu1 %v2530_v19  ;;  %v1196_v19 = vld [vmem:[#allocation11 + $0x228] sm:$0xff] }
 0x2ad   :  { %v2552_v26 = vpack.c.bf16 %v1196_v19, %v1195_v18  ;;  %v1487_v19 = vld [vmem:[#allocation12 + $0x50] sm:$0xff] }
 0x2ae   :  { %v2590_v22 = vpack.c.bf16 %v1488_v21, %v1487_v19 }
 0x2af   :  { %2533 = vmatpush3.bf16.msra.mxu1 %v2532_v25 }
 0x2b0   :  { %2535 = vmatprep.subr.bf16.mxu1 %v2534_v20 }
 0x2b3   :  { %2537 = vmatpush3.bf16.msra.mxu1 %v2536_v30  ;;  %v1197_v30 = vld [vmem:[#allocation11 + $0x230] sm:$0xff] }
 0x2b4   :  { %2539 = vmatprep.subr.bf16.mxu1 %v2538_v32  ;;  %v1198_v32 = vld [vmem:[#allocation11 + $0x238] sm:$0xff] }
 0x2b7   :  { %2541 = vmatpush3.bf16.msra.mxu1 %v2540_v35  ;;  %v2556_v35 = vpack.c.bf16 %v1198_v32, %v1197_v30  ;;  %v1590_v30 = vld [vmem:[#allocation12 + $0x90] sm:$0xff] }
 0x2b8   :  { %2574 = vmatprep.subr.bf16.mxu1 %v3056_v7  ;;  %v3553_v34 = vpack.c.bf16 %v1591_v33, %v1590_v30  ;;  %v1603_v33 = vld [vmem:[#allocation12 + $0xf8] sm:$0xff] }
 0x34d   :  { %v840_v60 = vpop.f32.mrb[6].mxu1  ;;  %v923_v61 = vpop.f32.mrb[12].mxu0 }
 0x34e   :  { %v842_v1 = vpop.f32.mrb[7].mxu1  ;;  %v925_v2 = vpop.f32.mrb[13].mxu0 }
 0x34f   :  { %1876 = vmatprep.mubr.msk.f32.mxu0 %vm3387_vm14, %v842_v1  ;;  %1882 = vmatprep.mubr.msk.f32.mxu1 %vm3395_vm1, %v925_v2  ;;  %vm3472_vm14 = vmand %vm1046_vm6, %vm1067_vm13  ;;  %v1206_v1 = vld [vmem:[#allocation11 + $0x278] sm:$0xff]  ;;  %v1026_v2 = vadd.s32 512, %v3319_v31 }
 0x350   :  { %1877 = vmatmul.mubr.msk.f32.vlgmr.msra.gmra.mrb[18].mxu0 %vm3401_vm4, %v840_v60  ;;  %1883 = vmatmul.mubr.msk.f32.vlgmr.msra.gmra.mrb[18].mxu1 %vm3407_vm7, %v923_v61  ;;  %vm3482_vm1 = vmand %vm1043_vm9, %vm1064_vm11  ;;  %vm3649_vm7 = vnez %v3636_v55  ;;  %v1203_v55 = vld [vmem:[#allocation11 + $0x260] sm:$0xff]  ;;  %v1027_v61 = vadd.s32 640, %v3319_v31 }
 0x351   :  { %2545 = vmatpush3.bf16.msra.mxu0 %v2544_v62  ;;  %v846_v11 = vpop.f32.mrb[8].mxu1  ;;  %v929_v12 = vpop.f32.mrb[14].mxu0  ;;  %vm1084_vm4 = vmand %vm1045_vm15, %vm1066_vm0  ;;  %v2568_v60 = vpack.c.bf16 %v1204_v57, %v1203_v55  ;;  %v2570_v62 = vpack.c.bf16 %v1222_v59, %v1221_v58  ;;  %vm1056_vm9 = vcmp.lt.s32.totalorder %v1026_v2, %v3364_v42  ;;  %v1875_v59 = vld [vmem:[#allocation14 + $0x1] ss:$0 sm:$0xff] }
 0x352   :  { %v848_v15 = vpop.f32.mrb[9].mxu1  ;;  %v931_v16 = vpop.f32.mrb[15].mxu0  ;;  %2547 = vmatprep.subr.bf16.mxu0 %v2546_v3  ;;  %vm3494_vm13 = vmand %vm3472_vm14, %vm1090_vm3  ;;  %v2572_v3 = vpack.c.bf16 %v1206_v1, %v1205_v63  ;;  %vm1057_vm6 = vcmp.lt.s32.totalorder %v1027_v61, %v3364_v42  ;;  %vm1063_vm15 = vcmp.lt.s32.totalorder %v1027_v61, %v3376_v48  ;;  %vm1041_vm14 = vcmp.ge.s32.totalorder %v1026_v2, %v3360_v40 }
 0x353   :  { %1878 = vmatprep.mubr.msk.f32.mxu0 %vm3413_vm10, %v848_v15  ;;  %1884 = vmatprep.mubr.msk.f32.mxu1 %vm3649_vm7, %v931_v16  ;;  %vm3506_vm10 = vmand %vm3482_vm1, %vm1090_vm3  ;;  %vm1062_vm1 = vcmp.lt.s32.totalorder %v1026_v2, %v3376_v48  ;;  %vm1069_vm7 = vcmp.lt.s32.totalorder %v1027_v61, %v3385_v51  ;;  %v1485_v16 = vld [vmem:[#allocation12 + $0x40] sm:$0xff] }
 0x354   :  { %1879 = vmatmul.mubr.msk.f32.gmra.mrb[20].mxu0 %vm3434_vm5, %v846_v11  ;;  %1885 = vmatmul.mubr.msk.f32.gmra.mrb[20].mxu1 %vm3440_vm8, %v929_v12  ;;  %vm1105_vm2 = vmand %vm1084_vm4, %vm1090_vm3  ;;  %vm1036_vm5 = vcmp.ge.s32.totalorder %v1027_v61, %v3357_v39  ;;  %vm1035_vm8 = vcmp.ge.s32.totalorder %v1026_v2, %v3357_v39  ;;  %vm1048_vm4 = vcmp.ge.s32.totalorder %v1027_v61, %v3368_v44  ;;  %v1482_v11 = vld [vmem:[#allocation12 + $0x28] sm:$0xff] }
 0x355   :  { %2549 = vmatpush3.bf16.msra.mxu0 %v2548_v13  ;;  %v852_v25 = vpop.f32.mrb[10].mxu1  ;;  %v935_v20 = vpop.f32.mrb[16].mxu0  ;;  %vm1075_vm11 = vmand %vm1036_vm5, %vm1057_vm6  ;;  %v2581_v12 = vpack.c.bf16 %v1482_v11, %v1481_v56  ;;  %v1483_v13 = vld [vmem:[#allocation12 + $0x30] sm:$0xff] }
 0x356   :  { %v854_v27 = vpop.f32.mrb[11].mxu1  ;;  %v937_v28 = vpop.f32.mrb[17].mxu0  ;;  %2551 = vmatprep.subr.bf16.mxu0 %v2550_v17  ;;  %vm1074_vm0 = vmand %vm1035_vm8, %vm1056_vm9  ;;  %v2584_v15 = vpack.c.bf16 %v1484_v14, %v1483_v13  ;;  %v1486_v17 = vld [vmem:[#allocation12 + $0x48] sm:$0xff] }
 0x357   :  { %1880 = vmatprep.mubr.msk.f32.mxu0 %vm3456_vm12, %v854_v27  ;;  %1886 = vmatprep.mubr.msk.f32.mxu1 %vm3494_vm13, %v937_v28  ;;  %vm1042_vm12 = vcmp.ge.s32.totalorder %v1027_v61, %v3360_v40  ;;  %vm1080_vm5 = vmand %vm1041_vm14, %vm1062_vm1  ;;  %v2587_v18 = vpack.c.bf16 %v1486_v17, %v1485_v16  ;;  %v1588_v28 = vld [vmem:[#allocation12 + $0x80] sm:$0xff] }
 0x358   :  { %1881 = vmatmul.mubr.msk.f32.gmra.mrb[22].mxu0 %vm3506_vm10, %v852_v25  ;;  %1887 = vmatmul.mubr.msk.f32.gmra.mrb[22].mxu1 %vm1105_vm2, %v935_v20  ;;  %vm1081_vm13 = vmand %vm1042_vm12, %vm1063_vm15  ;;  %vm1047_vm10 = vcmp.ge.s32.totalorder %v1026_v2, %v3368_v44  ;;  %vm1068_vm2 = vcmp.lt.s32.totalorder %v1026_v2, %v3385_v51  ;;  %v1477_v44 = vld [vmem:[#allocation12] sm:$0xff]  ;;  %v1478_v51 = vld [vmem:[#allocation12 + $0x8] sm:$0xff]  ;;  %v2593_v25 = vpack.c.bf16 %v1490_v24, %v1489_v23 }
 0x359   :  { %2553 = vmatpush3.bf16.msra.mxu0 %v2552_v26  ;;  %vm1087_vm6 = vmand %vm1048_vm4, %vm1069_vm7  ;;  %v2575_v6 = vpack.c.bf16 %v1478_v51, %v1477_v44  ;;  %v1491_v20 = vld [vmem:[#allocation12 + $0x70] sm:$0xff]  ;;  %v1492_v26 = vld [vmem:[#allocation12 + $0x78] sm:$0xff]  ;;  %vm1689_vm7 = vcmp.lt.s32.totalorder %v3319_v31, 35 }
 0x35a   :  { %2555 = vmatprep.subr.bf16.mxu0 %v2554_v29  ;;  %vm1086_vm8 = vmand %vm1047_vm10, %vm1068_vm2  ;;  %v2596_v27 = vpack.c.bf16 %v1492_v26, %v1491_v20  ;;  %v1589_v29 = vld [vmem:[#allocation12 + $0x88] sm:$0xff] }
 0x35b   :  { %vm1108_vm9 = vmand %vm1087_vm6, %vm1090_vm3  ;;  %2576 = vmatpush3.bf16.msra.mxu1 %v2575_v6  ;;  %v3550_v32 = vpack.c.bf16 %v1589_v29, %v1588_v28 }
 0x35c   :  { %2577 = vmatprep.subr.bf16.mxu1 %v3056_v7 }
 0x35d   :  { %2557 = vmatpush3.bf16.msra.mxu0 %v2556_v35  ;;  %v1592_v35 = vld [vmem:[#allocation12 + $0xa0] sm:$0xff] }
 0x35e   :  { %2559 = vmatprep.subr.bf16.mxu0 %v2558_v36  ;;  %v1593_v36 = vld [vmem:[#allocation12 + $0xa8] sm:$0xff] }
 0x35f   :  { %2579 = vmatpush3.bf16.msra.mxu1 %v2578_v10  ;;  %v3557_v37 = vpack.c.bf16 %v1593_v36, %v1592_v35  ;;  %v1894_v35 = vld [vmem:[#allocation14 + $0x2] ss:$0 sm:$0xff] }
 0x360   :  { %2580 = vmatprep.subr.bf16.mxu1 %v3056_v7 }
 0x361   :  { %2561 = vmatpush3.bf16.msra.mxu0 %v2560_v45  ;;  %v1596_v45 = vld [vmem:[#allocation12 + $0xc0] sm:$0xff] }
 0x362   :  { %2563 = vmatprep.subr.bf16.mxu0 %v2562_v46  ;;  %v1597_v46 = vld [vmem:[#allocation12 + $0xc8] sm:$0xff] }
 0x363   :  { %2582 = vmatpush3.bf16.msra.mxu1 %v2581_v12  ;;  %v3565_v47 = vpack.c.bf16 %v1597_v46, %v1596_v45 }
 0x364   :  { %2583 = vmatprep.subr.bf16.mxu1 %v3056_v7 }
 0x365   :  { %2565 = vmatpush3.bf16.msra.mxu0 %v2564_v53  ;;  %v1600_v53 = vld [vmem:[#allocation12 + $0xe0] sm:$0xff] }
 0x366   :  { %2567 = vmatprep.subr.bf16.mxu0 %v2566_v54  ;;  %v1601_v54 = vld [vmem:[#allocation12 + $0xe8] sm:$0xff] }
 0x367   :  { %2585 = vmatpush3.bf16.msra.mxu1 %v2584_v15  ;;  %v3573_v55 = vpack.c.bf16 %v1601_v54, %v1600_v53 }
 0x368   :  { %2586 = vmatprep.subr.bf16.mxu1 %v3056_v7 }
 0x369   :  { %2569 = vmatpush3.bf16.msra.mxu0 %v2568_v60 }
 0x36a   :  { %2571 = vmatprep.subr.bf16.mxu0 %v2570_v62 }
 0x36b   :  { %2588 = vmatpush3.bf16.msra.mxu1 %v2587_v18 }
 0x36c   :  { %2589 = vmatprep.subr.bf16.mxu1 %v3056_v7 }
 0x36d   :  { %v1006_v4 = vpop.f32.mrb[12].mxu1  ;;  %2573 = vmatpush3.bf16.msra.mxu0 %v2572_v3 }
 0x36e   :  { %v1008_v5 = vpop.f32.mrb[13].mxu1  ;;  %2598 = vmatprep.subr.bf16.mxu0 %v3056_v7 }
 0x36f   :  { %1888 = vmatprep.mubr.msk.f32.mxu0 %vm1075_vm11, %v1008_v5  ;;  %vm1107_vm11 = vmand %vm1086_vm8, %vm1090_vm3  ;;  %2591 = vmatpush3.bf16.msra.mxu1 %v2590_v22  ;;  %vm3057_vm3 = vmmov 0  }
 0x370   :  { %1889 = vmatmul.mubr.msk.f32.vlgmr.msra.gmra.mrb[24].mxu0 %vm1074_vm0, %v1006_v4  ;;  %2592 = vmatprep.subr.bf16.mxu1 %v3056_v7 }
 0x371   :  { %v1012_v39 = vpop.f32.mrb[14].mxu1  ;;  %2236 = vmatprep.mubr.msk.f32.mxu1 %vm3057_vm3, %v3054_v0  ;;  %2600 = vmatpush3.bf16.msra.mxu0 %v3550_v32 }
 0x372   :  { %v1014_v42 = vpop.f32.mrb[15].mxu1  ;;  %2601 = vmatprep.subr.bf16.mxu0 %v3056_v7 }
 0x373   :  { %1890 = vmatprep.mubr.msk.f32.mxu0 %vm1081_vm13, %v1014_v42  ;;  %2594 = vmatpush3.bf16.msra.mxu1 %v2593_v25 }
 0x374   :  { %1891 = vmatmul.mubr.msk.f32.gmra.mrb[26].mxu0 %vm1080_vm5, %v1012_v39  ;;  %2595 = vmatprep.subr.bf16.mxu1 %v3056_v7 }
 0x375   :  { %v1018_v40 = vpop.f32.mrb[16].mxu1  ;;  %2603 = vmatpush3.bf16.msra.mxu0 %v3553_v34 }
 0x376   :  { %v1020_v48 = vpop.f32.mrb[17].mxu1  ;;  %2604 = vmatprep.subr.bf16.mxu0 %v3056_v7 }
 0x377   :  { %1892 = vmatprep.mubr.msk.f32.mxu0 %vm1108_vm9, %v1020_v48  ;;  %2597 = vmatpush3.bf16.msra.mxu1 %v2596_v27 }
 0x378   :  { %1893 = vmatmul.mubr.msk.f32.gmra.mrb[28].mxu0 %vm1107_vm11, %v1018_v40  ;;  %2622 = vmatprep.subr.bf16.mxu1 %v3056_v7 }
 0x379   :  { %2277 = vmatprep.mubr.msk.f32.mxu0 %vm3057_vm3, %v3054_v0  ;;  %2606 = vmatpush3.bf16.msra.mxu0 %v3557_v37 }
 0x37a   :  { %2607 = vmatprep.subr.bf16.mxu0 %v3056_v7 }
 0x37d   :  { %2609 = vmatpush3.bf16.msra.mxu0 %v3561_v43 }
 0x37e   :  { %2610 = vmatprep.subr.bf16.mxu0 %v3056_v7 }
 0x381   :  { %2612 = vmatpush3.bf16.msra.mxu0 %v3565_v47 }
 0x382   :  { %2613 = vmatprep.subr.bf16.mxu0 %v3056_v7 }
 0x385   :  { %2615 = vmatpush3.bf16.msra.mxu0 %v3569_v52 }
 0x386   :  { %2616 = vmatprep.subr.bf16.mxu0 %v3056_v7 }
 0x389   :  { %2618 = vmatpush3.bf16.msra.mxu0 %v3573_v55 }
 0x38a   :  { %2619 = vmatprep.subr.bf16.mxu0 %v3056_v7 }
 0x423   :  { %v2075_v57 = vpop.f32.mrb[18].mxu0  ;;  %v2116_v58 = vpop.f32.mrb[18].mxu1 }
 0x424   :  { %v2076_v60 = vpop.f32.mrb[19].mxu0  ;;  %v2117_v61 = vpop.f32.mrb[19].mxu1 }
 0x425   :  { %v2077_v62 = vadd.f32 %v2076_v60, %v2075_v57  ;;  %v2118_v63 = vadd.f32 %v2117_v61, %v2116_v58  ;;  %v1895_v57 = vld [vmem:[#allocation14 + $0x3] ss:$0 sm:$0xff] }
 0x427   :  { %v1295_v1 = vadd.f32 %v2077_v62, %v1875_v59  ;;  %v2078_v2 = vpop.f32.mrb[20].mxu0  ;;  %v2119_v3 = vpop.f32.mrb[20].mxu1 }
 0x428   :  { %v2079_v4 = vpop.f32.mrb[21].mxu0  ;;  %v2120_v5 = vpop.f32.mrb[21].mxu1 }
 0x429   :  { %v1375_v39 = vadd.f32 %v2118_v63, %v1295_v1  ;;  %v2080_v42 = vadd.f32 %v2079_v4, %v2078_v2  ;;  %v2121_v40 = vadd.f32 %v2120_v5, %v2119_v3 }
 0x42b   :  { %v1300_v48 = vadd.f32 %v2080_v42, %v1875_v59  ;;  %v2081_v44 = vpop.f32.mrb[22].mxu0  ;;  %v2122_v51 = vpop.f32.mrb[22].mxu1 }
 0x42c   :  { %v2082_v6 = vpop.f32.mrb[23].mxu0  ;;  %v2123_v8 = vpop.f32.mrb[23].mxu1 }
 0x42d   :  { %v1380_v9 = vadd.f32 %v2121_v40, %v1300_v48  ;;  %v2083_v10 = vadd.f32 %v2082_v6, %v2081_v44  ;;  %v2124_v56 = vadd.f32 %v2123_v8, %v2122_v51 }
 0x42f   :  { %v1305_v11 = vadd.f32 %v2083_v10, %v1875_v59 }
 0x431   :  { %v1385_v12 = vadd.f32 %v2124_v56, %v1305_v11 }
 0x443   :  { %v2157_v13 = vpop.f32.mrb[24].mxu0 }
 0x444   :  { %v2158_v14 = vpop.f32.mrb[25].mxu0 }
 0x445   :  { %v2159_v15 = vadd.f32 %v2158_v14, %v2157_v13 }
 0x447   :  { %v1455_v16 = vadd.f32 %v2159_v15, %v1375_v39  ;;  %v2160_v17 = vpop.f32.mrb[26].mxu0 }
 0x448   :  { %v2161_v18 = vpop.f32.mrb[27].mxu0 }
 0x449   :  { %vm1468_vm12 = vcmp.ge.f32.partialorder %v1455_v16, 0.0  ;;  %v1471_v19 = vmul.f32 0.01, %v1455_v16  ;;  %v2162_v21 = vadd.f32 %v2161_v18, %v2160_v17 }
 0x44b   :  { %v1460_v22 = vadd.f32 %v2162_v21, %v1380_v9  ;;  %v2163_v23 = vpop.f32.mrb[28].mxu0  ;;  %v1474_v24 = vsel %vm1468_vm12, %v1455_v16, %v1471_v19 }
 0x44c   :  { %v2164_v25 = vpop.f32.mrb[29].mxu0  ;;  %2237 = vmatmul.mubr.f32.vlgmr.msra.gmra.mrb[24].mxu1 %v1474_v24 }
 0x44d   :  { %v2165_v20 = vadd.f32 %v2164_v25, %v2163_v23  ;;  %2239 = vmatprep.mubr.msk.f32.mxu1 %vm3057_vm3, %v3054_v0  ;;  %vm1469_vm15 = vcmp.ge.f32.partialorder %v1460_v22, 0.0  ;;  %v1472_v26 = vmul.f32 0.01, %v1460_v22  ;;  %2630 = vmatpush3.bf16.msra.mxu1 %v3550_v32  ;;  %v1602_v32 = vld [vmem:[#allocation12 + $0xf0] sm:$0xff] }
 0x44e   :  { %2623 = vmatprep.subr.bf16.mxu1 %v3056_v7 }
 0x44f   :  { %v1465_v27 = vadd.f32 %v2165_v20, %v1385_v12  ;;  %v1475_v28 = vsel %vm1469_vm15, %v1460_v22, %v1472_v26 }
 0x450   :  { %2240 = vmatmul.mubr.f32.gmra.mrb[26].mxu1 %v1475_v28 }
 0x451   :  { %2242 = vmatprep.mubr.msk.f32.mxu1 %vm3057_vm3, %v3054_v0  ;;  %vm1470_vm0 = vcmp.ge.f32.partialorder %v1465_v27, 0.0  ;;  %v1473_v29 = vmul.f32 0.01, %v1465_v27  ;;  %2631 = vmatpush3.bf16.msra.mxu1 %v3553_v34  ;;  %v2620_v34 = vpack.c.bf16 %v1603_v33, %v1602_v32 }
 0x452   :  { %2624 = vmatprep.subr.bf16.mxu1 %v3056_v7 }
 0x453   :  { %v1476_v30 = vsel %vm1470_vm0, %v1465_v27, %v1473_v29  ;;  %2621 = vmatpush3.bf16.msra.mxu0 %v2620_v34 }
 0x454   :  { %2243 = vmatmul.mubr.f32.gmra.mrb[28].mxu1 %v1476_v30 }
 0x455   :  { %2632 = vmatpush3.bf16.msra.mxu1 %v3557_v37  ;;  %2280 = vmatprep.mubr.msk.f32.mxu1 %vm3057_vm3, %v3054_v0 }
 0x456   :  { %2625 = vmatprep.subr.bf16.mxu1 %v3056_v7 }
 0x459   :  { %2633 = vmatpush3.bf16.msra.mxu1 %v3561_v43 }
 0x45a   :  { %2626 = vmatprep.subr.bf16.mxu1 %v3056_v7 }
 0x45d   :  { %2634 = vmatpush3.bf16.msra.mxu1 %v3565_v47 }
 0x45e   :  { %2627 = vmatprep.subr.bf16.mxu1 %v3056_v7 }
 0x461   :  { %2635 = vmatpush3.bf16.msra.mxu1 %v3569_v52 }
 0x462   :  { %2628 = vmatprep.subr.bf16.mxu1 %v3056_v7 }
 0x465   :  { %2636 = vmatpush3.bf16.msra.mxu1 %v3573_v55 }
 0x466   :  { %2629 = vmatprep.subr.bf16.mxu1 %v3056_v7 }
 0x469   :  { %2637 = vmatpush3.bf16.msra.mxu1 %v2620_v34 }
 0x51f   :  { %v1564_v36 = vpop.f32.mrb[24].mxu1 }
 0x520   :  { %v1565_v37 = vadd.f32 %v1894_v35, %v1564_v36  ;;  %v2238_v38 = vpop.f32.mrb[25].mxu1 }
 0x522   :  { %vm1578_vm14 = vcmp.ge.f32.partialorder %v1565_v37, 0.0  ;;  %v1581_v41 = vmul.f32 0.01, %v1565_v37 }
 0x523   :  { %v1569_v43 = vpop.f32.mrb[26].mxu1 }
 0x524   :  { %v1584_v45 = vsel %vm1578_vm14, %v1565_v37, %v1581_v41  ;;  %v1570_v46 = vadd.f32 %v1894_v35, %v1569_v43  ;;  %v2241_v47 = vpop.f32.mrb[27].mxu1 }
 0x525   :  { %2278 = vmatmul.mubr.f32.vlgmr.msra.gmra.mrb[30].mxu0 %v1584_v45 }
 0x526   :  { %vm1579_vm1 = vcmp.ge.f32.partialorder %v1570_v46, 0.0  ;;  %v1582_v49 = vmul.f32 0.01, %v1570_v46 }
 0x527   :  { %v1574_v50 = vpop.f32.mrb[28].mxu1 }
 0x528   :  { %v1585_v7 = vsel %vm1579_vm1, %v1570_v46, %v1582_v49  ;;  %v1575_v52 = vadd.f32 %v1894_v35, %v1574_v50  ;;  %v2244_v53 = vpop.f32.mrb[29].mxu1 }
 0x529   :  { %2281 = vmatmul.mubr.f32.vlgmr.msra.gmra.mrb[30].mxu1 %v1585_v7 }
 0x52a   :  { %v1583_v54 = vmul.f32 0.01, %v1575_v52  ;;  %2283 = vmatprep.mubr.msk.f32.mxu1 %vm3057_vm3, %v3054_v0  ;;  %vm1580_vm4 = vcmp.ge.f32.partialorder %v1575_v52, 0.0 }
 0x52c   :  { %v1586_v55 = vsel %vm1580_vm4, %v1575_v52, %v1583_v54 }
 0x52d   :  { %2284 = vmatmul.mubr.f32.gmra.mrb[32].mxu1 %v1586_v55 }
 0x5f8   :  { %v1675_v58 = vpop.f32.mrb[30].mxu0 }
 0x5f9   :  { %v1676_v59 = vadd.f32 %v1895_v57, %v1675_v58  ;;  %v2279_v60 = vpop.f32.mrb[31].mxu0 }
 0x5fb   :  { %v1690_v61 = vsel %vm1689_vm7, %v1676_v59, -1e+30 }
 0x5fc   :  { %1693 = vmax.xlane.f32.xlu0 %v1690_v61  ;;  %v1680_v62 = vpop.f32.mrb[30].mxu1 }
 0x5fd   :  { %v1681_v63 = vadd.f32 %v1895_v57, %v1680_v62  ;;  %v2282_v1 = vpop.f32.mrb[31].mxu1 }
 0x5ff   :  { %v1691_v2 = vsel %vm1689_vm7, %v1681_v63, -1e+30 }
 0x600   :  { %1695 = vmax.xlane.f32.xlu0 %v1691_v2  ;;  %v1685_v3 = vpop.f32.mrb[32].mxu1 }
 0x601   :  { %v1686_v4 = vadd.f32 %v1895_v57, %v1685_v3  ;;  %v2285_v5 = vpop.f32.mrb[33].mxu1 }
 0x603   :  { %v1692_v0 = vsel %vm1689_vm7, %v1686_v4, -1e+30 }
 0x604   :  { %1697 = vmax.xlane.f32.xlu1 %v1692_v0 }
 0x689   :  { %v1694_v39 = vpop.xlane.xlu0 %1693 }
 0x68a   :  { %v1699_v42 = vsub.f32 %v1690_v61, %v1694_v39 }
 0x68c   :  { %v1702_v40 = vmul.f32 1.442695, %v1699_v42 }
 0x68d   :  { %v1696_v48 = vpop.xlane.xlu0 %1695 }
 0x68e   :  { %2661 = vpow2.f32 %v1702_v40  ;;  %v1700_v31 = vsub.f32 %v1691_v2, %v1696_v48 }
 0x690   :  { %v1704_v44 = vmul.f32 1.442695, %v1700_v31 }
 0x691   :  { %v1698_v51 = vpop.xlane.xlu1 %1697 }
 0x692   :  { %2663 = vpow2.f32 %v1704_v44  ;;  %v1701_v6 = vsub.f32 %v1692_v0, %v1698_v51 }
 0x694   :  { %v1706_v8 = vmul.f32 1.442695, %v1701_v6 }
 0x696   :  { %2665 = vpow2.f32 %v1706_v8 }
 0x698   :  { %v2662_v9 = vpop.eup %2661 }
 0x699   :  { %1708 = vadd.xlane.f32.xlu1 %v2662_v9 }
 0x69c   :  { %v2664_v10 = vpop.eup %2663 }
 0x69d   :  { %1710 = vadd.xlane.f32.xlu0 %v2664_v10 }
 0x6a0   :  { %v2666_v56 = vpop.eup %2665 }
 0x6a1   :  { %1712 = vadd.xlane.f32.xlu1 %v2666_v56 }
 0x726   :  { %v1709_v11 = vpop.xlane.xlu1 %1708 }
 0x727   :  { %2667 = vlog2.f32 %v1709_v11 }
 0x72a   :  { %v1711_v12 = vpop.xlane.xlu0 %1710 }
 0x72b   :  { %2669 = vlog2.f32 %v1711_v12 }
 0x72e   :  { %v1713_v13 = vpop.xlane.xlu1 %1712 }
 0x72f   :  { %2671 = vlog2.f32 %v1713_v13 }
 0x731   :  { %v2668_v14 = vpop.eup %2667 }
 0x732   :  { %v1715_v15 = vmul.f32 0.6931472, %v2668_v14 }
 0x734   :  { %v1720_v16 = vadd.f32 %v1715_v15, %v1694_v39 }
 0x735   :  { %v2670_v17 = vpop.eup %2669 }
 0x736   :  { %v1723_v18 = vsub.f32 %v1690_v61, %v1720_v16  ;;  %v1717_v19 = vmul.f32 0.6931472, %v2670_v17 }
 0x738   :  { %1726 = vst [vmem:[#allocation15] sm:$0xff] %v1723_v18  ;;  %v1721_v21 = vadd.f32 %v1717_v19, %v1696_v48 }
 0x739   :  { %v2672_v22 = vpop.eup %2671 }
 0x73a   :  { %v1724_v23 = vsub.f32 %v1691_v2, %v1721_v21  ;;  %v1719_v24 = vmul.f32 0.6931472, %v2672_v22 }
 0x73c   :  { %1727 = vst [vmem:[#allocation15 + $0x8] sm:$0xff] %v1724_v23  ;;  %v1722_v25 = vadd.f32 %v1719_v24, %v1698_v51 }
 0x73e   :  { %v1725_v20 = vsub.f32 %v1692_v0, %v1722_v25 }
 0x740   :  { %1728 = vst [vmem:[#allocation15 + $0x10] sm:$0xff] %v1725_v20 }
 0x741   :  { %2998 = shalt.err (!%p2995_p11)
}
 0x742   :  { %s2999_s26 = scalar_lea.hbm %s3623_s7, 384 }
 0x743   :  { %p3000_p9 = scmp.ne.s32.totalorder %s3623_s7, %s2999_s26  ;;  %p3003_p7 = scmp.lt.u32.totalorder %s2999_s26, %s3623_s7 }
 0x745   :  { %p3005_p12 = pnand %p3003_p7, %p3000_p9 }
 0x747   :  { %3008 = shalt.err (!%p3005_p12)
}
 0x748   :  { %1740 = dma.vmem_to_hbm [thread:$0]  %s1735_s11, 384, %s3623_s7, [#allocation6], %s3039_s0, %s3039_s0, %s3040_s25  }
 0x749   :  { %3033 = dma.done.wait [#allocation6], 384  }
 0x74a   :  { %3034 = vsyncadd [#allocation6], 4294966912 }
 0x74b   :  { %1744 = vsyncpa [#allocation5], 1 }
 0x74c   :  { %1745 = vsyncpa [#allocation10], 1 }
 0x74d   :  { %1746 = vsyncpa [#allocation13], 1 }
 0x74e   :  { %1747 = vsyncpa [#allocation6], 1 }
 0x74f   :  { %1748 = vsyncpa [#allocation7], 1 }
 0x750   :  { %1749 = vsyncmov [#allocation3] }
 0x753   :  { %s1750_s30 = vpop.sfrf %1749 }
 0x754   :  { %p1896_p0 = scmp.ne.s32.totalorder %s1750_s30, 0 }
 0x756   :  { %1754 = shalt.err (%p1896_p0)  }
 0x757   :  { %1756 = vsyncmov [#allocation3 + $0x1] }
 0x75a   :  { %s1757_s8 = vpop.sfrf %1756 }
 0x75b   :  { %p1897_p1 = scmp.ne.s32.totalorder %s1757_s8, 0 }
 0x75d   :  { %1761 = shalt.err (%p1897_p1)  }
 0x75e   :  { %1763 = vsyncmov [#allocation3 + $0x2] }
 0x761   :  { %s1764_s9 = vpop.sfrf %1763 }
 0x762   :  { %p1898_p13 = scmp.ne.s32.totalorder %s1764_s9, 0 }
 0x764   :  { %1768 = shalt.err (%p1898_p13)  }
 0x765   :  { %1770 = vsyncmov [#allocation3 + $0x3] }
 0x768   :  { %s1771_s7 = vpop.sfrf %1770 }
 0x769   :  { %p1899_p6 = scmp.ne.s32.totalorder %s1771_s7, 0 }
 0x76b   :  { %1775 = shalt.err (%p1899_p6)  }
 0x76c   :  { %1777 = vsyncmov [#allocation3 + $0x4] }
 0x76f   :  { %s1778_s0 = vpop.sfrf %1777 }
 0x770   :  { %p1900_p2 = scmp.ne.s32.totalorder %s1778_s0, 0 }
 0x772   :  { %1782 = shalt.err (%p1900_p2)  }
 0x773   :  { %1784 = vsyncmov [#allocation3 + $0x5] }
 0x776   :  { %s1785_s25 = vpop.sfrf %1784 }
 0x777   :  { %p1901_p3 = scmp.ne.s32.totalorder %s1785_s25, 0 }
 0x779   :  { %1789 = shalt.err (%p1901_p3)  }
 0x77a   :  { %1791 = vsyncmov [#allocation3 + $0x6] }
 0x77d   :  { %s1792_s10 = vpop.sfrf %1791 }
 0x77e   :  { %p1902_p4 = scmp.ne.s32.totalorder %s1792_s10, 0 }
 0x780   :  { %1796 = shalt.err (%p1902_p4)  }
 0x781   :  { %1798 = vsyncmov [#allocation3 + $0x7] }
 0x784   :  { %s1799_s6 = vpop.sfrf %1798 }
 0x785   :  { %p1903_p5 = scmp.ne.s32.totalorder %s1799_s6, 0 }
 0x787   :  { %1803 = shalt.err (%p1903_p5)  }

</bundles_post_ra>
